<compile_context>
chip_gen: v7x
topology: tpu7x:2x2x1
jax: 0.10.0
libtpu: 0.0.40
codegen_flags: <defaults>
</compile_context>

<pallas_src>
import functools
import math

import numpy as np
import jax
import jax.numpy as jnp
from jax import lax
from jax.experimental import pallas as pl
from jax.experimental.pallas import tpu as pltpu


# ----------------------------------------------------------------------------
# Host-side constant matrices (layout plumbing only, computed once with numpy)
# ----------------------------------------------------------------------------
def _adaptive_pool_matrix_1d(in_size, out_size):
    """P[i, h] = averaging weight of input index h for adaptive-avg-pool bin i."""
    P = np.zeros((out_size, in_size), np.float32)
    for i in range(out_size):
        start = (i * in_size) // out_size
        end = ((i + 1) * in_size + out_size - 1) // out_size  # ceil
        P[i, start:end] = 1.0 / float(end - start)
    return P


def _bilinear_matrix_1d(out_size, in_size):
    """U[y, i] = bilinear (align_corners=True) weight of source i for output y."""
    U = np.zeros((out_size, in_size), np.float32)
    if in_size == 1:
        U[:, 0] = 1.0
        return U
    for y in range(out_size):
        src = y * (in_size - 1) / (out_size - 1) if out_size > 1 else 0.0
        i0 = min(int(math.floor(src)), in_size - 2)
        frac = src - i0
        U[y, i0] += 1.0 - frac
        U[y, i0 + 1] += frac
    return U


def _stacked_stage_matrices(H, W, sizes):
    """Stack all stages' pool / upsample matrices: P_all (SS, HW), U_cat (HW, SS)."""
    P_list, U_list, offs = [], [], []
    off = 0
    for s in sizes:
        Py = _adaptive_pool_matrix_1d(H, s)
        Px = _adaptive_pool_matrix_1d(W, s)
        Uy = _bilinear_matrix_1d(H, s)
        Ux = _bilinear_matrix_1d(W, s)
        P_list.append(np.kron(Py, Px))          # (s*s, H*W)
        U_list.append(np.kron(Uy, Ux))          # (H*W, s*s)
        offs.append(off)
        off += s * s
    return np.concatenate(P_list, 0), np.concatenate(U_list, 1), offs


def _conv3x3_tap_masks(H, W):
    """Per-tap output validity masks (zero-padding boundary), shape (9, 1, H*W).

    Built from output-coordinate validity, so they also zero every lane that a
    full-width flat roll would wrap around (keep the mask multiply!).
    """
    i = np.arange(H * W)
    y, x = i // W, i % W
    masks = np.zeros((9, 1, H * W), np.float32)
    for k in range(9):
        dy, dx = k // 3, k % 3
        ok = ((y + dy - 1 >= 0) & (y + dy - 1 < H) &
              (x + dx - 1 >= 0) & (x + dx - 1 < W))
        masks[k, 0] = ok.astype(np.float32)
    return masks


# ----------------------------------------------------------------------------
# Fused Pallas kernel: all stages + "concat" + 3x3 conv + BN + ReLU
# (one grid step processes a block of `num_batch` batch elements)
# ----------------------------------------------------------------------------
def _psp_fused_kernel(x_ref, pT_ref, wT_ref, sc_ref, bi_ref, uT_ref,
                      wku_ref, wkx_ref, msk_ref, bsc_ref, bbi_ref, o_ref,
                      *, H, W, F, num_batch):
    HW = H * W

    for n in range(num_batch):                          # static unroll (small N)
        x_bf = x_ref[n].astype(jnp.bfloat16)            # (C, HW), channels-first

        # ---- all pyramid stages fused:
        #      adaptive pool -> 1x1 conv -> BN+ReLU -> bilinear upsample
        pooled_t = jnp.dot(x_bf, pT_ref[...],           # (C, SS)
                           preferred_element_type=jnp.float32)
        z_t = jnp.dot(wT_ref[...], pooled_t.astype(jnp.bfloat16),
                      preferred_element_type=jnp.float32)   # (nst*F, SS)
        # Block-diagonal stage mask is folded into scale/bias (zero off-diag).
        z_t = jnp.maximum(z_t * sc_ref[...] + bi_ref[...], 0.0)
        up_bf = jnp.dot(z_t.astype(jnp.bfloat16), uT_ref[...],
                        preferred_element_type=jnp.float32   # (nst*F, HW)
                        ).astype(jnp.bfloat16)

        # ---- 3x3 conv, padding=1, no bias.
        # Tap weights are pre-split into an upsampled-stage part and a raw-x
        # part (no (Ct, HW) concat is ever materialized), stacked 3 taps per
        # matmul (grouped by conv row dy). Halo handled with pltpu.roll (XLU)
        # + precomputed boundary masks; accumulation in registers.
        acc = jnp.zeros((F, HW), jnp.float32)
        for g in range(3):                              # dy (conv row)
            r0 = g * 3 * F
            full_g = (jnp.dot(wku_ref[r0:r0 + 3 * F, :], up_bf,
                              preferred_element_type=jnp.float32)
                      + jnp.dot(wkx_ref[r0:r0 + 3 * F, :], x_bf,
                                preferred_element_type=jnp.float32))  # (3F, HW)
            for t in range(3):                          # dx (conv col)
                k = g * 3 + t
                s = (g - 1) * W + (t - 1)               # flat source shift
                tap = full_g[t * F:(t + 1) * F, :]      # sublane-aligned rows
                if s != 0:
                    # want tap'[:, p] = tap[:, (p + s) mod HW]
                    tap = pltpu.roll(tap, shift=(-s) % HW, axis=1)
                acc = acc + tap * msk_ref[k]            # mask zeros wrapped lanes

        # ---- folded BatchNorm + ReLU; output is already (F, HW) = NCHW-flat
        o_ref[n] = jnp.maximum(acc * bsc_ref[...] + bbi_ref[...], 0.0)


# ----------------------------------------------------------------------------
# Parameter init (deterministic synthetic, eval-mode BN folded) and packing
# ----------------------------------------------------------------------------
def _fold_bn(gamma, beta, mean, var, eps=1e-5):
    scale = gamma / jnp.sqrt(var + eps)
    bias = beta - mean * scale
    return scale.reshape(1, -1), bias.reshape(1, -1)


def init_psp_params(key, features, out_features=512, sizes=(1, 2, 3, 6)):
    C, F = features, out_features
    Ct = C + len(sizes) * F
    keys = iter(jax.random.split(key, 5 * (len(sizes) + 1) + 1))
    params = {"stage_w": [], "stage_scale": [], "stage_bias": []}
    for _ in sizes:
        w1 = 0.1 * jax.random.normal(next(keys), (C, F), jnp.float32)
        gamma = 0.5 + jax.random.uniform(next(keys), (F,), jnp.float32)
        beta = 0.1 * jax.random.normal(next(keys), (F,), jnp.float32)
        mean = 0.1 * jax.random.normal(next(keys), (F,), jnp.float32)
        var = 1.0 + 0.1 * jnp.abs(jax.random.normal(next(keys), (F,), jnp.float32))
        s, b = _fold_bn(gamma, beta, mean, var)
        params["stage_w"].append(w1)
        params["stage_scale"].append(s)
        params["stage_bias"].append(b)
    w3 = 0.05 * jax.random.normal(next(keys), (3, 3, Ct, F), jnp.float32)
    gamma = 0.5 + jax.random.uniform(next(keys), (F,), jnp.float32)
    beta = 0.1 * jax.random.normal(next(keys), (F,), jnp.float32)
    mean = 0.1 * jax.random.normal(next(keys), (F,), jnp.float32)
    var = 1.0 + 0.1 * jnp.abs(jax.random.normal(next(keys), (F,), jnp.float32))
    bs, bb = _fold_bn(gamma, beta, mean, var)
    params["bott_w"] = w3
    params["bott_scale"] = bs
    params["bott_bias"] = bb
    return params


def _pack_operands(params, H, W, sizes):
    """Pack PyTorch-style params into the fused kernel's stacked operands."""
    C, F = np.asarray(params["stage_w"][0]).shape
    nst = len(sizes)
    P_all, U_cat, offs = _stacked_stage_matrices(H, W, sizes)
    SS = P_all.shape[0]
    w_big_t = np.zeros((nst * F, C), np.float32)
    sc2 = np.zeros((nst * F, SS), np.float32)
    bi2 = np.zeros((nst * F, SS), np.float32)
    for i, s in enumerate(sizes):
        w1 = np.asarray(params["stage_w"][i])                      # (C, F)
        w_big_t[i * F:(i + 1) * F, :] = w1.T
        scale = np.asarray(params["stage_scale"][i]).reshape(F)
        bias = np.asarray(params["stage_bias"][i]).reshape(F)
        sc2[i * F:(i + 1) * F, offs[i]:offs[i] + s * s] = scale[:, None]
        bi2[i * F:(i + 1) * F, offs[i]:offs[i] + s * s] = bias[:, None]
    Ct = C + nst * F
    w3 = np.asarray(params["bott_w"]).reshape(9, Ct, F)            # (tap, in, out)
    wk_t = np.transpose(w3, (0, 2, 1))                             # (9, F, Ct)
    # Split the concat away: stage-output channels first, raw-input channels last
    # (matches [upsampled stages..., x] concat order of the reference module).
    wku = np.ascontiguousarray(wk_t[:, :, :nst * F].reshape(9 * F, nst * F))
    wkx = np.ascontiguousarray(wk_t[:, :, nst * F:].reshape(9 * F, C))
    return dict(
        pT=jnp.asarray(P_all.T, jnp.bfloat16),                     # (HW, SS)
        wT=jnp.asarray(w_big_t, jnp.bfloat16),                     # (nst*F, C)
        sc=jnp.asarray(sc2, jnp.float32),                          # (nst*F, SS)
        bi=jnp.asarray(bi2, jnp.float32),                          # (nst*F, SS)
        uT=jnp.asarray(U_cat.T, jnp.bfloat16),                     # (SS, HW)
        wku=jnp.asarray(wku, jnp.bfloat16),                        # (9F, nst*F)
        wkx=jnp.asarray(wkx, jnp.bfloat16),                        # (9F, C)
        msk=jnp.asarray(_conv3x3_tap_masks(H, W)),                 # (9, 1, HW)
        bsc=jnp.asarray(np.asarray(params["bott_scale"]).reshape(F, 1)),
        bbi=jnp.asarray(np.asarray(params["bott_bias"]).reshape(F, 1)),
    )


# ----------------------------------------------------------------------------
# Full forward (single pallas_call; whole batch in one grid step at demo sizes)
# ----------------------------------------------------------------------------
def psp_module_forward(feats_nchw, params, sizes=(1, 2, 3, 6), batch_block=None):
    """feats_nchw: (N, C, H, W) -> (N, out_features, H, W) float32."""
    N, C, H, W = feats_nchw.shape
    F = int(np.asarray(params["stage_w"][0]).shape[1])
    nst = len(sizes)
    HW = H * W
    ops = _pack_operands(params, H, W, sizes)
    SS = int(ops["pT"].shape[1])

    bb = N if batch_block is None else batch_block
    assert N % bb == 0, "batch_block must divide N"

    # Free reshape: stays channels-first, no transpose pass over activations.
    # Input may be f32 or bf16; the kernel casts MXU operands to bf16 itself.
    x = feats_nchw.reshape(N, C, HW)

    kern = functools.partial(_psp_fused_kernel, H=H, W=W, F=F, num_batch=bb)
    out = pl.pallas_call(
        kern,
        out_shape=jax.ShapeDtypeStruct((N, F, HW), jnp.float32),
        grid=(N // bb,),
        in_specs=[
            pl.BlockSpec((bb, C, HW), lambda n: (n, 0, 0)),         # x (batch block)
            pl.BlockSpec((HW, SS), lambda n: (0, 0)),               # pool matrix^T
            pl.BlockSpec((nst * F, C), lambda n: (0, 0)),           # stacked 1x1 W^T
            pl.BlockSpec((nst * F, SS), lambda n: (0, 0)),          # BN scale (masked)
            pl.BlockSpec((nst * F, SS), lambda n: (0, 0)),          # BN bias  (masked)
            pl.BlockSpec((SS, HW), lambda n: (0, 0)),               # upsample matrix^T
            pl.BlockSpec((9 * F, nst * F), lambda n: (0, 0)),       # conv taps (stage part)
            pl.BlockSpec((9 * F, C), lambda n: (0, 0)),             # conv taps (x part)
            pl.BlockSpec((9, 1, HW), lambda n: (0, 0, 0)),          # boundary masks
            pl.BlockSpec((F, 1), lambda n: (0, 0)),                 # bottleneck BN scale
            pl.BlockSpec((F, 1), lambda n: (0, 0)),                 # bottleneck BN bias
        ],
        out_specs=pl.BlockSpec((bb, F, HW), lambda n: (n, 0, 0)),   # lane-dense (F, HW)
        compiler_params=pltpu.CompilerParams(
            dimension_semantics=("parallel",)),
    )(x, ops["pT"], ops["wT"], ops["sc"], ops["bi"], ops["uT"],
      ops["wku"], ops["wkx"], ops["msk"], ops["bsc"], ops["bbi"])
    # Dropout2d(0.1): identity in eval mode.
    return out.reshape(N, F, H, W)   # free reshape; layout is already NCHW


# ----------------------------------------------------------------------------
# Pure-JAX f32 reference (einsums + lax.conv) for validation
# ----------------------------------------------------------------------------
def psp_module_reference(feats_nchw, params, sizes=(1, 2, 3, 6)):
    x = jnp.transpose(feats_nchw, (0, 2, 3, 1)).astype(jnp.float32)  # NHWC
    N, H, W, C = x.shape
    F = params["stage_w"][0].shape[1]
    x_flat = x.reshape(N, H * W, C)
    hp = lax.Precision.HIGHEST
    priors = []
    for i, s in enumerate(sizes):
        Py = _adaptive_pool_matrix_1d(H, s)
        Px = _adaptive_pool_matrix_1d(W, s)
        Uy = _bilinear_matrix_1d(H, s)
        Ux = _bilinear_matrix_1d(W, s)
        P = jnp.asarray(np.kron(Py, Px))
        U = jnp.asarray(np.kron(Uy, Ux))
        pooled = jnp.einsum("ph,nhc->npc", P, x_flat, precision=hp)
        z = jnp.einsum("npc,cf->npf", pooled, params["stage_w"][i], precision=hp)
        z = jnp.maximum(z * params["stage_scale"][i] + params["stage_bias"][i], 0.0)
        priors.append(jnp.einsum("hp,npf->nhf", U, z, precision=hp))
    priors.append(x_flat)
    y = jnp.concatenate(priors, axis=-1).reshape(N, H, W, -1)
    out = lax.conv_general_dilated(
        y, params["bott_w"], window_strides=(1, 1), padding="SAME",
        dimension_numbers=("NHWC", "HWIO", "NHWC"), precision=hp)
    out = jnp.maximum(out * params["bott_scale"].reshape(1, 1, 1, F)
                      + params["bott_bias"].reshape(1, 1, 1, F), 0.0)
    return jnp.transpose(out, (0, 3, 1, 2))


# ----------------------------------------------------------------------------
if __name__ == "__main__":
    # Small shapes consistent with the module: N=2, features C=4, 16x16 spatial,
    # out_features=32, pyramid sizes (1, 2, 3, 6).
    N, C, H, W = 2, 4, 16, 16
    OUT_F = 32
    SIZES = (1, 2, 3, 6)

    key = jax.random.PRNGKey(0)
    k_x, k_p = jax.random.split(key)
    feats = jax.random.normal(k_x, (N, C, H, W), jnp.float32)
    params = init_psp_params(k_p, C, OUT_F, SIZES)

    out = jax.block_until_ready(psp_module_forward(feats, params, SIZES))
    assert out.shape == (N, OUT_F, H, W), out.shape

    ref = jax.block_until_ready(psp_module_reference(feats, params, SIZES))
    # bf16 MXU operands (f32 accumulation) -> relaxed tolerance vs. the
    # f32 HIGHEST-precision reference.
    np.testing.assert_allclose(np.asarray(out), np.asarray(ref),
                               rtol=3e-2, atol=3e-2)

    print("KERNEL_OK")
</pallas_src>

<mosaic_0001>
module attributes {stable_mosaic.version = 11 : i64} {
  func.func @_psp_fused_kernel(%arg0: i32, %arg1: memref<2x4x256xf32, #tpu.memory_space<vmem>>, %arg2: memref<256x50xbf16, #tpu.memory_space<vmem>>, %arg3: memref<128x4xbf16, #tpu.memory_space<vmem>>, %arg4: memref<128x50xf32, #tpu.memory_space<vmem>>, %arg5: memref<128x50xf32, #tpu.memory_space<vmem>>, %arg6: memref<50x256xbf16, #tpu.memory_space<vmem>>, %arg7: memref<288x128xbf16, #tpu.memory_space<vmem>>, %arg8: memref<288x4xbf16, #tpu.memory_space<vmem>>, %arg9: memref<9x1x256xf32, #tpu.memory_space<vmem>>, %arg10: memref<32x1xf32, #tpu.memory_space<vmem>>, %arg11: memref<32x1xf32, #tpu.memory_space<vmem>>, %arg12: memref<2x32x256xf32, #tpu.memory_space<vmem>>) attributes {dimension_semantics = [#tpu.dimension_semantics<parallel>], iteration_bounds = array<i64: 1>, scalar_prefetch = 0 : i64, scratch_operands = 0 : i64, tpu.core_type = #tpu.core_type<tc>, window_params = [{transform_indices = @transform_0, window_bounds = array<i64: 2, 4, 256>}, {pipeline_mode = #tpu.pipeline_mode<synchronous>, transform_indices = @transform_1, window_bounds = array<i64: 256, 50>}, {pipeline_mode = #tpu.pipeline_mode<synchronous>, transform_indices = @transform_2, window_bounds = array<i64: 128, 4>}, {pipeline_mode = #tpu.pipeline_mode<synchronous>, transform_indices = @transform_3, window_bounds = array<i64: 128, 50>}, {pipeline_mode = #tpu.pipeline_mode<synchronous>, transform_indices = @transform_4, window_bounds = array<i64: 128, 50>}, {pipeline_mode = #tpu.pipeline_mode<synchronous>, transform_indices = @transform_5, window_bounds = array<i64: 50, 256>}, {pipeline_mode = #tpu.pipeline_mode<synchronous>, transform_indices = @transform_6, window_bounds = array<i64: 288, 128>}, {pipeline_mode = #tpu.pipeline_mode<synchronous>, transform_indices = @transform_7, window_bounds = array<i64: 288, 4>}, {pipeline_mode = #tpu.pipeline_mode<synchronous>, transform_indices = @transform_8, window_bounds = array<i64: 9, 1, 256>}, {pipeline_mode = #tpu.pipeline_mode<synchronous>, transform_indices = @transform_9, window_bounds = array<i64: 32, 1>}, {pipeline_mode = #tpu.pipeline_mode<synchronous>, transform_indices = @transform_10, window_bounds = array<i64: 32, 1>}, {transform_indices = @transform_11, window_bounds = array<i64: 2, 32, 256>}]} {
    %c0 = arith.constant 0 : index
    %c0_0 = arith.constant 0 : index
    %c0_1 = arith.constant 0 : index
    %0 = vector.load %arg1[%c0, %c0_0, %c0_1] : memref<2x4x256xf32, #tpu.memory_space<vmem>>, vector<1x4x256xf32>
    %1 = vector.shape_cast %0 : vector<1x4x256xf32> to vector<4x256xf32>
    %2 = arith.truncf %1 : vector<4x256xf32> to vector<4x256xbf16>
    %c0_2 = arith.constant 0 : index
    %c0_3 = arith.constant 0 : index
    %3 = vector.load %arg2[%c0_2, %c0_3] : memref<256x50xbf16, #tpu.memory_space<vmem>>, vector<256x50xbf16>
    %cst = arith.constant dense<0.000000e+00> : vector<4x50xf32>
    %4 = tpu.matmul %2, %3, %cst {dimension_numbers = #tpu.dot_dimension_numbers<[1], [0], [0], [1], [0, 0, 1, 1], [], []>} : vector<4x256xbf16>, vector<256x50xbf16>, vector<4x50xf32> -> vector<4x50xf32>
    %c0_4 = arith.constant 0 : index
    %c0_5 = arith.constant 0 : index
    %5 = vector.load %arg3[%c0_4, %c0_5] : memref<128x4xbf16, #tpu.memory_space<vmem>>, vector<128x4xbf16>
    %6 = arith.truncf %4 : vector<4x50xf32> to vector<4x50xbf16>
    %cst_6 = arith.constant dense<0.000000e+00> : vector<128x50xf32>
    %7 = tpu.matmul %5, %6, %cst_6 {dimension_numbers = #tpu.dot_dimension_numbers<[1], [0], [0], [1], [0, 0, 1, 1], [], []>} : vector<128x4xbf16>, vector<4x50xbf16>, vector<128x50xf32> -> vector<128x50xf32>
    %c0_7 = arith.constant 0 : index
    %c0_8 = arith.constant 0 : index
    %8 = vector.load %arg4[%c0_7, %c0_8] : memref<128x50xf32, #tpu.memory_space<vmem>>, vector<128x50xf32>
    %9 = arith.mulf %7, %8 : vector<128x50xf32>
    %c0_9 = arith.constant 0 : index
    %c0_10 = arith.constant 0 : index
    %10 = vector.load %arg5[%c0_9, %c0_10] : memref<128x50xf32, #tpu.memory_space<vmem>>, vector<128x50xf32>
    %11 = arith.addf %9, %10 : vector<128x50xf32>
    %cst_11 = arith.constant 0.000000e+00 : f32
    %12 = vector.broadcast %cst_11 : f32 to vector<128x50xf32>
    %13 = arith.maximumf %11, %12 : vector<128x50xf32>
    %14 = arith.truncf %13 : vector<128x50xf32> to vector<128x50xbf16>
    %c0_12 = arith.constant 0 : index
    %c0_13 = arith.constant 0 : index
    %15 = vector.load %arg6[%c0_12, %c0_13] : memref<50x256xbf16, #tpu.memory_space<vmem>>, vector<50x256xbf16>
    %cst_14 = arith.constant dense<0.000000e+00> : vector<128x256xf32>
    %16 = tpu.matmul %14, %15, %cst_14 {dimension_numbers = #tpu.dot_dimension_numbers<[1], [0], [0], [1], [0, 0, 1, 1], [], []>} : vector<128x50xbf16>, vector<50x256xbf16>, vector<128x256xf32> -> vector<128x256xf32>
    %17 = arith.truncf %16 : vector<128x256xf32> to vector<128x256xbf16>
    %cst_15 = arith.constant 0.000000e+00 : f32
    %18 = vector.broadcast %cst_15 : f32 to vector<32x256xf32>
    %c0_16 = arith.constant 0 : index
    %c0_17 = arith.constant 0 : index
    %19 = vector.load %arg7[%c0_16, %c0_17] : memref<288x128xbf16, #tpu.memory_space<vmem>>, vector<96x128xbf16>
    %cst_18 = arith.constant dense<0.000000e+00> : vector<96x256xf32>
    %20 = tpu.matmul %19, %17, %cst_18 {dimension_numbers = #tpu.dot_dimension_numbers<[1], [0], [0], [1], [0, 0, 1, 1], [], []>} : vector<96x128xbf16>, vector<128x256xbf16>, vector<96x256xf32> -> vector<96x256xf32>
    %c0_19 = arith.constant 0 : index
    %c0_20 = arith.constant 0 : index
    %21 = vector.load %arg8[%c0_19, %c0_20] : memref<288x4xbf16, #tpu.memory_space<vmem>>, vector<96x4xbf16>
    %cst_21 = arith.constant dense<0.000000e+00> : vector<96x256xf32>
    %22 = tpu.matmul %21, %2, %cst_21 {dimension_numbers = #tpu.dot_dimension_numbers<[1], [0], [0], [1], [0, 0, 1, 1], [], []>} : vector<96x4xbf16>, vector<4x256xbf16>, vector<96x256xf32> -> vector<96x256xf32>
    %23 = arith.addf %20, %22 : vector<96x256xf32>
    %24 = vector.extract_strided_slice %23 {offsets = [0, 0], sizes = [32, 256], strides = [1, 1]} : vector<96x256xf32> to vector<32x256xf32>
    %c17_i32 = arith.constant 17 : i32
    %25 = tpu.dynamic_rotate %24 by %c17_i32 dim 1 : vector<32x256xf32>, i32 -> vector<32x256xf32>
    %c0_22 = arith.constant 0 : index
    %c0_23 = arith.constant 0 : index
    %c0_24 = arith.constant 0 : index
    %26 = vector.load %arg9[%c0_22, %c0_23, %c0_24] : memref<9x1x256xf32, #tpu.memory_space<vmem>>, vector<1x1x256xf32>
    %27 = vector.shape_cast %26 : vector<1x1x256xf32> to vector<1x256xf32>
    %28 = vector.broadcast %27 : vector<1x256xf32> to vector<32x256xf32>
    %29 = arith.mulf %25, %28 : vector<32x256xf32>
    %30 = arith.addf %18, %29 : vector<32x256xf32>
    %31 = vector.extract_strided_slice %23 {offsets = [32, 0], sizes = [32, 256], strides = [1, 1]} : vector<96x256xf32> to vector<32x256xf32>
    %c16_i32 = arith.constant 16 : i32
    %32 = tpu.dynamic_rotate %31 by %c16_i32 dim 1 : vector<32x256xf32>, i32 -> vector<32x256xf32>
    %c1 = arith.constant 1 : index
    %c0_25 = arith.constant 0 : index
    %c0_26 = arith.constant 0 : index
    %33 = vector.load %arg9[%c1, %c0_25, %c0_26] : memref<9x1x256xf32, #tpu.memory_space<vmem>>, vector<1x1x256xf32>
    %34 = vector.shape_cast %33 : vector<1x1x256xf32> to vector<1x256xf32>
    %35 = vector.broadcast %34 : vector<1x256xf32> to vector<32x256xf32>
    %36 = arith.mulf %32, %35 : vector<32x256xf32>
    %37 = arith.addf %30, %36 : vector<32x256xf32>
    %38 = vector.extract_strided_slice %23 {offsets = [64, 0], sizes = [32, 256], strides = [1, 1]} : vector<96x256xf32> to vector<32x256xf32>
    %c15_i32 = arith.constant 15 : i32
    %39 = tpu.dynamic_rotate %38 by %c15_i32 dim 1 : vector<32x256xf32>, i32 -> vector<32x256xf32>
    %c2 = arith.constant 2 : index
    %c0_27 = arith.constant 0 : index
    %c0_28 = arith.constant 0 : index
    %40 = vector.load %arg9[%c2, %c0_27, %c0_28] : memref<9x1x256xf32, #tpu.memory_space<vmem>>, vector<1x1x256xf32>
    %41 = vector.shape_cast %40 : vector<1x1x256xf32> to vector<1x256xf32>
    %42 = vector.broadcast %41 : vector<1x256xf32> to vector<32x256xf32>
    %43 = arith.mulf %39, %42 : vector<32x256xf32>
    %44 = arith.addf %37, %43 : vector<32x256xf32>
    %c96 = arith.constant 96 : index
    %c0_29 = arith.constant 0 : index
    %45 = vector.load %arg7[%c96, %c0_29] : memref<288x128xbf16, #tpu.memory_space<vmem>>, vector<96x128xbf16>
    %cst_30 = arith.constant dense<0.000000e+00> : vector<96x256xf32>
    %46 = tpu.matmul %45, %17, %cst_30 {dimension_numbers = #tpu.dot_dimension_numbers<[1], [0], [0], [1], [0, 0, 1, 1], [], []>} : vector<96x128xbf16>, vector<128x256xbf16>, vector<96x256xf32> -> vector<96x256xf32>
    %c96_31 = arith.constant 96 : index
    %c0_32 = arith.constant 0 : index
    %47 = vector.load %arg8[%c96_31, %c0_32] : memref<288x4xbf16, #tpu.memory_space<vmem>>, vector<96x4xbf16>
    %cst_33 = arith.constant dense<0.000000e+00> : vector<96x256xf32>
    %48 = tpu.matmul %47, %2, %cst_33 {dimension_numbers = #tpu.dot_dimension_numbers<[1], [0], [0], [1], [0, 0, 1, 1], [], []>} : vector<96x4xbf16>, vector<4x256xbf16>, vector<96x256xf32> -> vector<96x256xf32>
    %49 = arith.addf %46, %48 : vector<96x256xf32>
    %50 = vector.extract_strided_slice %49 {offsets = [0, 0], sizes = [32, 256], strides = [1, 1]} : vector<96x256xf32> to vector<32x256xf32>
    %c1_i32 = arith.constant 1 : i32
    %51 = tpu.dynamic_rotate %50 by %c1_i32 dim 1 : vector<32x256xf32>, i32 -> vector<32x256xf32>
    %c3 = arith.constant 3 : index
    %c0_34 = arith.constant 0 : index
    %c0_35 = arith.constant 0 : index
    %52 = vector.load %arg9[%c3, %c0_34, %c0_35] : memref<9x1x256xf32, #tpu.memory_space<vmem>>, vector<1x1x256xf32>
    %53 = vector.shape_cast %52 : vector<1x1x256xf32> to vector<1x256xf32>
    %54 = vector.broadcast %53 : vector<1x256xf32> to vector<32x256xf32>
    %55 = arith.mulf %51, %54 : vector<32x256xf32>
    %56 = arith.addf %44, %55 : vector<32x256xf32>
    %57 = vector.extract_strided_slice %49 {offsets = [32, 0], sizes = [32, 256], strides = [1, 1]} : vector<96x256xf32> to vector<32x256xf32>
    %c4 = arith.constant 4 : index
    %c0_36 = arith.constant 0 : index
    %c0_37 = arith.constant 0 : index
    %58 = vector.load %arg9[%c4, %c0_36, %c0_37] : memref<9x1x256xf32, #tpu.memory_space<vmem>>, vector<1x1x256xf32>
    %59 = vector.shape_cast %58 : vector<1x1x256xf32> to vector<1x256xf32>
    %60 = vector.broadcast %59 : vector<1x256xf32> to vector<32x256xf32>
    %61 = arith.mulf %57, %60 : vector<32x256xf32>
    %62 = arith.addf %56, %61 : vector<32x256xf32>
    %63 = vector.extract_strided_slice %49 {offsets = [64, 0], sizes = [32, 256], strides = [1, 1]} : vector<96x256xf32> to vector<32x256xf32>
    %c255_i32 = arith.constant 255 : i32
    %64 = tpu.dynamic_rotate %63 by %c255_i32 dim 1 : vector<32x256xf32>, i32 -> vector<32x256xf32>
    %c5 = arith.constant 5 : index
    %c0_38 = arith.constant 0 : index
    %c0_39 = arith.constant 0 : index
    %65 = vector.load %arg9[%c5, %c0_38, %c0_39] : memref<9x1x256xf32, #tpu.memory_space<vmem>>, vector<1x1x256xf32>
    %66 = vector.shape_cast %65 : vector<1x1x256xf32> to vector<1x256xf32>
    %67 = vector.broadcast %66 : vector<1x256xf32> to vector<32x256xf32>
    %68 = arith.mulf %64, %67 : vector<32x256xf32>
    %69 = arith.addf %62, %68 : vector<32x256xf32>
    %c192 = arith.constant 192 : index
    %c0_40 = arith.constant 0 : index
    %70 = vector.load %arg7[%c192, %c0_40] : memref<288x128xbf16, #tpu.memory_space<vmem>>, vector<96x128xbf16>
    %cst_41 = arith.constant dense<0.000000e+00> : vector<96x256xf32>
    %71 = tpu.matmul %70, %17, %cst_41 {dimension_numbers = #tpu.dot_dimension_numbers<[1], [0], [0], [1], [0, 0, 1, 1], [], []>} : vector<96x128xbf16>, vector<128x256xbf16>, vector<96x256xf32> -> vector<96x256xf32>
    %c192_42 = arith.constant 192 : index
    %c0_43 = arith.constant 0 : index
    %72 = vector.load %arg8[%c192_42, %c0_43] : memref<288x4xbf16, #tpu.memory_space<vmem>>, vector<96x4xbf16>
    %cst_44 = arith.constant dense<0.000000e+00> : vector<96x256xf32>
    %73 = tpu.matmul %72, %2, %cst_44 {dimension_numbers = #tpu.dot_dimension_numbers<[1], [0], [0], [1], [0, 0, 1, 1], [], []>} : vector<96x4xbf16>, vector<4x256xbf16>, vector<96x256xf32> -> vector<96x256xf32>
    %74 = arith.addf %71, %73 : vector<96x256xf32>
    %75 = vector.extract_strided_slice %74 {offsets = [0, 0], sizes = [32, 256], strides = [1, 1]} : vector<96x256xf32> to vector<32x256xf32>
    %c241_i32 = arith.constant 241 : i32
    %76 = tpu.dynamic_rotate %75 by %c241_i32 dim 1 : vector<32x256xf32>, i32 -> vector<32x256xf32>
    %c6 = arith.constant 6 : index
    %c0_45 = arith.constant 0 : index
    %c0_46 = arith.constant 0 : index
    %77 = vector.load %arg9[%c6, %c0_45, %c0_46] : memref<9x1x256xf32, #tpu.memory_space<vmem>>, vector<1x1x256xf32>
    %78 = vector.shape_cast %77 : vector<1x1x256xf32> to vector<1x256xf32>
    %79 = vector.broadcast %78 : vector<1x256xf32> to vector<32x256xf32>
    %80 = arith.mulf %76, %79 : vector<32x256xf32>
    %81 = arith.addf %69, %80 : vector<32x256xf32>
    %82 = vector.extract_strided_slice %74 {offsets = [32, 0], sizes = [32, 256], strides = [1, 1]} : vector<96x256xf32> to vector<32x256xf32>
    %c240_i32 = arith.constant 240 : i32
    %83 = tpu.dynamic_rotate %82 by %c240_i32 dim 1 : vector<32x256xf32>, i32 -> vector<32x256xf32>
    %c7 = arith.constant 7 : index
    %c0_47 = arith.constant 0 : index
    %c0_48 = arith.constant 0 : index
    %84 = vector.load %arg9[%c7, %c0_47, %c0_48] : memref<9x1x256xf32, #tpu.memory_space<vmem>>, vector<1x1x256xf32>
    %85 = vector.shape_cast %84 : vector<1x1x256xf32> to vector<1x256xf32>
    %86 = vector.broadcast %85 : vector<1x256xf32> to vector<32x256xf32>
    %87 = arith.mulf %83, %86 : vector<32x256xf32>
    %88 = arith.addf %81, %87 : vector<32x256xf32>
    %89 = vector.extract_strided_slice %74 {offsets = [64, 0], sizes = [32, 256], strides = [1, 1]} : vector<96x256xf32> to vector<32x256xf32>
    %c239_i32 = arith.constant 239 : i32
    %90 = tpu.dynamic_rotate %89 by %c239_i32 dim 1 : vector<32x256xf32>, i32 -> vector<32x256xf32>
    %c8 = arith.constant 8 : index
    %c0_49 = arith.constant 0 : index
    %c0_50 = arith.constant 0 : index
    %91 = vector.load %arg9[%c8, %c0_49, %c0_50] : memref<9x1x256xf32, #tpu.memory_space<vmem>>, vector<1x1x256xf32>
    %92 = vector.shape_cast %91 : vector<1x1x256xf32> to vector<1x256xf32>
    %93 = vector.broadcast %92 : vector<1x256xf32> to vector<32x256xf32>
    %94 = arith.mulf %90, %93 : vector<32x256xf32>
    %95 = arith.addf %88, %94 : vector<32x256xf32>
    %c0_51 = arith.constant 0 : index
    %c0_52 = arith.constant 0 : index
    %96 = vector.load %arg10[%c0_51, %c0_52] : memref<32x1xf32, #tpu.memory_space<vmem>>, vector<32x1xf32>
    %97 = vector.broadcast %96 : vector<32x1xf32> to vector<32x256xf32>
    %98 = arith.mulf %95, %97 : vector<32x256xf32>
    %c0_53 = arith.constant 0 : index
    %c0_54 = arith.constant 0 : index
    %99 = vector.load %arg11[%c0_53, %c0_54] : memref<32x1xf32, #tpu.memory_space<vmem>>, vector<32x1xf32>
    %100 = vector.broadcast %99 : vector<32x1xf32> to vector<32x256xf32>
    %101 = arith.addf %98, %100 : vector<32x256xf32>
    %cst_55 = arith.constant 0.000000e+00 : f32
    %102 = vector.broadcast %cst_55 : f32 to vector<32x256xf32>
    %103 = arith.maximumf %101, %102 : vector<32x256xf32>
    %c0_56 = arith.constant 0 : index
    %c0_57 = arith.constant 0 : index
    %c0_58 = arith.constant 0 : index
    %104 = vector.load %arg12[%c0_56, %c0_57, %c0_58] : memref<2x32x256xf32, #tpu.memory_space<vmem>>, vector<1x32x256xf32>
    %105 = vector.shape_cast %104 : vector<1x32x256xf32> to vector<32x256xf32>
    %106 = vector.shape_cast %103 : vector<32x256xf32> to vector<1x32x256xf32>
    tpu.vector_store %arg12[%c0_56, %c0_57, %c0_58], %106 {strides = array<i32>} : memref<2x32x256xf32, #tpu.memory_space<vmem>>, vector<1x32x256xf32>,
    %c1_59 = arith.constant 1 : index
    %c0_60 = arith.constant 0 : index
    %c0_61 = arith.constant 0 : index
    %107 = vector.load %arg1[%c1_59, %c0_60, %c0_61] : memref<2x4x256xf32, #tpu.memory_space<vmem>>, vector<1x4x256xf32>
    %108 = vector.shape_cast %107 : vector<1x4x256xf32> to vector<4x256xf32>
    %109 = arith.truncf %108 : vector<4x256xf32> to vector<4x256xbf16>
    %c0_62 = arith.constant 0 : index
    %c0_63 = arith.constant 0 : index
    %110 = vector.load %arg2[%c0_62, %c0_63] : memref<256x50xbf16, #tpu.memory_space<vmem>>, vector<256x50xbf16>
    %cst_64 = arith.constant dense<0.000000e+00> : vector<4x50xf32>
    %111 = tpu.matmul %109, %110, %cst_64 {dimension_numbers = #tpu.dot_dimension_numbers<[1], [0], [0], [1], [0, 0, 1, 1], [], []>} : vector<4x256xbf16>, vector<256x50xbf16>, vector<4x50xf32> -> vector<4x50xf32>
    %c0_65 = arith.constant 0 : index
    %c0_66 = arith.constant 0 : index
    %112 = vector.load %arg3[%c0_65, %c0_66] : memref<128x4xbf16, #tpu.memory_space<vmem>>, vector<128x4xbf16>
    %113 = arith.truncf %111 : vector<4x50xf32> to vector<4x50xbf16>
    %cst_67 = arith.constant dense<0.000000e+00> : vector<128x50xf32>
    %114 = tpu.matmul %112, %113, %cst_67 {dimension_numbers = #tpu.dot_dimension_numbers<[1], [0], [0], [1], [0, 0, 1, 1], [], []>} : vector<128x4xbf16>, vector<4x50xbf16>, vector<128x50xf32> -> vector<128x50xf32>
    %c0_68 = arith.constant 0 : index
    %c0_69 = arith.constant 0 : index
    %115 = vector.load %arg4[%c0_68, %c0_69] : memref<128x50xf32, #tpu.memory_space<vmem>>, vector<128x50xf32>
    %116 = arith.mulf %114, %115 : vector<128x50xf32>
    %c0_70 = arith.constant 0 : index
    %c0_71 = arith.constant 0 : index
    %117 = vector.load %arg5[%c0_70, %c0_71] : memref<128x50xf32, #tpu.memory_space<vmem>>, vector<128x50xf32>
    %118 = arith.addf %116, %117 : vector<128x50xf32>
    %cst_72 = arith.constant 0.000000e+00 : f32
    %119 = vector.broadcast %cst_72 : f32 to vector<128x50xf32>
    %120 = arith.maximumf %118, %119 : vector<128x50xf32>
    %121 = arith.truncf %120 : vector<128x50xf32> to vector<128x50xbf16>
    %c0_73 = arith.constant 0 : index
    %c0_74 = arith.constant 0 : index
    %122 = vector.load %arg6[%c0_73, %c0_74] : memref<50x256xbf16, #tpu.memory_space<vmem>>, vector<50x256xbf16>
    %cst_75 = arith.constant dense<0.000000e+00> : vector<128x256xf32>
    %123 = tpu.matmul %121, %122, %cst_75 {dimension_numbers = #tpu.dot_dimension_numbers<[1], [0], [0], [1], [0, 0, 1, 1], [], []>} : vector<128x50xbf16>, vector<50x256xbf16>, vector<128x256xf32> -> vector<128x256xf32>
    %124 = arith.truncf %123 : vector<128x256xf32> to vector<128x256xbf16>
    %cst_76 = arith.constant 0.000000e+00 : f32
    %125 = vector.broadcast %cst_76 : f32 to vector<32x256xf32>
    %c0_77 = arith.constant 0 : index
    %c0_78 = arith.constant 0 : index
    %126 = vector.load %arg7[%c0_77, %c0_78] : memref<288x128xbf16, #tpu.memory_space<vmem>>, vector<96x128xbf16>
    %cst_79 = arith.constant dense<0.000000e+00> : vector<96x256xf32>
    %127 = tpu.matmul %126, %124, %cst_79 {dimension_numbers = #tpu.dot_dimension_numbers<[1], [0], [0], [1], [0, 0, 1, 1], [], []>} : vector<96x128xbf16>, vector<128x256xbf16>, vector<96x256xf32> -> vector<96x256xf32>
    %c0_80 = arith.constant 0 : index
    %c0_81 = arith.constant 0 : index
    %128 = vector.load %arg8[%c0_80, %c0_81] : memref<288x4xbf16, #tpu.memory_space<vmem>>, vector<96x4xbf16>
    %cst_82 = arith.constant dense<0.000000e+00> : vector<96x256xf32>
    %129 = tpu.matmul %128, %109, %cst_82 {dimension_numbers = #tpu.dot_dimension_numbers<[1], [0], [0], [1], [0, 0, 1, 1], [], []>} : vector<96x4xbf16>, vector<4x256xbf16>, vector<96x256xf32> -> vector<96x256xf32>
    %130 = arith.addf %127, %129 : vector<96x256xf32>
    %131 = vector.extract_strided_slice %130 {offsets = [0, 0], sizes = [32, 256], strides = [1, 1]} : vector<96x256xf32> to vector<32x256xf32>
    %c17_i32_83 = arith.constant 17 : i32
    %132 = tpu.dynamic_rotate %131 by %c17_i32_83 dim 1 : vector<32x256xf32>, i32 -> vector<32x256xf32>
    %c0_84 = arith.constant 0 : index
    %c0_85 = arith.constant 0 : index
    %c0_86 = arith.constant 0 : index
    %133 = vector.load %arg9[%c0_84, %c0_85, %c0_86] : memref<9x1x256xf32, #tpu.memory_space<vmem>>, vector<1x1x256xf32>
    %134 = vector.shape_cast %133 : vector<1x1x256xf32> to vector<1x256xf32>
    %135 = vector.broadcast %134 : vector<1x256xf32> to vector<32x256xf32>
    %136 = arith.mulf %132, %135 : vector<32x256xf32>
    %137 = arith.addf %125, %136 : vector<32x256xf32>
    %138 = vector.extract_strided_slice %130 {offsets = [32, 0], sizes = [32, 256], strides = [1, 1]} : vector<96x256xf32> to vector<32x256xf32>
    %c16_i32_87 = arith.constant 16 : i32
    %139 = tpu.dynamic_rotate %138 by %c16_i32_87 dim 1 : vector<32x256xf32>, i32 -> vector<32x256xf32>
    %c1_88 = arith.constant 1 : index
    %c0_89 = arith.constant 0 : index
    %c0_90 = arith.constant 0 : index
    %140 = vector.load %arg9[%c1_88, %c0_89, %c0_90] : memref<9x1x256xf32, #tpu.memory_space<vmem>>, vector<1x1x256xf32>
    %141 = vector.shape_cast %140 : vector<1x1x256xf32> to vector<1x256xf32>
    %142 = vector.broadcast %141 : vector<1x256xf32> to vector<32x256xf32>
    %143 = arith.mulf %139, %142 : vector<32x256xf32>
    %144 = arith.addf %137, %143 : vector<32x256xf32>
    %145 = vector.extract_strided_slice %130 {offsets = [64, 0], sizes = [32, 256], strides = [1, 1]} : vector<96x256xf32> to vector<32x256xf32>
    %c15_i32_91 = arith.constant 15 : i32
    %146 = tpu.dynamic_rotate %145 by %c15_i32_91 dim 1 : vector<32x256xf32>, i32 -> vector<32x256xf32>
    %c2_92 = arith.constant 2 : index
    %c0_93 = arith.constant 0 : index
    %c0_94 = arith.constant 0 : index
    %147 = vector.load %arg9[%c2_92, %c0_93, %c0_94] : memref<9x1x256xf32, #tpu.memory_space<vmem>>, vector<1x1x256xf32>
    %148 = vector.shape_cast %147 : vector<1x1x256xf32> to vector<1x256xf32>
    %149 = vector.broadcast %148 : vector<1x256xf32> to vector<32x256xf32>
    %150 = arith.mulf %146, %149 : vector<32x256xf32>
    %151 = arith.addf %144, %150 : vector<32x256xf32>
    %c96_95 = arith.constant 96 : index
    %c0_96 = arith.constant 0 : index
    %152 = vector.load %arg7[%c96_95, %c0_96] : memref<288x128xbf16, #tpu.memory_space<vmem>>, vector<96x128xbf16>
    %cst_97 = arith.constant dense<0.000000e+00> : vector<96x256xf32>
    %153 = tpu.matmul %152, %124, %cst_97 {dimension_numbers = #tpu.dot_dimension_numbers<[1], [0], [0], [1], [0, 0, 1, 1], [], []>} : vector<96x128xbf16>, vector<128x256xbf16>, vector<96x256xf32> -> vector<96x256xf32>
    %c96_98 = arith.constant 96 : index
    %c0_99 = arith.constant 0 : index
    %154 = vector.load %arg8[%c96_98, %c0_99] : memref<288x4xbf16, #tpu.memory_space<vmem>>, vector<96x4xbf16>
    %cst_100 = arith.constant dense<0.000000e+00> : vector<96x256xf32>
    %155 = tpu.matmul %154, %109, %cst_100 {dimension_numbers = #tpu.dot_dimension_numbers<[1], [0], [0], [1], [0, 0, 1, 1], [], []>} : vector<96x4xbf16>, vector<4x256xbf16>, vector<96x256xf32> -> vector<96x256xf32>
    %156 = arith.addf %153, %155 : vector<96x256xf32>
    %157 = vector.extract_strided_slice %156 {offsets = [0, 0], sizes = [32, 256], strides = [1, 1]} : vector<96x256xf32> to vector<32x256xf32>
    %c1_i32_101 = arith.constant 1 : i32
    %158 = tpu.dynamic_rotate %157 by %c1_i32_101 dim 1 : vector<32x256xf32>, i32 -> vector<32x256xf32>
    %c3_102 = arith.constant 3 : index
    %c0_103 = arith.constant 0 : index
    %c0_104 = arith.constant 0 : index
    %159 = vector.load %arg9[%c3_102, %c0_103, %c0_104] : memref<9x1x256xf32, #tpu.memory_space<vmem>>, vector<1x1x256xf32>
    %160 = vector.shape_cast %159 : vector<1x1x256xf32> to vector<1x256xf32>
    %161 = vector.broadcast %160 : vector<1x256xf32> to vector<32x256xf32>
    %162 = arith.mulf %158, %161 : vector<32x256xf32>
    %163 = arith.addf %151, %162 : vector<32x256xf32>
    %164 = vector.extract_strided_slice %156 {offsets = [32, 0], sizes = [32, 256], strides = [1, 1]} : vector<96x256xf32> to vector<32x256xf32>
    %c4_105 = arith.constant 4 : index
    %c0_106 = arith.constant 0 : index
    %c0_107 = arith.constant 0 : index
    %165 = vector.load %arg9[%c4_105, %c0_106, %c0_107] : memref<9x1x256xf32, #tpu.memory_space<vmem>>, vector<1x1x256xf32>
    %166 = vector.shape_cast %165 : vector<1x1x256xf32> to vector<1x256xf32>
    %167 = vector.broadcast %166 : vector<1x256xf32> to vector<32x256xf32>
    %168 = arith.mulf %164, %167 : vector<32x256xf32>
    %169 = arith.addf %163, %168 : vector<32x256xf32>
    %170 = vector.extract_strided_slice %156 {offsets = [64, 0], sizes = [32, 256], strides = [1, 1]} : vector<96x256xf32> to vector<32x256xf32>
    %c255_i32_108 = arith.constant 255 : i32
    %171 = tpu.dynamic_rotate %170 by %c255_i32_108 dim 1 : vector<32x256xf32>, i32 -> vector<32x256xf32>
    %c5_109 = arith.constant 5 : index
    %c0_110 = arith.constant 0 : index
    %c0_111 = arith.constant 0 : index
    %172 = vector.load %arg9[%c5_109, %c0_110, %c0_111] : memref<9x1x256xf32, #tpu.memory_space<vmem>>, vector<1x1x256xf32>
    %173 = vector.shape_cast %172 : vector<1x1x256xf32> to vector<1x256xf32>
    %174 = vector.broadcast %173 : vector<1x256xf32> to vector<32x256xf32>
    %175 = arith.mulf %171, %174 : vector<32x256xf32>
    %176 = arith.addf %169, %175 : vector<32x256xf32>
    %c192_112 = arith.constant 192 : index
    %c0_113 = arith.constant 0 : index
    %177 = vector.load %arg7[%c192_112, %c0_113] : memref<288x128xbf16, #tpu.memory_space<vmem>>, vector<96x128xbf16>
    %cst_114 = arith.constant dense<0.000000e+00> : vector<96x256xf32>
    %178 = tpu.matmul %177, %124, %cst_114 {dimension_numbers = #tpu.dot_dimension_numbers<[1], [0], [0], [1], [0, 0, 1, 1], [], []>} : vector<96x128xbf16>, vector<128x256xbf16>, vector<96x256xf32> -> vector<96x256xf32>
    %c192_115 = arith.constant 192 : index
    %c0_116 = arith.constant 0 : index
    %179 = vector.load %arg8[%c192_115, %c0_116] : memref<288x4xbf16, #tpu.memory_space<vmem>>, vector<96x4xbf16>
    %cst_117 = arith.constant dense<0.000000e+00> : vector<96x256xf32>
    %180 = tpu.matmul %179, %109, %cst_117 {dimension_numbers = #tpu.dot_dimension_numbers<[1], [0], [0], [1], [0, 0, 1, 1], [], []>} : vector<96x4xbf16>, vector<4x256xbf16>, vector<96x256xf32> -> vector<96x256xf32>
    %181 = arith.addf %178, %180 : vector<96x256xf32>
    %182 = vector.extract_strided_slice %181 {offsets = [0, 0], sizes = [32, 256], strides = [1, 1]} : vector<96x256xf32> to vector<32x256xf32>
    %c241_i32_118 = arith.constant 241 : i32
    %183 = tpu.dynamic_rotate %182 by %c241_i32_118 dim 1 : vector<32x256xf32>, i32 -> vector<32x256xf32>
    %c6_119 = arith.constant 6 : index
    %c0_120 = arith.constant 0 : index
    %c0_121 = arith.constant 0 : index
    %184 = vector.load %arg9[%c6_119, %c0_120, %c0_121] : memref<9x1x256xf32, #tpu.memory_space<vmem>>, vector<1x1x256xf32>
    %185 = vector.shape_cast %184 : vector<1x1x256xf32> to vector<1x256xf32>
    %186 = vector.broadcast %185 : vector<1x256xf32> to vector<32x256xf32>
    %187 = arith.mulf %183, %186 : vector<32x256xf32>
    %188 = arith.addf %176, %187 : vector<32x256xf32>
    %189 = vector.extract_strided_slice %181 {offsets = [32, 0], sizes = [32, 256], strides = [1, 1]} : vector<96x256xf32> to vector<32x256xf32>
    %c240_i32_122 = arith.constant 240 : i32
    %190 = tpu.dynamic_rotate %189 by %c240_i32_122 dim 1 : vector<32x256xf32>, i32 -> vector<32x256xf32>
    %c7_123 = arith.constant 7 : index
    %c0_124 = arith.constant 0 : index
    %c0_125 = arith.constant 0 : index
    %191 = vector.load %arg9[%c7_123, %c0_124, %c0_125] : memref<9x1x256xf32, #tpu.memory_space<vmem>>, vector<1x1x256xf32>
    %192 = vector.shape_cast %191 : vector<1x1x256xf32> to vector<1x256xf32>
    %193 = vector.broadcast %192 : vector<1x256xf32> to vector<32x256xf32>
    %194 = arith.mulf %190, %193 : vector<32x256xf32>
    %195 = arith.addf %188, %194 : vector<32x256xf32>
    %196 = vector.extract_strided_slice %181 {offsets = [64, 0], sizes = [32, 256], strides = [1, 1]} : vector<96x256xf32> to vector<32x256xf32>
    %c239_i32_126 = arith.constant 239 : i32
    %197 = tpu.dynamic_rotate %196 by %c239_i32_126 dim 1 : vector<32x256xf32>, i32 -> vector<32x256xf32>
    %c8_127 = arith.constant 8 : index
    %c0_128 = arith.constant 0 : index
    %c0_129 = arith.constant 0 : index
    %198 = vector.load %arg9[%c8_127, %c0_128, %c0_129] : memref<9x1x256xf32, #tpu.memory_space<vmem>>, vector<1x1x256xf32>
    %199 = vector.shape_cast %198 : vector<1x1x256xf32> to vector<1x256xf32>
    %200 = vector.broadcast %199 : vector<1x256xf32> to vector<32x256xf32>
    %201 = arith.mulf %197, %200 : vector<32x256xf32>
    %202 = arith.addf %195, %201 : vector<32x256xf32>
    %c0_130 = arith.constant 0 : index
    %c0_131 = arith.constant 0 : index
    %203 = vector.load %arg10[%c0_130, %c0_131] : memref<32x1xf32, #tpu.memory_space<vmem>>, vector<32x1xf32>
    %204 = vector.broadcast %203 : vector<32x1xf32> to vector<32x256xf32>
    %205 = arith.mulf %202, %204 : vector<32x256xf32>
    %c0_132 = arith.constant 0 : index
    %c0_133 = arith.constant 0 : index
    %206 = vector.load %arg11[%c0_132, %c0_133] : memref<32x1xf32, #tpu.memory_space<vmem>>, vector<32x1xf32>
    %207 = vector.broadcast %206 : vector<32x1xf32> to vector<32x256xf32>
    %208 = arith.addf %205, %207 : vector<32x256xf32>
    %cst_134 = arith.constant 0.000000e+00 : f32
    %209 = vector.broadcast %cst_134 : f32 to vector<32x256xf32>
    %210 = arith.maximumf %208, %209 : vector<32x256xf32>
    %c1_135 = arith.constant 1 : index
    %c0_136 = arith.constant 0 : index
    %c0_137 = arith.constant 0 : index
    %211 = vector.load %arg12[%c1_135, %c0_136, %c0_137] : memref<2x32x256xf32, #tpu.memory_space<vmem>>, vector<1x32x256xf32>
    %212 = vector.shape_cast %211 : vector<1x32x256xf32> to vector<32x256xf32>
    %213 = vector.shape_cast %210 : vector<32x256xf32> to vector<1x32x256xf32>
    tpu.vector_store %arg12[%c1_135, %c0_136, %c0_137], %213 {strides = array<i32>} : memref<2x32x256xf32, #tpu.memory_space<vmem>>, vector<1x32x256xf32>,
    return
  }
  func.func @transform_0(%arg0: i32) -> (i32, i32, i32) {
    %c0_i32 = arith.constant 0 : i32
    %c0_i32_0 = arith.constant 0 : i32
    %c0_i32_1 = arith.constant 0 : i32
    return %arg0, %c0_i32, %c0_i32_0 : i32, i32, i32
  }
  func.func @transform_1(%arg0: i32) -> (i32, i32) {
    %c0_i32 = arith.constant 0 : i32
    %c0_i32_0 = arith.constant 0 : i32
    %c0_i32_1 = arith.constant 0 : i32
    return %c0_i32, %c0_i32_0 : i32, i32
  }
  func.func @transform_2(%arg0: i32) -> (i32, i32) {
    %c0_i32 = arith.constant 0 : i32
    %c0_i32_0 = arith.constant 0 : i32
    %c0_i32_1 = arith.constant 0 : i32
    return %c0_i32, %c0_i32_0 : i32, i32
  }
  func.func @transform_3(%arg0: i32) -> (i32, i32) {
    %c0_i32 = arith.constant 0 : i32
    %c0_i32_0 = arith.constant 0 : i32
    %c0_i32_1 = arith.constant 0 : i32
    return %c0_i32, %c0_i32_0 : i32, i32
  }
  func.func @transform_4(%arg0: i32) -> (i32, i32) {
    %c0_i32 = arith.constant 0 : i32
    %c0_i32_0 = arith.constant 0 : i32
    %c0_i32_1 = arith.constant 0 : i32
    return %c0_i32, %c0_i32_0 : i32, i32
  }
  func.func @transform_5(%arg0: i32) -> (i32, i32) {
    %c0_i32 = arith.constant 0 : i32
    %c0_i32_0 = arith.constant 0 : i32
    %c0_i32_1 = arith.constant 0 : i32
    return %c0_i32, %c0_i32_0 : i32, i32
  }
  func.func @transform_6(%arg0: i32) -> (i32, i32) {
    %c0_i32 = arith.constant 0 : i32
    %c0_i32_0 = arith.constant 0 : i32
    %c0_i32_1 = arith.constant 0 : i32
    return %c0_i32, %c0_i32_0 : i32, i32
  }
  func.func @transform_7(%arg0: i32) -> (i32, i32) {
    %c0_i32 = arith.constant 0 : i32
    %c0_i32_0 = arith.constant 0 : i32
    %c0_i32_1 = arith.constant 0 : i32
    return %c0_i32, %c0_i32_0 : i32, i32
  }
  func.func @transform_8(%arg0: i32) -> (i32, i32, i32) {
    %c0_i32 = arith.constant 0 : i32
    %c0_i32_0 = arith.constant 0 : i32
    %c0_i32_1 = arith.constant 0 : i32
    %c0_i32_2 = arith.constant 0 : i32
    return %c0_i32, %c0_i32_0, %c0_i32_1 : i32, i32, i32
  }
  func.func @transform_9(%arg0: i32) -> (i32, i32) {
    %c0_i32 = arith.constant 0 : i32
    %c0_i32_0 = arith.constant 0 : i32
    %c0_i32_1 = arith.constant 0 : i32
    return %c0_i32, %c0_i32_0 : i32, i32
  }
  func.func @transform_10(%arg0: i32) -> (i32, i32) {
    %c0_i32 = arith.constant 0 : i32
    %c0_i32_0 = arith.constant 0 : i32
    %c0_i32_1 = arith.constant 0 : i32
    return %c0_i32, %c0_i32_0 : i32, i32
  }
  func.func @transform_11(%arg0: i32) -> (i32, i32, i32) {
    %c0_i32 = arith.constant 0 : i32
    %c0_i32_0 = arith.constant 0 : i32
    %c0_i32_1 = arith.constant 0 : i32
    return %arg0, %c0_i32, %c0_i32_0 : i32, i32, i32
  }
}

</mosaic_0001>

<bundles_post_ra>
// kernel: tpu_custom_call.1
= control target key start
LH: loop header
LB: loop body
LE: loop exit
PB: predicated region body
PF: predicated region fallthrough
CT: control target
= control target key end

     0   :  { %s7002_s0 = inlined_call_operand.vmem [shape: f32[2,4,256], index: 0, kind: input, shape index: {}]   ;;  %s7003_s1 = inlined_call_operand.vmem [shape: bf16[256,50], index: 1, kind: input, shape index: {}]   ;;  %s7004_s2 = inlined_call_operand.vmem [shape: bf16[128,4], index: 2, kind: input, shape index: {}]   ;;  %s7005_s3 = inlined_call_operand.vmem [shape: f32[128,50], index: 3, kind: input, shape index: {}]   ;;  %s7006_s4 = inlined_call_operand.vmem [shape: f32[128,50], index: 4, kind: input, shape index: {}]   ;;  %s7007_s5 = inlined_call_operand.vmem [shape: bf16[50,256], index: 5, kind: input, shape index: {}]   ;;  %s7008_s6 = inlined_call_operand.vmem [shape: bf16[288,128], index: 6, kind: input, shape index: {}]   ;;  %s7009_s7 = inlined_call_operand.vmem [shape: bf16[288,4], index: 7, kind: input, shape index: {}]   ;;  %s7010_s8 = inlined_call_operand.vmem [shape: f32[9,1,256], index: 8, kind: input, shape index: {}]   ;;  %s7011_s9 = inlined_call_operand.vmem [shape: f32[32,1], index: 9, kind: input, shape index: {}]   ;;  %s7012_s10 = inlined_call_operand.vmem [shape: f32[32,1], index: 10, kind: input, shape index: {}]   ;;  %s7013_s11 = inlined_call_operand.hbm [shape: f32[2,32,256], index: 11, kind: output, shape index: {}]  }
   0x1   :  { %v4681_v0 = vld [vmem:[%s7003_s1 + $0x40] sm:$0xff]   ;;  %v4683_v2 = vld [vmem:[%s7003_s1 + $0x48] sm:$0xff]   ;;  %v4685_v4 = vld [vmem:[%s7003_s1 + $0x50] sm:$0xff]  }
   0x2   :  { %v4682_v1 = vld [vmem:[%s7003_s1] sm:$0xff]   ;;  %4421 = vmatprep.subr.bf16.mxu0 %v4681_v0  ;;  %v4684_v3 = vld [vmem:[%s7003_s1 + $0x8] sm:$0xff]   ;;  %v4686_v5 = vld [vmem:[%s7003_s1 + $0x10] sm:$0xff]  }
   0x3   :  { %4422 = vmatpush3.bf16.msra.mxu0 %v4682_v1  ;;  %v4687_v6 = vld [vmem:[%s7003_s1 + $0x58] sm:$0xff]   ;;  %v4689_v8 = vld [vmem:[%s7003_s1 + $0x60] sm:$0xff]   ;;  %v4691_v10 = vld [vmem:[%s7003_s1 + $0x68] sm:$0xff]  }
   0x4   :  { %4423 = vmatprep.subr.bf16.mxu0 %v4683_v2  ;;  %v4688_v7 = vld [vmem:[%s7003_s1 + $0x18] sm:$0xff]   ;;  %v4690_v9 = vld [vmem:[%s7003_s1 + $0x20] sm:$0xff]   ;;  %v4692_v12 = vld [vmem:[%s7003_s1 + $0x28] sm:$0xff]  }
   0x5   :  { %v40_v11 = vld [vmem:[%s7002_s0] sm:$0xff]  ;;  %v4693_v14 = vld [vmem:[%s7003_s1 + $0x70] sm:$0xff]   ;;  %v4695_v17 = vld [vmem:[%s7003_s1 + $0x78] sm:$0xff]  }
   0x6   :  { %v42_v13 = vcombine.high %v40_v11, %v40_v11  ;;  %v4694_v16 = vld [vmem:[%s7003_s1 + $0x30] sm:$0xff]   ;;  %v4696_v18 = vld [vmem:[%s7003_s1 + $0x38] sm:$0xff]   ;;  %v44_v19 = vpack.c.bf16 %v40_v11, %v40_v11 }
   0x7   :  { %4424 = vmatpush3.bf16.msra.mxu0 %v4684_v3 }
   0x8   :  { %4425 = vmatprep.subr.bf16.mxu0 %v4685_v4  ;;  %v4962_v15 = vpack.c.bf16 %v42_v13, %v42_v13 }
   0xa   :  { %206 = vmatprep.mubr.bf16.mxu0 %v4962_v15 }
   0xb   :  { %4426 = vmatpush3.bf16.msra.mxu0 %v4686_v5 }
   0xc   :  { %4427 = vmatprep.subr.bf16.mxu0 %v4687_v6 }
   0xf   :  { %4428 = vmatpush3.bf16.msra.mxu0 %v4688_v7 }
  0x10   :  { %4429 = vmatprep.subr.bf16.mxu0 %v4689_v8 }
  0x13   :  { %4430 = vmatpush3.bf16.msra.mxu0 %v4690_v9 }
  0x14   :  { %4431 = vmatprep.subr.bf16.mxu0 %v4691_v10 }
  0x17   :  { %4432 = vmatpush3.bf16.msra.mxu0 %v4692_v12 }
  0x18   :  { %4433 = vmatprep.subr.bf16.mxu0 %v4693_v14 }
  0x1b   :  { %4434 = vmatpush3.bf16.msra.mxu0 %v4694_v16 }
  0x1c   :  { %4435 = vmatprep.subr.bf16.mxu0 %v4695_v17 }
  0x1f   :  { %4436 = vmatpush3.bf16.msra.mxu0 %v4696_v18 }
  0x22   :  { %207 = vmatmul.mubr.bf16.vlgmr.msra.gmra.mrb[0].mxu0 %v44_v19 }
  0x23   :  { %16 = vsyncpa [#allocation3], 0  ;;  %v4698_v20 = vld [vmem:[%s7004_s2] sm:$0xff]   ;;  %vm271_vm0 = vcmask 31744   ;;  %vm296_vm1 = vcmask 1041408   ;;  %v4699_v30 = vld [vmem:[%s7004_s2 + $0x8] sm:$0xff]  }
  0x24   :  { %4485 = vmatprep.mubr.msk.bf16.mxu0 %vm271_vm0, %v4698_v20  ;;  %v4702_v21 = vld [vmem:[%s7004_s2 + $0x20] sm:$0xff]   ;;  %v4703_v31 = vld [vmem:[%s7004_s2 + $0x28] sm:$0xff]   ;;  %v4700_v32 = vld [vmem:[%s7004_s2 + $0x10] sm:$0xff]   ;;  %vm552_vm2 = vcmask 1040384   ;;  %v7014_v45 = vmov 0   ;;  %v5041_v46 = vsel %vm296_vm1, %v44_v19, 0 }
  0x25   :  { %4493 = vmatprep.mubr.msk.bf16.mxu1 %vm271_vm0, %v4702_v21  ;;  %v4708_v28 = vld [vmem:[%s7007_s5 + $0x4] ss:$8 sps:$4 sm:$0xff]   ;;  %v4704_v33 = vld [vmem:[%s7004_s2 + $0x30] sm:$0xff]   ;;  %v4706_v34 = vld [vmem:[%s7007_s5] ss:$8 sps:$4 sm:$0xff]   ;;  %4679 = vset.pattern.permute.xlu0 %v7014_v45  ;;  %vm527_vm3 = vcmask 408576  }
  0x26   :  { %v4701_v35 = vld [vmem:[%s7004_s2 + $0x18] sm:$0xff]   ;;  %v4714_v39 = vld [vmem:[%s7007_s5 + $0x24] ss:$8 sps:$4 sm:$0xff]   ;;  %v4712_v40 = vld [vmem:[%s7007_s5 + $0x20] ss:$8 sps:$4 sm:$0xff]   ;;  %4680 = vset.pattern.permute.xlu1 %v7014_v45  ;;  %s4850_s15 = smov 17  }
  0x27   :  { %v4705_v36 = vld [vmem:[%s7004_s2 + $0x38] sm:$0xff]   ;;  %v491_v41 = vld [vmem:[%s7007_s5 + $0x30] sm:$0x11]  ;;  %v397_v50 = vld [vmem:[%s7005_s3] sm:$0xff]  ;;  %s4851_s16 = smov 1   ;;  %s4852_s17 = smov 16  }
  0x28   :  { %v4711_v37 = vld [vmem:[%s7007_s5 + $0x14] ss:$8 sps:$4 sm:$0xff]   ;;  %v4709_v38 = vld [vmem:[%s7007_s5 + $0x10] ss:$8 sps:$4 sm:$0xff]   ;;  %v4231_v42 = vcombine.high %v491_v41, %v491_v41  ;;  %v4230_v43 = vcombine.low %v491_v41, %v491_v41  ;;  %v405_v52 = vld [vmem:[%s7005_s3 + $0x40] sm:$0xff]  ;;  %s4853_s18 = smov 15  }
  0x29   :  { %v399_v47 = vld [vmem:[%s7005_s3 + $0x10] sm:$0xff]  ;;  %v400_v51 = vld [vmem:[%s7005_s3 + $0x18] sm:$0xff]  ;;  %v429_v54 = vld [vmem:[%s7006_s4] sm:$0xff]  ;;  %s4854_s19 = smov 127   ;;  %s4856_s21 = smov 112  }
  0x2a   :  { %v554_v44 = vsel %vm552_vm2, %v4230_v43, 0  ;;  %v431_v48 = vld [vmem:[%s7006_s4 + $0x10] sm:$0xff]  ;;  %v408_v57 = vld [vmem:[%s7005_s3 + $0x58] sm:$0xff]  ;;  %v398_v60 = vld [vmem:[%s7005_s3 + $0x8] sm:$0xff]  ;;  %s4857_s22 = smov 111  }
  0x2b   :  { %v407_v49 = vld [vmem:[%s7005_s3 + $0x50] sm:$0xff]  ;;  %v437_v63 = vld [vmem:[%s7006_s4 + $0x40] sm:$0xff]  ;;  %v406_v0 = vld [vmem:[%s7005_s3 + $0x48] sm:$0xff] }
  0x2c   :  { %v439_v56 = vld [vmem:[%s7006_s4 + $0x50] sm:$0xff]  ;;  %v432_v3 = vld [vmem:[%s7006_s4 + $0x18] sm:$0xff]  ;;  %v430_v10 = vld [vmem:[%s7006_s4 + $0x8] sm:$0xff] }
  0x2d   :  { %v440_v6 = vld [vmem:[%s7006_s4 + $0x58] sm:$0xff]  ;;  %v438_v14 = vld [vmem:[%s7006_s4 + $0x48] sm:$0xff]  ;;  %v403_v21 = vld [vmem:[%s7005_s3 + $0x30] sm:$0xff] }
  0xf5   :  { %v4437_v22 = vpop.f32.mrb[0].mxu0 }
  0xf6   :  { %v4438_v23 = vpop.f32.mrb[1].mxu0 }
  0xf7   :  { %v4439_v24 = vadd.f32 %v4438_v23, %v4437_v22  ;;  %v4440_v25 = vpop.f32.mrb[2].mxu0 }
  0xf8   :  { %v4441_v26 = vpop.f32.mrb[3].mxu0  ;;  %v435_v25 = vld [vmem:[%s7006_s4 + $0x30] sm:$0xff] }
  0xf9   :  { %v230_v27 = vpack.c.bf16 %v4439_v24, %v4439_v24  ;;  %v401_v26 = vld [vmem:[%s7005_s3 + $0x20] sm:$0xff] }
  0xfb   :  { %4665 = vmatprep.subr.msk.bf16.mxu0 %vm296_vm1, %v230_v27  ;;  %4666 = vmatprep.subr.msk.bf16.mxu1 %vm296_vm1, %v230_v27  ;;  %v298_v29 = vsel %vm296_vm1, %v230_v27, 0 }
  0xfc   :  { %4484 = vmatpush3.bf16.msra.mxu0 %v298_v29  ;;  %4520 = vmatpush3.bf16.msra.mxu1 %v298_v29  ;;  %v411_v29 = vld [vmem:[%s7005_s3 + $0x70] sm:$0xff] }
  0xfd   :  { %559 = vmatprep.subr.bf16.mxu1 %v4708_v28  ;;  %4247 = vmatprep.subr.msk.bf16.mxu0 %vm296_vm1, %v4962_v15 }
  0xff   :  { %4486 = vmatmul.mubr.msk.bf16.vlgmr.msra.gmra.mrb[4].mxu0 %vm271_vm0, %v4699_v30  ;;  %4494 = vmatmul.mubr.msk.bf16.vlgmr.msra.gmra.mrb[0].mxu1 %vm271_vm0, %v4703_v31 }
 0x100   :  { %4489 = vmatprep.mubr.msk.bf16.mxu0 %vm271_vm0, %v4700_v32  ;;  %4497 = vmatprep.mubr.msk.bf16.mxu1 %vm271_vm0, %v4704_v33  ;;  %v433_v32 = vld [vmem:[%s7006_s4 + $0x20] sm:$0xff]  ;;  %v404_v33 = vld [vmem:[%s7005_s3 + $0x38] sm:$0xff] }
 0x101   :  { %560 = vmatpush1.bf16.msra.mxu1 %v4706_v34  ;;  %767 = vmatpush1.bf16.msra.mxu0 %v5041_v46 }
 0x102   :  { %561 = vmatprep.subr.bf16.mxu1 %v4711_v37 }
 0x105   :  { %562 = vmatpush1.bf16.msra.mxu1 %v4709_v38 }
 0x106   :  { %563 = vmatprep.subr.bf16.mxu1 %v4714_v39 }
 0x107   :  { %4490 = vmatmul.mubr.msk.bf16.gmra.mrb[8].mxu0 %vm271_vm0, %v4701_v35  ;;  %4498 = vmatmul.mubr.msk.bf16.gmra.mrb[4].mxu1 %vm271_vm0, %v4705_v36  ;;  %v443_v35 = vld [vmem:[%s7006_s4 + $0x70] sm:$0xff]  ;;  %v409_v36 = vld [vmem:[%s7005_s3 + $0x60] sm:$0xff] }
 0x108   :  { %591 = vmatprep.mubr.bf16.mxu1 %v7014_v45  ;;  %798 = vmatprep.mubr.bf16.mxu0 %v7014_v45 }
 0x109   :  { %564 = vmatpush1.bf16.msra.mxu1 %v4712_v40 }
 0x10a   :  { %4232 = vmatprep.subr.msk.bf16.mxu1 %vm552_vm2, %v4231_v42  ;;  %v412_v42 = vld [vmem:[%s7005_s3 + $0x78] sm:$0xff] }
 0x10d   :  { %566 = vmatpush1.bf16.msra.mxu1 %v554_v44 }
 0x10e   :  { %4268 = vmatprep.subr.msk.bf16.mxu1 %vm296_vm1, %v4962_v15 }
 0x1d2   :  { %v4487_v53 = vpop.f32.mrb[4].mxu0  ;;  %v4495_v55 = vpop.f32.mrb[0].mxu1 }
 0x1d3   :  { %v415_v58 = vmul.f32 %v4487_v53, %v399_v47  ;;  %v334_v59 = vpop.f32.mrb[5].mxu0  ;;  %v423_v61 = vmul.f32 %v4495_v55, %v407_v49  ;;  %v366_v62 = vpop.f32.mrb[1].mxu1  ;;  %v410_v53 = vld [vmem:[%s7005_s3 + $0x68] sm:$0xff] }
 0x1d4   :  { %v413_v1 = vmul.f32 %v397_v50, %v334_v59  ;;  %v4488_v2 = vpop.f32.mrb[6].mxu0  ;;  %v421_v4 = vmul.f32 %v405_v52, %v366_v62  ;;  %v4496_v5 = vpop.f32.mrb[2].mxu1  ;;  %v441_v52 = vld [vmem:[%s7006_s4 + $0x60] sm:$0xff] }
 0x1d5   :  { %v447_v7 = vadd.f32 %v431_v48, %v415_v58  ;;  %v416_v8 = vmul.f32 %v4488_v2, %v400_v51  ;;  %v337_v9 = vpop.f32.mrb[7].mxu0  ;;  %v455_v11 = vadd.f32 %v439_v56, %v423_v61  ;;  %v424_v12 = vmul.f32 %v4496_v5, %v408_v57  ;;  %v369_v13 = vpop.f32.mrb[3].mxu1  ;;  %v402_v48 = vld [vmem:[%s7005_s3 + $0x28] sm:$0xff]  ;;  %v436_v57 = vld [vmem:[%s7006_s4 + $0x38] sm:$0xff] }
 0x1d6   :  { %v445_v16 = vadd.f32 %v429_v54, %v413_v1  ;;  %v414_v17 = vmul.f32 %v398_v60, %v337_v9  ;;  %v453_v18 = vadd.f32 %v437_v63, %v421_v4  ;;  %v422_v19 = vmul.f32 %v406_v0, %v369_v13  ;;  %v444_v61 = vld [vmem:[%s7006_s4 + $0x78] sm:$0xff]  ;;  %v434_v1 = vld [vmem:[%s7006_s4 + $0x28] sm:$0xff] }
 0x1d7   :  { %v448_v20 = vadd.f32 %v432_v3, %v416_v8  ;;  %v471_v22 = vmax.f32 %v455_v11, 0.0  ;;  %v456_v23 = vadd.f32 %v440_v6, %v424_v12  ;;  %v463_v30 = vmax.f32 %v447_v7, 0.0  ;;  %v442_v5 = vld [vmem:[%s7006_s4 + $0x68] sm:$0xff] }
 0x1d8   :  { %v446_v24 = vadd.f32 %v430_v10, %v414_v17  ;;  %v469_v27 = vmax.f32 %v453_v18, 0.0  ;;  %v454_v28 = vadd.f32 %v438_v14, %v422_v19  ;;  %v461_v37 = vmax.f32 %v445_v16, 0.0 }
 0x1d9   :  { %v464_v31 = vmax.f32 %v448_v20, 0.0  ;;  %v472_v34 = vmax.f32 %v456_v23, 0.0 }
 0x1da   :  { %v462_v38 = vmax.f32 %v446_v24, 0.0  ;;  %v4491_v39 = vpop.f32.mrb[8].mxu0  ;;  %v470_v40 = vmax.f32 %v454_v28, 0.0  ;;  %v4499_v41 = vpop.f32.mrb[4].mxu1  ;;  %v4718_v28 = vld [vmem:[%s7009_s7 + $0x30] sm:$0xff]  }
 0x1db   :  { %v478_v43 = vpack.c.bf16 %v464_v31, %v463_v30  ;;  %v419_v44 = vmul.f32 %v4491_v39, %v403_v21  ;;  %v350_v47 = vpop.f32.mrb[9].mxu0  ;;  %v482_v49 = vpack.c.bf16 %v472_v34, %v471_v22  ;;  %v427_v50 = vmul.f32 %v4499_v41, %v411_v29  ;;  %v382_v51 = vpop.f32.mrb[5].mxu1  ;;  %v4719_v29 = vld [vmem:[%s7009_s7 + $0x8] sm:$0xff]   ;;  %v4720_v30 = vld [vmem:[%s7009_s7 + $0x38] sm:$0xff]   ;;  %v4721_v31 = vld [vmem:[%s7009_s7 + $0x10] sm:$0xff]  }
 0x1dc   :  { %v477_v54 = vpack.c.bf16 %v462_v38, %v461_v37  ;;  %v417_v55 = vmul.f32 %v401_v26, %v350_v47  ;;  %v4492_v56 = vpop.f32.mrb[10].mxu0  ;;  %v481_v58 = vpack.c.bf16 %v470_v40, %v469_v27  ;;  %v425_v59 = vmul.f32 %v409_v36, %v382_v51  ;;  %v4500_v60 = vpop.f32.mrb[6].mxu1  ;;  %v4717_v27 = vld [vmem:[%s7009_s7] sm:$0xff]   ;;  %v4724_v34 = vld [vmem:[%s7009_s7 + $0x48] sm:$0xff]   ;;  %v4726_v36 = vld [vmem:[%s7009_s7 + $0x50] sm:$0xff]  }
 0x1dd   :  { %v451_v62 = vadd.f32 %v435_v25, %v419_v44  ;;  %v420_v63 = vmul.f32 %v4492_v56, %v404_v33  ;;  %v353_v0 = vpop.f32.mrb[11].mxu0  ;;  %v459_v2 = vadd.f32 %v443_v35, %v427_v50  ;;  %v428_v3 = vmul.f32 %v4500_v60, %v412_v42  ;;  %v385_v4 = vpop.f32.mrb[7].mxu1  ;;  %4248 = vmatmul.mubr.msk.bf16.vlgmr.msra.gmra.mrb[12].mxu0 %vm271_vm0, %v4717_v27  ;;  %v4723_v33 = vld [vmem:[%s7009_s7 + $0x18] sm:$0xff]   ;;  %v4725_v35 = vld [vmem:[%s7009_s7 + $0x20] sm:$0xff]   ;;  %v4727_v37 = vld [vmem:[%s7009_s7 + $0x28] sm:$0xff]  }
 0x1de   :  { %4233 = vmatmul.mubr.msk.bf16.vlgmr.msra.gmra.mrb[8].mxu1 %vm527_vm3, %v477_v54  ;;  %v449_v6 = vadd.f32 %v433_v32, %v417_v55  ;;  %v418_v7 = vmul.f32 %v402_v48, %v353_v0  ;;  %v457_v8 = vadd.f32 %v441_v52, %v425_v59  ;;  %v426_v9 = vmul.f32 %v410_v53, %v385_v4  ;;  %v4722_v32 = vld [vmem:[%s7009_s7 + $0x40] sm:$0xff]   ;;  %v4728_v38 = vld [vmem:[%s7009_s7 + $0x58] sm:$0xff]  }
 0x1df   :  { %v467_v10 = vmax.f32 %v451_v62, 0.0  ;;  %v452_v11 = vadd.f32 %v436_v57, %v420_v63  ;;  %601 = vmatprep.mubr.bf16.mxu1 %v7014_v45  ;;  %v475_v12 = vmax.f32 %v459_v2, 0.0  ;;  %v460_v13 = vadd.f32 %v444_v61, %v428_v3  ;;  %1224 = vmatpush1.bf16.msra.mxu1 %v5041_v46  ;;  %v4729_v27 = vld [vmem:[%s7008_s6] sm:$0xff]  }
 0x1e0   :  { %v465_v14 = vmax.f32 %v449_v6, 0.0  ;;  %v450_v16 = vadd.f32 %v434_v1, %v418_v7  ;;  %v473_v17 = vmax.f32 %v457_v8, 0.0  ;;  %v458_v18 = vadd.f32 %v442_v5, %v426_v9  ;;  %808 = vmatprep.mubr.bf16.mxu0 %v7014_v45 }
 0x1e1   :  { %v468_v19 = vmax.f32 %v452_v11, 0.0  ;;  %v476_v20 = vmax.f32 %v460_v13, 0.0 }
 0x1e2   :  { %v466_v21 = vmax.f32 %v450_v16, 0.0  ;;  %v474_v22 = vmax.f32 %v458_v18, 0.0 }
 0x1e3   :  { %v480_v23 = vpack.c.bf16 %v468_v19, %v467_v10  ;;  %v484_v24 = vpack.c.bf16 %v476_v20, %v475_v12 }
 0x1e4   :  { %v479_v25 = vpack.c.bf16 %v466_v21, %v465_v14  ;;  %v483_v26 = vpack.c.bf16 %v474_v22, %v473_v17 }
 0x1e5   :  { %4249 = vmatmul.mubr.msk.bf16.gmra.mrb[16].mxu0 %vm271_vm0, %v4719_v29  ;;  %v4732_v29 = vld [vmem:[%s7003_s1] sm:$0xff]  }
 0x1e6   :  { %4234 = vmatmul.mubr.msk.bf16.gmra.mrb[12].mxu1 %vm527_vm3, %v478_v43  ;;  %818 = vmatprep.mubr.bf16.mxu0 %v7014_v45 }
 0x1e7   :  { %611 = vmatprep.mubr.bf16.mxu1 %v7014_v45 }
 0x1ed   :  { %4250 = vmatmul.mubr.msk.bf16.gmra.mrb[20].mxu0 %vm271_vm0, %v4721_v31  ;;  %v4736_v31 = vld [vmem:[%s7003_s1 + $0x8] sm:$0xff]  }
 0x1ee   :  { %4235 = vmatmul.mubr.msk.bf16.gmra.mrb[16].mxu1 %vm527_vm3, %v479_v25  ;;  %828 = vmatprep.mubr.bf16.mxu0 %v7014_v45 }
 0x1ef   :  { %621 = vmatprep.mubr.bf16.mxu1 %v7014_v45 }
 0x1f5   :  { %4251 = vmatmul.mubr.msk.bf16.gmra.mrb[24].mxu0 %vm271_vm0, %v4723_v33  ;;  %v4740_v33 = vld [vmem:[%s7003_s1 + $0x10] sm:$0xff]  }
 0x1f6   :  { %4236 = vmatmul.mubr.msk.bf16.gmra.mrb[20].mxu1 %vm527_vm3, %v480_v23  ;;  %838 = vmatprep.mubr.bf16.mxu0 %v7014_v45 }
 0x1f7   :  { %631 = vmatprep.mubr.bf16.mxu1 %v7014_v45 }
 0x1fd   :  { %4252 = vmatmul.mubr.msk.bf16.gmra.mrb[28].mxu0 %vm271_vm0, %v4725_v35  ;;  %v2038_v35 = vld [vmem:[%s7011_s9] sm:$0xff] }
 0x1fe   :  { %4237 = vmatmul.mubr.msk.bf16.gmra.mrb[24].mxu1 %vm527_vm3, %v481_v58  ;;  %848 = vmatprep.mubr.bf16.mxu0 %v7014_v45 }
 0x1ff   :  { %641 = vmatprep.mubr.bf16.mxu1 %v7014_v45  ;;  %2044 = vperm.xlu0 %4679, %v2038_v35  }
 0x205   :  { %4253 = vmatmul.mubr.msk.bf16.gmra.mrb[32].mxu0 %vm271_vm0, %v4727_v37  ;;  %v4742_v37 = vld [vmem:[%s7003_s1 + $0x18] sm:$0xff]  }
 0x206   :  { %4238 = vmatmul.mubr.msk.bf16.gmra.mrb[28].mxu1 %vm527_vm3, %v482_v49  ;;  %927 = vmatprep.mubr.bf16.mxu0 %v7014_v45 }
 0x207   :  { %651 = vmatprep.mubr.bf16.mxu1 %v7014_v45 }
 0x20e   :  { %4239 = vmatmul.mubr.msk.bf16.gmra.mrb[32].mxu1 %vm527_vm3, %v483_v26  ;;  %v4731_v26 = vld [vmem:[%s7003_s1 + $0x40] sm:$0xff]  }
 0x20f   :  { %661 = vmatprep.mubr.bf16.mxu1 %v7014_v45 }
 0x216   :  { %4240 = vmatmul.mubr.msk.bf16.gmra.mrb[36].mxu1 %vm527_vm3, %v484_v24 }
 0x217   :  { %1255 = vmatprep.mubr.bf16.mxu1 %v7014_v45 }
 0x21e   :  { %4269 = vmatmul.mubr.msk.bf16.vlgmr.msra.gmra.mrb[40].mxu1 %vm271_vm0, %v4718_v28  ;;  %v4730_v28 = vld [vmem:[%s7008_s6 + $0x30] sm:$0xff]  }
 0x21f   :  { %1265 = vmatprep.mubr.bf16.mxu1 %v7014_v45 }
 0x226   :  { %4270 = vmatmul.mubr.msk.bf16.gmra.mrb[44].mxu1 %vm271_vm0, %v4720_v30  ;;  %v4735_v30 = vld [vmem:[%s7003_s1 + $0x48] sm:$0xff]  }
 0x227   :  { %1275 = vmatprep.mubr.bf16.mxu1 %v7014_v45 }
 0x22e   :  { %4271 = vmatmul.mubr.msk.bf16.gmra.mrb[48].mxu1 %vm271_vm0, %v4722_v32  ;;  %v4734_v32 = vld [vmem:[%s7008_s6 + $0x38] sm:$0xff]  }
 0x22f   :  { %1285 = vmatprep.mubr.bf16.mxu1 %v7014_v45 }
 0x236   :  { %4272 = vmatmul.mubr.msk.bf16.gmra.mrb[52].mxu1 %vm271_vm0, %v4724_v34  ;;  %v4741_v34 = vld [vmem:[%s7003_s1 + $0x58] sm:$0xff]  }
 0x237   :  { %1295 = vmatprep.mubr.bf16.mxu1 %v7014_v45 }
 0x23e   :  { %4273 = vmatmul.mubr.msk.bf16.gmra.mrb[56].mxu1 %vm271_vm0, %v4726_v36  ;;  %v2039_v36 = vld [vmem:[%s7011_s9 + $0x8] sm:$0xff] }
 0x23f   :  { %1305 = vmatprep.mubr.bf16.mxu1 %v7014_v45  ;;  %2049 = vperm.xlu1 %4680, %v2039_v36  }
 0x246   :  { %4274 = vmatmul.mubr.msk.bf16.gmra.mrb[60].mxu1 %vm271_vm0, %v4728_v38  ;;  %v4745_v38 = vld [vmem:[%s7003_s1 + $0x60] sm:$0xff]  }
 0x247   :  { %1384 = vmatprep.mubr.bf16.mxu1 %v7014_v45 }
 0x2b1   :  { %v593_v39 = vpop.f32.mrb[8].mxu1 }
 0x2b2   :  { %v595_v40 = vpop.f32.mrb[9].mxu1 }
 0x2b3   :  { %v597_v41 = vpop.f32.mrb[10].mxu1 }
 0x2b4   :  { %v5217_v42 = vpack.c.bf16 %v597_v41, %v593_v39  ;;  %v599_v43 = vpop.f32.mrb[11].mxu1  ;;  %v2041_v39 = vld [vmem:[%s7011_s9 + $0x18] sm:$0xff]  ;;  %v4738_v41 = vld [vmem:[%s7008_s6 + $0x40] sm:$0xff]  }
 0x2b5   :  { %v5219_v44 = vpack.c.bf16 %v599_v43, %v595_v40  ;;  %v4737_v40 = vld [vmem:[%s7008_s6 + $0x10] sm:$0xff]   ;;  %2059 = vperm.xlu0 %4679, %v2041_v39  }
 0x2b6   :  { %v2040_v43 = vld [vmem:[%s7011_s9 + $0x10] sm:$0xff] }
 0x2b7   :  { %895 = vmatprep.subr.bf16.mxu0 %v5219_v44  ;;  %1352 = vmatprep.subr.bf16.mxu1 %v5219_v44 }
 0x2b8   :  { %896 = vmatpush1.bf16.msra.mxu0 %v5217_v42  ;;  %1353 = vmatpush1.bf16.msra.mxu1 %v5217_v42 }
 0x2b9   :  { %v603_v47 = vpop.f32.mrb[12].mxu1  ;;  %2054 = vperm.xlu1 %4680, %v2040_v43  }
 0x2ba   :  { %v605_v48 = vpop.f32.mrb[13].mxu1 }
 0x2bb   :  { %v607_v49 = vpop.f32.mrb[14].mxu1 }
 0x2bc   :  { %v5225_v50 = vpack.c.bf16 %v607_v49, %v603_v47  ;;  %v609_v51 = vpop.f32.mrb[15].mxu1  ;;  %v4749_v47 = vld [vmem:[%s7003_s1 + $0x68] sm:$0xff]   ;;  %v2070_v49 = vld [vmem:[%s7012_s10] sm:$0xff] }
 0x2bd   :  { %v5227_v52 = vpack.c.bf16 %v609_v51, %v605_v48  ;;  %v2071_v48 = vld [vmem:[%s7012_s10 + $0x8] sm:$0xff]  ;;  %2076 = vperm.xlu1 %4680, %v2070_v49  }
 0x2be   :  { %v4750_v51 = vld [vmem:[%s7003_s1 + $0x28] sm:$0xff]   ;;  %2081 = vperm.xlu0 %4679, %v2071_v48  }
 0x2bf   :  { %897 = vmatprep.subr.bf16.mxu0 %v5227_v52  ;;  %1354 = vmatprep.subr.bf16.mxu1 %v5227_v52 }
 0x2c0   :  { %898 = vmatpush1.bf16.msra.mxu0 %v5225_v50  ;;  %1355 = vmatpush1.bf16.msra.mxu1 %v5225_v50 }
 0x2c1   :  { %v613_v53 = vpop.f32.mrb[16].mxu1 }
 0x2c2   :  { %v615_v54 = vpop.f32.mrb[17].mxu1 }
 0x2c3   :  { %v617_v55 = vpop.f32.mrb[18].mxu1 }
 0x2c4   :  { %v5233_v56 = vpack.c.bf16 %v617_v55, %v613_v53  ;;  %v619_v57 = vpop.f32.mrb[19].mxu1  ;;  %v4753_v53 = vld [vmem:[%s7003_s1 + $0x70] sm:$0xff]   ;;  %v4743_v55 = vld [vmem:[%s7008_s6 + $0x18] sm:$0xff]  }
 0x2c5   :  { %v5235_v58 = vpack.c.bf16 %v619_v57, %v615_v54  ;;  %v2073_v54 = vld [vmem:[%s7012_s10 + $0x18] sm:$0xff]  ;;  %v4744_v57 = vld [vmem:[%s7008_s6 + $0x48] sm:$0xff]  }
 0x2c6   :  { %2091 = vperm.xlu0 %4679, %v2073_v54  }
 0x2c7   :  { %899 = vmatprep.subr.bf16.mxu0 %v5235_v58  ;;  %1356 = vmatprep.subr.bf16.mxu1 %v5235_v58 }
 0x2c8   :  { %900 = vmatpush1.bf16.msra.mxu0 %v5233_v56  ;;  %1357 = vmatpush1.bf16.msra.mxu1 %v5233_v56 }
 0x2c9   :  { %v623_v59 = vpop.f32.mrb[20].mxu1 }
 0x2ca   :  { %v625_v60 = vpop.f32.mrb[21].mxu1  ;;  %4106 = vperm.xlu0 %4679, %v2039_v36  }
 0x2cb   :  { %v627_v61 = vpop.f32.mrb[22].mxu1 }
 0x2cc   :  { %v5241_v62 = vpack.c.bf16 %v627_v61, %v623_v59  ;;  %v629_v63 = vpop.f32.mrb[23].mxu1  ;;  %v2072_v59 = vld [vmem:[%s7012_s10 + $0x10] sm:$0xff]  ;;  %v4755_v61 = vld [vmem:[%s7003_s1 + $0x78] sm:$0xff]  }
 0x2cd   :  { %v5243_v0 = vpack.c.bf16 %v629_v63, %v625_v60  ;;  %v4754_v60 = vld [vmem:[%s7003_s1 + $0x30] sm:$0xff]   ;;  %2086 = vperm.xlu1 %4680, %v2072_v59   ;;  %v4756_v63 = vld [vmem:[%s7003_s1 + $0x38] sm:$0xff]  }
 0x2ce   :  { %4116 = vperm.xlu0 %4679, %v2041_v39  }
 0x2cf   :  { %901 = vmatprep.subr.bf16.mxu0 %v5243_v0  ;;  %1358 = vmatprep.subr.bf16.mxu1 %v5243_v0 }
 0x2d0   :  { %902 = vmatpush1.bf16.msra.mxu0 %v5241_v62  ;;  %1359 = vmatpush1.bf16.msra.mxu1 %v5241_v62 }
 0x2d1   :  { %v633_v1 = vpop.f32.mrb[24].mxu1  ;;  %4101 = vperm.xlu1 %4680, %v2038_v35  }
 0x2d2   :  { %v635_v2 = vpop.f32.mrb[25].mxu1  ;;  %4138 = vperm.xlu0 %4679, %v2071_v48  }
 0x2d3   :  { %v637_v3 = vpop.f32.mrb[26].mxu1 }
 0x2d4   :  { %v5249_v4 = vpack.c.bf16 %v637_v3, %v633_v1  ;;  %v639_v5 = vpop.f32.mrb[27].mxu1  ;;  %v4747_v1 = vld [vmem:[%s7008_s6 + $0x20] sm:$0xff]   ;;  %v4306_v3 = vld [vmem:[%s7002_s0 + $0x8] sm:$0xff] }
 0x2d5   :  { %v5251_v6 = vpack.c.bf16 %v639_v5, %v635_v2  ;;  %v4748_v2 = vld [vmem:[%s7008_s6 + $0x50] sm:$0xff]   ;;  %4111 = vperm.xlu1 %4680, %v2040_v43   ;;  %v2121_v5 = vcombine.high %v4306_v3, %v4306_v3 }
 0x2d7   :  { %903 = vmatprep.subr.bf16.mxu0 %v5251_v6  ;;  %1360 = vmatprep.subr.bf16.mxu1 %v5251_v6 }
 0x2d8   :  { %904 = vmatpush1.bf16.msra.mxu0 %v5249_v4  ;;  %1361 = vmatpush1.bf16.msra.mxu1 %v5249_v4 }
 0x2d9   :  { %v643_v7 = vpop.f32.mrb[28].mxu1  ;;  %4133 = vperm.xlu1 %4680, %v2070_v49  }
 0x2da   :  { %v645_v8 = vpop.f32.mrb[29].mxu1 }
 0x2db   :  { %v647_v9 = vpop.f32.mrb[30].mxu1 }
 0x2dc   :  { %v5257_v10 = vpack.c.bf16 %v647_v9, %v643_v7  ;;  %v649_v11 = vpop.f32.mrb[31].mxu1  ;;  %v4751_v7 = vld [vmem:[%s7008_s6 + $0x28] sm:$0xff]   ;;  %v5406_v9 = vpack.c.bf16 %v2121_v5, %v2121_v5 }
 0x2dd   :  { %v5259_v12 = vpack.c.bf16 %v649_v11, %v645_v8  ;;  %v4752_v8 = vld [vmem:[%s7008_s6 + $0x58] sm:$0xff]   ;;  %v5410_v11 = vpack.c.bf16 %v4306_v3, %v4306_v3 }
 0x2de   :  { %7047 = vst [vmem:[#allocation5_spill] sm:$0xff] %v5406_v9 }
 0x2df   :  { %905 = vmatprep.subr.bf16.mxu0 %v5259_v12  ;;  %1362 = vmatprep.subr.bf16.mxu1 %v5259_v12 }
 0x2e0   :  { %906 = vmatpush1.bf16.msra.mxu0 %v5257_v10  ;;  %1363 = vmatpush1.bf16.msra.mxu1 %v5257_v10 }
 0x2e1   :  { %v653_v13 = vpop.f32.mrb[32].mxu1 }
 0x2e2   :  { %v655_v14 = vpop.f32.mrb[33].mxu1 }
 0x2e3   :  { %v657_v16 = vpop.f32.mrb[34].mxu1 }
 0x2e4   :  { %v5265_v17 = vpack.c.bf16 %v657_v16, %v653_v13  ;;  %v659_v18 = vpop.f32.mrb[35].mxu1  ;;  %v4758_v13 = vld [vmem:[%s7009_s7 + $0x60] sm:$0xff]  }
 0x2e5   :  { %v5267_v19 = vpack.c.bf16 %v659_v18, %v655_v14  ;;  %v4759_v14 = vld [vmem:[%s7009_s7 + $0x68] sm:$0xff]  }
 0x2e7   :  { %907 = vmatprep.subr.bf16.mxu0 %v5267_v19  ;;  %1364 = vmatprep.subr.bf16.mxu1 %v5267_v19 }
 0x2e8   :  { %908 = vmatpush1.bf16.msra.mxu0 %v5265_v17  ;;  %1365 = vmatpush1.bf16.msra.mxu1 %v5265_v17 }
 0x2e9   :  { %v663_v20 = vpop.f32.mrb[36].mxu1 }
 0x2ea   :  { %v665_v21 = vpop.f32.mrb[37].mxu1 }
 0x2eb   :  { %v667_v22 = vpop.f32.mrb[38].mxu1 }
 0x2ec   :  { %v5273_v23 = vpack.c.bf16 %v667_v22, %v663_v20  ;;  %v669_v24 = vpop.f32.mrb[39].mxu1 }
 0x2ed   :  { %v5275_v25 = vpack.c.bf16 %v669_v24, %v665_v21 }
 0x2ef   :  { %909 = vmatprep.subr.bf16.mxu0 %v5275_v25  ;;  %1366 = vmatprep.subr.bf16.mxu1 %v5275_v25 }
 0x2f0   :  { %910 = vmatpush1.bf16.msra.mxu0 %v5273_v23  ;;  %1367 = vmatpush1.bf16.msra.mxu1 %v5273_v23 }
 0x2f1   :  { %4290 = vmatprep.subr.msk.bf16.mxu0 %vm296_vm1, %v4962_v15  ;;  %4452 = vmatprep.subr.bf16.mxu1 %v4731_v26  ;;  %v4739_v15 = vld [vmem:[%s7003_s1 + $0x50] sm:$0xff]  }
 0x2f3   :  { %928 = vmatmul.mubr.bf16.vlgmr.msra.gmra.mrb[12].mxu0 %v4729_v27  ;;  %1385 = vmatmul.mubr.bf16.vlgmr.msra.gmra.mrb[40].mxu1 %v4730_v28 }
 0x2f4   :  { %1655 = vmatpush1.bf16.msra.mxu0 %v5041_v46  ;;  %4453 = vmatpush3.bf16.msra.mxu1 %v4732_v29  ;;  %v4733_v46 = vld [vmem:[%s7008_s6 + $0x8] sm:$0xff]  }
 0x2f5   :  { %1783 = vmatprep.subr.bf16.mxu0 %v5219_v44  ;;  %937 = vmatprep.mubr.bf16.mxu0 %v7014_v45  ;;  %v4746_v44 = vld [vmem:[%s7003_s1 + $0x20] sm:$0xff]  }
 0x2f6   :  { %1394 = vmatprep.mubr.bf16.mxu1 %v7014_v45  ;;  %4454 = vmatprep.subr.bf16.mxu1 %v4735_v30 }
 0x2f8   :  { %4455 = vmatpush3.bf16.msra.mxu1 %v4736_v31 }
 0x2f9   :  { %4456 = vmatprep.subr.bf16.mxu1 %v4739_v15 }
 0x2fb   :  { %938 = vmatmul.mubr.bf16.gmra.mrb[16].mxu0 %v4733_v46  ;;  %1395 = vmatmul.mubr.bf16.gmra.mrb[44].mxu1 %v4734_v32 }
 0x2fc   :  { %947 = vmatprep.mubr.bf16.mxu0 %v7014_v45  ;;  %1404 = vmatprep.mubr.bf16.mxu1 %v7014_v45 }
 0x2fd   :  { %4457 = vmatpush3.bf16.msra.mxu1 %v4740_v33 }
 0x2fe   :  { %4458 = vmatprep.subr.bf16.mxu1 %v4741_v34 }
 0x301   :  { %4459 = vmatpush3.bf16.msra.mxu1 %v4742_v37 }
 0x302   :  { %4460 = vmatprep.subr.bf16.mxu1 %v4745_v38 }
 0x303   :  { %948 = vmatmul.mubr.bf16.gmra.mrb[20].mxu0 %v4737_v40  ;;  %1405 = vmatmul.mubr.bf16.gmra.mrb[48].mxu1 %v4738_v41 }
 0x304   :  { %957 = vmatprep.mubr.bf16.mxu0 %v7014_v45  ;;  %1414 = vmatprep.mubr.bf16.mxu1 %v7014_v45 }
 0x305   :  { %4461 = vmatpush3.bf16.msra.mxu1 %v4746_v44 }
 0x306   :  { %4462 = vmatprep.subr.bf16.mxu1 %v4749_v47 }
 0x309   :  { %4463 = vmatpush3.bf16.msra.mxu1 %v4750_v51 }
 0x30a   :  { %4464 = vmatprep.subr.bf16.mxu1 %v4753_v53 }
 0x30b   :  { %958 = vmatmul.mubr.bf16.gmra.mrb[24].mxu0 %v4743_v55  ;;  %1415 = vmatmul.mubr.bf16.gmra.mrb[52].mxu1 %v4744_v57 }
 0x30c   :  { %967 = vmatprep.mubr.bf16.mxu0 %v7014_v45  ;;  %1424 = vmatprep.mubr.bf16.mxu1 %v7014_v45 }
 0x30d   :  { %4465 = vmatpush3.bf16.msra.mxu1 %v4754_v60 }
 0x30e   :  { %4466 = vmatprep.subr.bf16.mxu1 %v4755_v61 }
 0x311   :  { %4467 = vmatpush3.bf16.msra.mxu1 %v4756_v63 }
 0x313   :  { %968 = vmatmul.mubr.bf16.gmra.mrb[28].mxu0 %v4747_v1  ;;  %1425 = vmatmul.mubr.bf16.gmra.mrb[56].mxu1 %v4748_v2 }
 0x314   :  { %977 = vmatprep.mubr.bf16.mxu0 %v7014_v45  ;;  %1434 = vmatprep.mubr.bf16.mxu1 %v7014_v45 }
 0x31b   :  { %978 = vmatmul.mubr.bf16.gmra.mrb[32].mxu0 %v4751_v7  ;;  %1435 = vmatmul.mubr.bf16.gmra.mrb[60].mxu1 %v4752_v8 }
 0x31c   :  { %1686 = vmatprep.mubr.bf16.mxu0 %v7014_v45  ;;  %2285 = vmatprep.mubr.bf16.mxu1 %v5406_v9 }
 0x323   :  { %4291 = vmatmul.mubr.msk.bf16.vlgmr.msra.gmra.mrb[36].mxu0 %vm271_vm0, %v4758_v13  ;;  %2286 = vmatmul.mubr.bf16.vlgmr.msra.gmra.mrb[64].mxu1 %v5410_v11 }
 0x324   :  { %1784 = vmatpush1.bf16.msra.mxu0 %v5217_v42  ;;  %1696 = vmatprep.mubr.bf16.mxu0 %v7014_v45  ;;  %v4760_v42 = vld [vmem:[%s7009_s7 + $0x70] sm:$0xff]  }
 0x325   :  { %1785 = vmatprep.subr.bf16.mxu0 %v5227_v52  ;;  %v4762_v52 = vld [vmem:[%s7009_s7 + $0x80] sm:$0xff]  }
 0x328   :  { %1786 = vmatpush1.bf16.msra.mxu0 %v5225_v50  ;;  %v4761_v50 = vld [vmem:[%s7009_s7 + $0x78] sm:$0xff]  }
 0x329   :  { %1787 = vmatprep.subr.bf16.mxu0 %v5235_v58  ;;  %v4764_v58 = vld [vmem:[%s7008_s6 + $0x60] sm:$0xff]  }
 0x32b   :  { %4292 = vmatmul.mubr.msk.bf16.gmra.mrb[40].mxu0 %vm271_vm0, %v4759_v14 }
 0x32c   :  { %1788 = vmatpush1.bf16.msra.mxu0 %v5233_v56  ;;  %1706 = vmatprep.mubr.bf16.mxu0 %v7014_v45  ;;  %v4763_v56 = vld [vmem:[%s7009_s7 + $0x88] sm:$0xff]  }
 0x32d   :  { %1789 = vmatprep.subr.bf16.mxu0 %v5243_v0  ;;  %v4766_v0 = vld [vmem:[%s7008_s6 + $0x70] sm:$0xff]  }
 0x330   :  { %1790 = vmatpush1.bf16.msra.mxu0 %v5241_v62  ;;  %v4765_v62 = vld [vmem:[%s7008_s6 + $0x68] sm:$0xff]  }
 0x331   :  { %1791 = vmatprep.subr.bf16.mxu0 %v5251_v6  ;;  %v4768_v6 = vld [vmem:[%s7008_s6 + $0x80] sm:$0xff]  }
 0x333   :  { %4293 = vmatmul.mubr.msk.bf16.gmra.mrb[44].mxu0 %vm271_vm0, %v4760_v42 }
 0x334   :  { %1792 = vmatpush1.bf16.msra.mxu0 %v5249_v4  ;;  %1716 = vmatprep.mubr.bf16.mxu0 %v7014_v45  ;;  %v4767_v4 = vld [vmem:[%s7008_s6 + $0x78] sm:$0xff]  }
 0x335   :  { %1793 = vmatprep.subr.bf16.mxu0 %v5259_v12  ;;  %v4770_v12 = vld [vmem:[%s7004_s2] sm:$0xff]  }
 0x336   :  { %4503 = vmatprep.mubr.msk.bf16.mxu1 %vm271_vm0, %v4770_v12  ;;  %v4776_v12 = vld [vmem:[%s7004_s2 + $0x30] sm:$0xff]  }
 0x338   :  { %1794 = vmatpush1.bf16.msra.mxu0 %v5257_v10  ;;  %v4769_v10 = vld [vmem:[%s7008_s6 + $0x88] sm:$0xff]  }
 0x339   :  { %1795 = vmatprep.subr.bf16.mxu0 %v5267_v19 }
 0x33b   :  { %4294 = vmatmul.mubr.msk.bf16.gmra.mrb[48].mxu0 %vm271_vm0, %v4761_v50 }
 0x33c   :  { %1796 = vmatpush1.bf16.msra.mxu0 %v5265_v17  ;;  %1726 = vmatprep.mubr.bf16.mxu0 %v7014_v45 }
 0x33d   :  { %1797 = vmatprep.subr.bf16.mxu0 %v5275_v25 }
 0x340   :  { %1798 = vmatpush1.bf16.msra.mxu0 %v5273_v23 }
 0x343   :  { %4295 = vmatmul.mubr.msk.bf16.gmra.mrb[52].mxu0 %vm271_vm0, %v4762_v52 }
 0x344   :  { %1736 = vmatprep.mubr.bf16.mxu0 %v7014_v45 }
 0x34b   :  { %4296 = vmatmul.mubr.msk.bf16.gmra.mrb[56].mxu0 %vm271_vm0, %v4763_v56 }
 0x34c   :  { %1815 = vmatprep.mubr.bf16.mxu0 %v7014_v45 }
 0x353   :  { %1816 = vmatmul.mubr.bf16.vlgmr.msra.gmra.mrb[36].mxu0 %v4764_v58 }
 0x354   :  { %1825 = vmatprep.mubr.bf16.mxu0 %v7014_v45 }
 0x35b   :  { %1826 = vmatmul.mubr.bf16.gmra.mrb[40].mxu0 %v4765_v62  ;;  %v4771_v62 = vld [vmem:[%s7004_s2 + $0x8] sm:$0xff]  }
 0x35c   :  { %1835 = vmatprep.mubr.bf16.mxu0 %v7014_v45 }
 0x363   :  { %1836 = vmatmul.mubr.bf16.gmra.mrb[44].mxu0 %v4766_v0  ;;  %v4772_v0 = vld [vmem:[%s7004_s2 + $0x10] sm:$0xff]  }
 0x364   :  { %1845 = vmatprep.mubr.bf16.mxu0 %v7014_v45 }
 0x36b   :  { %1846 = vmatmul.mubr.bf16.gmra.mrb[48].mxu0 %v4767_v4  ;;  %v4773_v4 = vld [vmem:[%s7004_s2 + $0x18] sm:$0xff]  }
 0x36c   :  { %1855 = vmatprep.mubr.bf16.mxu0 %v7014_v45 }
 0x373   :  { %1856 = vmatmul.mubr.bf16.gmra.mrb[52].mxu0 %v4768_v6  ;;  %v4774_v6 = vld [vmem:[%s7004_s2 + $0x20] sm:$0xff]  }
 0x374   :  { %1865 = vmatprep.mubr.bf16.mxu0 %v7014_v45 }
 0x37b   :  { %1866 = vmatmul.mubr.bf16.gmra.mrb[56].mxu0 %v4769_v10  ;;  %v4775_v10 = vld [vmem:[%s7004_s2 + $0x28] sm:$0xff]  }
 0x37c   :  { %2666 = vmatprep.mubr.bf16.mxu0 %v7014_v45 }
 0x3c6   :  { %v929_v16 = vpop.f32.mrb[12].mxu0  ;;  %v1386_v17 = vpop.f32.mrb[40].mxu1 }
 0x3c7   :  { %v1388_v18 = vpop.f32.mrb[41].mxu1  ;;  %988 = vrot.lane.b32.xlu0 %v929_v16, %s4850_s15  ;;  %v931_v19 = vpop.f32.mrb[13].mxu0 }
 0x3c8   :  { %v1390_v20 = vpop.f32.mrb[42].mxu1  ;;  %v933_v21 = vpop.f32.mrb[14].mxu0 }
 0x3c9   :  { %1447 = vrot.lane.b32.xlu1 %v1390_v20, %s4851_s16  ;;  %v1392_v22 = vpop.f32.mrb[43].mxu1  ;;  %v935_v23 = vpop.f32.mrb[15].mxu0 }
 0x3ca   :  { %v5565_v16 = vpop.permute.xlu0 %2044 }
 0x3cb   :  { %1445 = vrot.lane.b32.xlu0 %v1386_v17, %s4851_s16  ;;  %7048 = vst [vmem:[#allocation6_spill] sm:$0xff] %v5565_v16  ;;  %v5569_v17 = vpop.permute.xlu1 %2049  ;;  %v4304_v16 = vld [vmem:[%s7010_s8 + $0xe] sm:$0x3] }
 0x3cc   :  { %7049 = vst [vmem:[#allocation7_spill] sm:$0xff] %v5569_v17 }
 0x3cd   :  { %998 = vrot.lane.b32.xlu1 %v935_v23, %s4850_s15 }
 0x3ce   :  { %v1396_v24 = vpop.f32.mrb[44].mxu1  ;;  %v939_v25 = vpop.f32.mrb[16].mxu0 }
 0x3cf   :  { %v1398_v26 = vpop.f32.mrb[45].mxu1  ;;  %996 = vrot.lane.b32.xlu0 %v931_v19, %s4850_s15  ;;  %v941_v27 = vpop.f32.mrb[17].mxu0 }
 0x3d0   :  { %v1400_v28 = vpop.f32.mrb[46].mxu1  ;;  %v943_v29 = vpop.f32.mrb[18].mxu0 }
 0x3d1   :  { %v1402_v30 = vpop.f32.mrb[47].mxu1  ;;  %1455 = vrot.lane.b32.xlu1 %v1392_v22, %s4851_s16  ;;  %v945_v31 = vpop.f32.mrb[19].mxu0 }
 0x3d2   :  { %v5577_v19 = vpop.permute.xlu0 %2059  ;;  %v5579_v20 = vpop.permute.xlu1 %2054 }
 0x3d3   :  { %1453 = vrot.lane.b32.xlu0 %v1388_v18, %s4851_s16  ;;  %v4777_v18 = vld [vmem:[%s7004_s2 + $0x38] sm:$0xff]   ;;  %7050 = vst [vmem:[#allocation8_spill] sm:$0xff] %v5577_v19  ;;  %7051 = vst [vmem:[#allocation9_spill] sm:$0xff] %v5579_v20  ;;  %s4855_s2 = smov 113  }
 0x3d5   :  { %992 = vrot.lane.b32.xlu1 %v939_v25, %s4850_s15 }
 0x3d6   :  { %v5494_v15 = vpop.f32.mrb[48].mxu1  ;;  %v949_v46 = vpop.f32.mrb[20].mxu0 }
 0x3d7   :  { %v5496_v32 = vpop.f32.mrb[49].mxu1  ;;  %990 = vrot.lane.b32.xlu0 %v933_v21, %s4850_s15  ;;  %v951_v33 = vpop.f32.mrb[21].mxu0 }
 0x3d8   :  { %v5499_v34 = vpop.f32.mrb[50].mxu1  ;;  %v953_v35 = vpop.f32.mrb[22].mxu0 }
 0x3d9   :  { %v5501_v36 = vpop.f32.mrb[51].mxu1  ;;  %994 = vrot.lane.b32.xlu1 %v943_v29, %s4850_s15  ;;  %v955_v37 = vpop.f32.mrb[23].mxu0 }
 0x3da   :  { %v5583_v21 = vpop.permute.xlu0 %2081  ;;  %v5585_v22 = vpop.permute.xlu1 %2076 }
 0x3db   :  { %1449 = vrot.lane.b32.xlu0 %v1396_v24, %s4851_s16  ;;  %7052 = vst [vmem:[#allocation10_spill] sm:$0xff] %v5583_v21  ;;  %7053 = vst [vmem:[#allocation11_spill] sm:$0xff] %v5585_v22  ;;  %v4283_v22 = vld [vmem:[%s7010_s8 + $0xa] sm:$0x3] }
 0x3dd   :  { %1451 = vrot.lane.b32.xlu1 %v1400_v28, %s4851_s16 }
 0x3de   :  { %v5506_v38 = vpop.f32.mrb[52].mxu1  ;;  %v959_v39 = vpop.f32.mrb[24].mxu0 }
 0x3df   :  { %v5508_v40 = vpop.f32.mrb[53].mxu1  ;;  %1000 = vrot.lane.b32.xlu0 %v941_v27, %s4850_s15  ;;  %v961_v41 = vpop.f32.mrb[25].mxu0 }
 0x3e0   :  { %v5511_v43 = vpop.f32.mrb[54].mxu1  ;;  %v963_v44 = vpop.f32.mrb[26].mxu0 }
 0x3e1   :  { %v5513_v47 = vpop.f32.mrb[55].mxu1  ;;  %1002 = vrot.lane.b32.xlu1 %v945_v31, %s4850_s15  ;;  %v965_v48 = vpop.f32.mrb[27].mxu0 }
 0x3e2   :  { %v5587_v23 = vpop.permute.xlu0 %2091  ;;  %v5589_v24 = vpop.permute.xlu1 %2086 }
 0x3e3   :  { %1457 = vrot.lane.b32.xlu0 %v1398_v26, %s4851_s16  ;;  %7054 = vst [vmem:[#allocation12_spill] sm:$0xff] %v5587_v23  ;;  %7055 = vst [vmem:[#allocation13_spill] sm:$0xff] %v5589_v24 }
 0x3e5   :  { %1459 = vrot.lane.b32.xlu1 %v1402_v30, %s4851_s16 }
 0x3e6   :  { %v1426_v49 = vpop.f32.mrb[56].mxu1  ;;  %v969_v51 = vpop.f32.mrb[28].mxu0 }
 0x3e7   :  { %v1428_v53 = vpop.f32.mrb[57].mxu1  ;;  %1043 = vrot.lane.b32.xlu0 %v949_v46, %s4852_s17  ;;  %v971_v54 = vpop.f32.mrb[29].mxu0 }
 0x3e8   :  { %v1430_v55 = vpop.f32.mrb[58].mxu1  ;;  %v973_v57 = vpop.f32.mrb[30].mxu0 }
 0x3e9   :  { %v1432_v59 = vpop.f32.mrb[59].mxu1  ;;  %1045 = vrot.lane.b32.xlu1 %v953_v35, %s4852_s17  ;;  %v975_v60 = vpop.f32.mrb[31].mxu0 }
 0x3ea   :  { %v5592_v27 = vpop.permute.xlu0 %4106  ;;  %v5595_v30 = vpop.permute.xlu1 %4101 }
 0x3eb   :  { %1051 = vrot.lane.b32.xlu0 %v951_v33, %s4852_s17  ;;  %7056 = vst [vmem:[#allocation14_spill] sm:$0xff] %v5592_v27  ;;  %7057 = vst [vmem:[#allocation15_spill] sm:$0xff] %v5595_v30 }
 0x3ed   :  { %1053 = vrot.lane.b32.xlu1 %v955_v37, %s4852_s17 }
 0x3ee   :  { %v1436_v61 = vpop.f32.mrb[60].mxu1  ;;  %v979_v63 = vpop.f32.mrb[32].mxu0 }
 0x3ef   :  { %v1438_v1 = vpop.f32.mrb[61].mxu1  ;;  %1047 = vrot.lane.b32.xlu0 %v959_v39, %s4852_s17  ;;  %v981_v2 = vpop.f32.mrb[33].mxu0 }
 0x3f0   :  { %v1440_v3 = vpop.f32.mrb[62].mxu1  ;;  %v983_v5 = vpop.f32.mrb[34].mxu0 }
 0x3f1   :  { %v1442_v7 = vpop.f32.mrb[63].mxu1  ;;  %1049 = vrot.lane.b32.xlu1 %v963_v44, %s4852_s17  ;;  %v985_v8 = vpop.f32.mrb[35].mxu0  ;;  %v4778_v44 = vld [vmem:[%s7007_s5] ss:$8 sps:$4 sm:$0xff]  }
 0x3f2   :  { %v5599_v31 = vpop.permute.xlu0 %4116  ;;  %v5602_v35 = vpop.permute.xlu1 %4111 }
 0x3f3   :  { %1055 = vrot.lane.b32.xlu0 %v961_v41, %s4852_s17  ;;  %7058 = vst [vmem:[#allocation16_spill] sm:$0xff] %v5599_v31  ;;  %7059 = vst [vmem:[#allocation17_spill] sm:$0xff] %v5602_v35 }
 0x3f5   :  { %1057 = vrot.lane.b32.xlu1 %v965_v48, %s4852_s17  ;;  %v4780_v48 = vld [vmem:[%s7007_s5 + $0x4] ss:$8 sps:$4 sm:$0xff]  }
 0x3f6   :  { %v4468_v13 = vpop.f32.mrb[64].mxu1  ;;  %v5606_v41 = vpop.permute.xlu0 %4138  ;;  %2634 = vmatprep.subr.bf16.mxu0 %v4780_v48 }
 0x3f7   :  { %v4469_v14 = vpop.f32.mrb[65].mxu1  ;;  %1097 = vrot.lane.b32.xlu0 %v969_v51, %s4853_s18  ;;  %7060 = vst [vmem:[#allocation18_spill] sm:$0xff] %v5606_v41  ;;  %2635 = vmatpush1.bf16.msra.mxu0 %v4778_v44  ;;  %v2568_v44 = vld [vmem:[%s7007_s5 + $0x30] sm:$0x11]  ;;  %v1015_v41 = vld [vmem:[%s7010_s8] sm:$0x3] }
 0x3f8   :  { %v4470_v42 = vadd.f32 %v4469_v14, %v4468_v13  ;;  %v4471_v50 = vpop.f32.mrb[66].mxu1  ;;  %v4346_v48 = vcombine.high %v2568_v44, %v2568_v44 }
 0x3f9   :  { %v4472_v52 = vpop.f32.mrb[67].mxu1  ;;  %1099 = vrot.lane.b32.xlu1 %v973_v57, %s4853_s18 }
 0x3fa   :  { %v2309_v56 = vpack.c.bf16 %v4470_v42, %v4470_v42 }
 0x3fb   :  { %1528 = vrot.lane.b32.xlu0 %v1426_v49, %s4854_s19  ;;  %v5615_v49 = vpop.permute.xlu1 %4133 }
 0x3fc   :  { %v2375_v58 = vsel %vm296_vm1, %v2309_v56, 0  ;;  %4667 = vmatprep.subr.msk.bf16.mxu1 %vm296_vm1, %v2309_v56  ;;  %7061 = vst [vmem:[#allocation19_spill] sm:$0xff] %v5615_v49 }
 0x3fd   :  { %4502 = vmatpush3.bf16.msra.mxu1 %v2375_v58  ;;  %1530 = vrot.lane.b32.xlu1 %v1430_v55, %s4854_s19  ;;  %v4781_v58 = vld [vmem:[%s7007_s5 + $0x10] ss:$8 sps:$4 sm:$0xff]  }
 0x3fe   :  { %4362 = vmatprep.subr.msk.bf16.mxu1 %vm296_vm1, %v5406_v9 }
 0x3ff   :  { %1105 = vrot.lane.b32.xlu0 %v971_v54, %s4853_s18 }
 0x400   :  { %4504 = vmatmul.mubr.msk.bf16.vlgmr.msra.gmra.mrb[68].mxu1 %vm271_vm0, %v4771_v62  ;;  %v4783_v62 = vld [vmem:[%s7007_s5 + $0x14] ss:$8 sps:$4 sm:$0xff]  }
 0x401   :  { %1107 = vrot.lane.b32.xlu1 %v975_v60, %s4853_s18  ;;  %4507 = vmatprep.mubr.msk.bf16.mxu1 %vm271_vm0, %v4772_v0 }
 0x402   :  { %2636 = vmatprep.subr.bf16.mxu0 %v4783_v62 }
 0x403   :  { %1536 = vrot.lane.b32.xlu0 %v1428_v53, %s4854_s19  ;;  %2637 = vmatpush1.bf16.msra.mxu0 %v4781_v58 }
 0x405   :  { %1538 = vrot.lane.b32.xlu1 %v1432_v59, %s4854_s19 }
 0x407   :  { %1101 = vrot.lane.b32.xlu0 %v979_v63, %s4853_s18 }
 0x408   :  { %4508 = vmatmul.mubr.msk.bf16.gmra.mrb[72].mxu1 %vm271_vm0, %v4773_v4 }
 0x409   :  { %1103 = vrot.lane.b32.xlu1 %v983_v5, %s4853_s18  ;;  %4511 = vmatprep.mubr.msk.bf16.mxu1 %vm271_vm0, %v4774_v6 }
 0x40b   :  { %1532 = vrot.lane.b32.xlu0 %v1436_v61, %s4854_s19 }
 0x40d   :  { %1534 = vrot.lane.b32.xlu1 %v1440_v3, %s4854_s19 }
 0x40f   :  { %1109 = vrot.lane.b32.xlu0 %v981_v2, %s4853_s18 }
 0x410   :  { %4512 = vmatmul.mubr.msk.bf16.gmra.mrb[76].mxu1 %vm271_vm0, %v4775_v10 }
 0x411   :  { %1111 = vrot.lane.b32.xlu1 %v985_v8, %s4853_s18  ;;  %4515 = vmatprep.mubr.msk.bf16.mxu1 %vm271_vm0, %v4776_v12 }
 0x413   :  { %1540 = vrot.lane.b32.xlu0 %v1438_v1, %s4854_s19 }
 0x415   :  { %1542 = vrot.lane.b32.xlu1 %v1442_v7, %s4854_s19 }
 0x418   :  { %4516 = vmatmul.mubr.msk.bf16.gmra.mrb[80].mxu1 %vm271_vm0, %v4777_v18 }
 0x419   :  { %2873 = vmatprep.mubr.bf16.mxu1 %v7014_v45  ;;  %v4282_v45 = vld [vmem:[%s7010_s8 + $0x8] sm:$0x3] }
 0x426   :  { %v1817_v25 = vpop.f32.mrb[36].mxu0 }
 0x427   :  { %1876 = vrot.lane.b32.xlu0 %v1817_v25, %s4855_s2  ;;  %v1819_v26 = vpop.f32.mrb[37].mxu0 }
 0x428   :  { %v1821_v28 = vpop.f32.mrb[38].mxu0 }
 0x429   :  { %1878 = vrot.lane.b32.xlu1 %v1821_v28, %s4855_s2  ;;  %v1823_v29 = vpop.f32.mrb[39].mxu0 }
 0x42b   :  { %1884 = vrot.lane.b32.xlu0 %v1819_v26, %s4855_s2 }
 0x42d   :  { %1886 = vrot.lane.b32.xlu1 %v1823_v29, %s4855_s2  ;;  %v4784_v29 = vld [vmem:[%s7007_s5 + $0x20] ss:$8 sps:$4 sm:$0xff]  }
 0x42e   :  { %v1827_v46 = vpop.f32.mrb[40].mxu0 }
 0x42f   :  { %1880 = vrot.lane.b32.xlu0 %v1827_v46, %s4855_s2  ;;  %v1829_v33 = vpop.f32.mrb[41].mxu0  ;;  %v4786_v46 = vld [vmem:[%s7007_s5 + $0x24] ss:$8 sps:$4 sm:$0xff]  }
 0x430   :  { %v1831_v37 = vpop.f32.mrb[42].mxu0  ;;  %2638 = vmatprep.subr.bf16.mxu0 %v4786_v46 }
 0x431   :  { %1882 = vrot.lane.b32.xlu1 %v1831_v37, %s4855_s2  ;;  %v1833_v39 = vpop.f32.mrb[43].mxu0  ;;  %2639 = vmatpush1.bf16.msra.mxu0 %v4784_v29 }
 0x432   :  { %4347 = vmatprep.subr.msk.bf16.mxu0 %vm552_vm2, %v4346_v48 }
 0x433   :  { %1888 = vrot.lane.b32.xlu0 %v1829_v33, %s4855_s2 }
 0x435   :  { %1890 = vrot.lane.b32.xlu1 %v1833_v39, %s4855_s2 }
 0x436   :  { %v1837_v51 = vpop.f32.mrb[44].mxu0 }
 0x437   :  { %1930 = vrot.lane.b32.xlu0 %v1837_v51, %s4856_s21  ;;  %v1839_v53 = vpop.f32.mrb[45].mxu0  ;;  %v4345_v51 = vcombine.low %v2568_v44, %v2568_v44 }
 0x438   :  { %v1841_v54 = vpop.f32.mrb[46].mxu0 }
 0x439   :  { %v5618_v55 = vpop.permute.xlu0 %988  ;;  %1932 = vrot.lane.b32.xlu1 %v1841_v54, %s4856_s21  ;;  %v1843_v57 = vpop.f32.mrb[47].mxu0  ;;  %v2629_v54 = vsel %vm552_vm2, %v4345_v51, 0 }
 0x43a   :  { %2641 = vmatpush1.bf16.msra.mxu0 %v2629_v54 }
 0x43b   :  { %v5621_v59 = vpop.permute.xlu1 %1447  ;;  %1938 = vrot.lane.b32.xlu0 %v1839_v53, %s4856_s21  ;;  %4383 = vmatprep.subr.msk.bf16.mxu0 %vm296_vm1, %v5406_v9 }
 0x43d   :  { %v5624_v60 = vpop.permute.xlu0 %1445  ;;  %1940 = vrot.lane.b32.xlu1 %v1843_v57, %s4856_s21 }
 0x43e   :  { %v1847_v61 = vpop.f32.mrb[48].mxu0 }
 0x43f   :  { %v5627_v63 = vpop.permute.xlu1 %998  ;;  %1934 = vrot.lane.b32.xlu0 %v1847_v61, %s4856_s21  ;;  %v1849_v1 = vpop.f32.mrb[49].mxu0 }
 0x440   :  { %v1851_v2 = vpop.f32.mrb[50].mxu0 }
 0x441   :  { %v5630_v3 = vpop.permute.xlu0 %996  ;;  %1936 = vrot.lane.b32.xlu1 %v1851_v2, %s4856_s21  ;;  %v1853_v5 = vpop.f32.mrb[51].mxu0 }
 0x443   :  { %v5633_v7 = vpop.permute.xlu1 %1455  ;;  %1942 = vrot.lane.b32.xlu0 %v1849_v1, %s4856_s21 }
 0x445   :  { %v5636_v8 = vpop.permute.xlu0 %1453  ;;  %1944 = vrot.lane.b32.xlu1 %v1853_v5, %s4856_s21 }
 0x446   :  { %v1857_v13 = vpop.f32.mrb[52].mxu0 }
 0x447   :  { %v5639_v14 = vpop.permute.xlu1 %992  ;;  %1984 = vrot.lane.b32.xlu0 %v1857_v13, %s4857_s22  ;;  %v1859_v42 = vpop.f32.mrb[53].mxu0 }
 0x448   :  { %v1861_v50 = vpop.f32.mrb[54].mxu0 }
 0x449   :  { %v5642_v52 = vpop.permute.xlu0 %990  ;;  %1986 = vrot.lane.b32.xlu1 %v1861_v50, %s4857_s22  ;;  %v1863_v56 = vpop.f32.mrb[55].mxu0 }
 0x44b   :  { %v5651_v0 = vpop.permute.xlu1 %994  ;;  %1992 = vrot.lane.b32.xlu0 %v1859_v42, %s4857_s22 }
 0x44d   :  { %v5654_v4 = vpop.permute.xlu0 %1449  ;;  %1994 = vrot.lane.b32.xlu1 %v1863_v56, %s4857_s22 }
 0x44e   :  { %v1867_v6 = vpop.f32.mrb[56].mxu0 }
 0x44f   :  { %v5657_v10 = vpop.permute.xlu1 %1451  ;;  %1988 = vrot.lane.b32.xlu0 %v1867_v6, %s4857_s22  ;;  %v1869_v12 = vpop.f32.mrb[57].mxu0 }
 0x450   :  { %v1871_v18 = vpop.f32.mrb[58].mxu0 }
 0x451   :  { %v5660_v25 = vpop.permute.xlu0 %1000  ;;  %1990 = vrot.lane.b32.xlu1 %v1871_v18, %s4857_s22  ;;  %v1873_v26 = vpop.f32.mrb[59].mxu0 }
 0x453   :  { %v5663_v28 = vpop.permute.xlu1 %1002  ;;  %1996 = vrot.lane.b32.xlu0 %v1869_v12, %s4857_s22 }
 0x455   :  { %v5672_v33 = vpop.permute.xlu0 %1457  ;;  %1998 = vrot.lane.b32.xlu1 %v1873_v26, %s4857_s22  ;;  %v1004_v26 = vlaneseq }
 0x457   :  { %v5675_v37 = vpop.permute.xlu1 %1459  ;;  %v1018_v44 = vshrl.u32 %v1004_v26, 7  ;;  %v5731_v35 = vand.u32 127, %v1004_v26  ;;  %v4260_v26 = vld [vmem:[%s7010_s8 + $0x2] sm:$0x3] }
 0x459   :  { %v5677_v39 = vpop.permute.xlu0 %1043  ;;  %v5722_v51 = vsub.s32 0, %v1018_v44  ;;  %v5724_v54 = vsub.s32 1, %v1018_v44  ;;  %v4281_v44 = vld [vmem:[%s7010_s8 + $0x6] sm:$0x3]  ;;  %vm1006_vm4 = vcmp.lt.s32.totalorder %v5731_v35, 17  ;;  %vm1461_vm5 = vcmp.lt.s32.totalorder %v5731_v35, 1 }
 0x45a   :  { %vm1059_vm6 = vcmp.lt.s32.totalorder %v5731_v35, 16  ;;  %vm1113_vm7 = vcmp.lt.s32.totalorder %v5731_v35, 15  ;;  %vm1544_vm8 = vcmp.lt.s32.totalorder %v5731_v35, 127  ;;  %vm1892_vm9 = vcmp.lt.s32.totalorder %v5731_v35, 113 }
 0x45b   :  { %v5682_v53 = vpop.permute.xlu1 %1045  ;;  %7063 = vst [vmem:[#allocation21_spill] sm:$0xff] %v5722_v51  ;;  %7064 = vst [vmem:[#allocation22_spill] sm:$0xff] %v5724_v54  ;;  %v1505_v27 = vrot.slane %v4282_v45, %v5722_v51  ;;  %v1509_v49 = vrot.slane %v4282_v45, %v5724_v54  ;;  %v5744_v9 = vrot.slane %v1015_v41, %v5722_v51  ;;  %vm1946_vm10 = vcmp.lt.s32.totalorder %v5731_v35, 112 }
 0x45c   :  { %v5751_v23 = vrot.slane %v1015_v41, %v5724_v54  ;;  %v5755_v45 = vrot.slane %v4281_v44, %v5722_v51  ;;  %v5769_v17 = vrot.slane %v4281_v44, %v5724_v54  ;;  %v4261_v41 = vld [vmem:[%s7010_s8 + $0x4] sm:$0x3]  ;;  %v4303_v44 = vld [vmem:[%s7010_s8 + $0xc] sm:$0x3]  ;;  %vm2000_vm11 = vcmp.lt.s32.totalorder %v5731_v35, 111 }
 0x45d   :  { %v5686_v57 = vpop.permute.xlu0 %1051  ;;  %v5760_v19 = vmul.f32 %v1505_v27, %v5494_v15  ;;  %v5763_v20 = vmul.f32 %v1509_v49, %v5496_v32  ;;  %v5766_v21 = vmul.f32 %v1505_v27, %v5499_v34  ;;  %v5778_v15 = vmul.f32 %v1509_v49, %v5501_v36 }
 0x45e   :  { %v5782_v32 = vrot.slane %v4260_v26, %v5722_v51  ;;  %v5785_v34 = vrot.slane %v4260_v26, %v5724_v54  ;;  %v5797_v36 = vmul.f32 %v1509_v49, %v5508_v40  ;;  %v5803_v26 = vmul.f32 %v1509_v49, %v5513_v47  ;;  %v4305_v40 = vld [vmem:[%s7010_s8 + $0x10] sm:$0x3] }
 0x45f   :  { %v5690_v61 = vpop.permute.xlu1 %1053  ;;  %7066 = vst [vmem:[#allocation24_spill] sm:$0xff] %v5766_v21  ;;  %7067 = vst [vmem:[#allocation25_spill] sm:$0xff] %v5778_v15  ;;  %v5807_v15 = vrot.slane %v4261_v41, %v5722_v51  ;;  %v5810_v21 = vrot.slane %v4261_v41, %v5724_v54  ;;  %v5824_v47 = vrot.slane %v4303_v44, %v5722_v51 }
 0x460   :  { %7070 = vst [vmem:[#allocation28_spill] sm:$0xff] %v5803_v26  ;;  %v5830_v49 = vrot.slane %v4304_v16, %v5722_v51  ;;  %v1007_v41 = vsel %vm1006_vm4, %v5618_v55, %v5630_v3 }
 0x461   :  { %v5692_v1 = vpop.permute.xlu0 %1047  ;;  %7071 = vst [vmem:[#allocation29_spill] sm:$0xff] %v5824_v47  ;;  %v5843_v47 = vrot.slane %v4304_v16, %v5724_v54  ;;  %v5861_v16 = vrot.slane %v4305_v40, %v5724_v54 }
 0x462   :  { %7073 = vst [vmem:[#allocation31_spill] sm:$0xff] %v5830_v49  ;;  %v1463_v49 = vsel %vm1461_vm5, %v5621_v59, %v5633_v7 }
 0x463   :  { %v5694_v2 = vpop.permute.xlu1 %1049  ;;  %7074 = vst [vmem:[#allocation32_spill] sm:$0xff] %v5843_v47  ;;  %7077 = vst [vmem:[#allocation35_spill] sm:$0xff] %v5861_v16  ;;  %v1009_v47 = vsel %vm1006_vm4, %v5639_v14, %v5660_v25 }
 0x465   :  { %v5696_v5 = vpop.permute.xlu0 %1055 }
 0x467   :  { %v5698_v13 = vpop.permute.xlu1 %1057 }
 0x469   :  { %v5700_v42 = vpop.permute.xlu0 %1097 }
 0x46b   :  { %v5702_v50 = vpop.permute.xlu1 %1099 }
 0x46d   :  { %v5704_v56 = vpop.permute.xlu0 %1528 }
 0x46f   :  { %v5706_v58 = vpop.permute.xlu1 %1530 }
 0x471   :  { %v5708_v62 = vpop.permute.xlu0 %1105 }
 0x473   :  { %v5710_v6 = vpop.permute.xlu1 %1107 }
 0x475   :  { %v5712_v12 = vpop.permute.xlu0 %1536 }
 0x477   :  { %v5714_v18 = vpop.permute.xlu1 %1538 }
 0x479   :  { %v5716_v29 = vpop.permute.xlu0 %1101 }
 0x47b   :  { %v5718_v46 = vpop.permute.xlu1 %1103 }
 0x47d   :  { %v5720_v48 = vpop.permute.xlu0 %1532 }
 0x47e   :  { %7062 = vst [vmem:[#allocation20_spill] sm:$0xff] %v5720_v48  ;;  %v5800_v48 = vmul.f32 %v1505_v27, %v5511_v43  ;;  %v5821_v43 = vrot.slane %v4283_v22, %v5724_v54 }
 0x47f   :  { %v5729_v31 = vpop.permute.xlu1 %1534 }
 0x480   :  { %7065 = vst [vmem:[#allocation23_spill] sm:$0xff] %v5729_v31  ;;  %v5794_v31 = vmul.f32 %v1505_v27, %v5506_v38  ;;  %7069 = vst [vmem:[#allocation27_spill] sm:$0xff] %v5800_v48  ;;  %v5813_v38 = vrot.slane %v4283_v22, %v5722_v51  ;;  %v5827_v27 = vrot.slane %v4303_v44, %v5724_v54  ;;  %v5847_v44 = vsel %vm296_vm1, %v5410_v11, 0 }
 0x481   :  { %v5741_v30 = vpop.permute.xlu0 %1109  ;;  %v1011_v22 = vsel %vm1006_vm4, %v5630_v3, %v5618_v55  ;;  %7075 = vst [vmem:[#allocation33_spill] sm:$0xff] %v5847_v44  ;;  %v5858_v55 = vrot.slane %v4305_v40, %v5722_v51  ;;  %2842 = vmatpush1.bf16.msra.mxu1 %v5847_v44  ;;  %v1462_v11 = vsel %vm1461_vm5, %v5624_v60, %v5636_v8 }
 0x482   :  { %7068 = vst [vmem:[#allocation26_spill] sm:$0xff] %v5794_v31  ;;  %7072 = vst [vmem:[#allocation30_spill] sm:$0xff] %v5827_v27  ;;  %v1467_v27 = vsel %vm1461_vm5, %v5633_v7, %v5621_v59  ;;  %v1466_v3 = vsel %vm1461_vm5, %v5636_v8, %v5624_v60  ;;  %v1060_v59 = vsel %vm1059_vm6, %v5677_v39, %v5686_v57 }
 0x483   :  { %v5757_v24 = vpop.permute.xlu1 %1111  ;;  %7076 = vst [vmem:[#allocation34_spill] sm:$0xff] %v5858_v55  ;;  %v1064_v7 = vsel %vm1059_vm6, %v5686_v57, %v5677_v39  ;;  %v1027_v54 = vmul.f32 %v5744_v9, %v1011_v22  ;;  %v1028_v51 = vmul.f32 %v5751_v23, %v1007_v41  ;;  %v1008_v60 = vsel %vm1006_vm4, %v5642_v52, %v5627_v63 }
 0x484   :  { %v1012_v8 = vsel %vm1006_vm4, %v5627_v63, %v5642_v52  ;;  %v5893_v44 = vmul.f32 %v5755_v45, %v1467_v27  ;;  %v5896_v39 = vmul.f32 %v5769_v17, %v1463_v49  ;;  %v1061_v57 = vsel %vm1059_vm6, %v5682_v53, %v5690_v61 }
 0x485   :  { %v5815_v31 = vpop.permute.xlu0 %1540  ;;  %v1065_v41 = vsel %vm1059_vm6, %v5690_v61, %v5682_v53  ;;  %v1483_v63 = vmul.f32 %v5755_v45, %v1466_v3  ;;  %v1484_v52 = vmul.f32 %v5769_v17, %v1462_v11  ;;  %v1081_v27 = vmul.f32 %v5782_v32, %v1064_v7 }
 0x486   :  { %v1082_v49 = vmul.f32 %v5785_v34, %v1060_v59  ;;  %v1029_v16 = vmul.f32 %v5744_v9, %v1012_v8  ;;  %v1030_v55 = vmul.f32 %v5751_v23, %v1008_v60  ;;  %v1013_v53 = vsel %vm1006_vm4, %v5660_v25, %v5639_v14 }
 0x487   :  { %v5840_v26 = vpop.permute.xlu1 %1542  ;;  %v1083_v11 = vmul.f32 %v5782_v32, %v1065_v41  ;;  %v1084_v3 = vmul.f32 %v5785_v34, %v1061_v57  ;;  %v1114_v59 = vsel %vm1113_vm7, %v5700_v42, %v5708_v62  ;;  %v1118_v7 = vsel %vm1113_vm7, %v5708_v62, %v5700_v42 }
 0x488   :  { %v1010_v14 = vsel %vm1006_vm4, %v5651_v0, %v5663_v28  ;;  %v1014_v25 = vsel %vm1006_vm4, %v5663_v28, %v5651_v0  ;;  %v1115_v60 = vsel %vm1113_vm7, %v5702_v50, %v5710_v6  ;;  %v1119_v42 = vsel %vm1113_vm7, %v5710_v6, %v5702_v50 }
 0x489   :  { %v1089_v8 = vadd.f32 %v1081_v27, %v1027_v54  ;;  %v1090_v57 = vadd.f32 %v1082_v49, %v1028_v51  ;;  %v1062_v41 = vsel %vm1059_vm6, %v5692_v1, %v5696_v5  ;;  %v1066_v0 = vsel %vm1059_vm6, %v5696_v5, %v5692_v1 }
 0x48a   :  { %v1063_v28 = vsel %vm1059_vm6, %v5694_v2, %v5698_v13  ;;  %v1067_v50 = vsel %vm1059_vm6, %v5698_v13, %v5694_v2  ;;  %v1135_v6 = vmul.f32 %v5807_v15, %v1118_v7  ;;  %v1136_v51 = vmul.f32 %v5810_v21, %v1114_v59 }
 0x48b   :  { %v1091_v27 = vadd.f32 %v1083_v11, %v1029_v16  ;;  %v1092_v1 = vadd.f32 %v1084_v3, %v1030_v55  ;;  %v1137_v5 = vmul.f32 %v5807_v15, %v1119_v42  ;;  %v1138_v49 = vmul.f32 %v5810_v21, %v1115_v60 }
 0x48c   :  { %v1031_v48 = vmul.f32 %v5744_v9, %v1013_v53  ;;  %v1086_v2 = vmul.f32 %v5785_v34, %v1062_v41  ;;  %v1033_v59 = vmul.f32 %v5744_v9, %v1014_v25  ;;  %v1034_v7 = vmul.f32 %v5751_v23, %v1010_v14 }
 0x48d   :  { %v1087_v55 = vmul.f32 %v5782_v32, %v1067_v50  ;;  %v1088_v16 = vmul.f32 %v5785_v34, %v1063_v28  ;;  %v1143_v11 = vadd.f32 %v1135_v6, %v1089_v8  ;;  %v1144_v3 = vadd.f32 %v1136_v51, %v1090_v57 }
 0x48e   :  { %v1120_v53 = vsel %vm1113_vm7, %v5741_v30, %v5716_v29  ;;  %v1145_v9 = vadd.f32 %v1137_v5, %v1091_v27  ;;  %v1121_v34 = vsel %vm1113_vm7, %v5757_v24, %v5718_v46  ;;  %v1464_v14 = vsel %vm1461_vm5, %v5654_v4, %v5672_v33 }
 0x48f   :  { %v1095_v8 = vadd.f32 %v1087_v55, %v1033_v59  ;;  %v1096_v57 = vadd.f32 %v1088_v16, %v1034_v7  ;;  %v1139_v41 = vmul.f32 %v5807_v15, %v1120_v53  ;;  %v1141_v28 = vmul.f32 %v5807_v15, %v1121_v34  ;;  %v7081_v7 = vld [vmem:[#allocation25_spill] sm:$0xff] }
 0x490   :  { %v1469_v15 = vsel %vm1461_vm5, %v5675_v37, %v5657_v10 }
 0x491   :  { %v1489_v5 = vmul.f32 %v5755_v45, %v1469_v15 }
 0x499   :  { %v5880_v40 = vpop.permute.xlu0 %1876 }
 0x49b   :  { %v5906_v22 = vpop.permute.xlu1 %1878 }
 0x49c   :  { %7078 = vst [vmem:[#allocation36_spill] sm:$0xff] %v5906_v22  ;;  %v1032_v22 = vmul.f32 %v5751_v23, %v1009_v47  ;;  %v1116_v47 = vsel %vm1113_vm7, %v5716_v29, %v5741_v30  ;;  %v1146_v23 = vadd.f32 %v1138_v49, %v1092_v1  ;;  %v1468_v30 = vsel %vm1461_vm5, %v5672_v33, %v5654_v4 }
 0x49d   :  { %v5922_v61 = vpop.permute.xlu0 %1884  ;;  %v1487_v4 = vmul.f32 %v5755_v45, %v1468_v30  ;;  %v1488_v33 = vmul.f32 %v5769_v17, %v1464_v14 }
 0x49e   :  { %v1094_v25 = vadd.f32 %v1086_v2, %v1032_v22  ;;  %v1494_v22 = vadd.f32 %v5896_v39, %v1146_v23  ;;  %v7080_v2 = vld [vmem:[#allocation24_spill] sm:$0xff] }
 0x49f   :  { %v5950_v62 = vpop.permute.xlu1 %1886 }
 0x4a0   :  { %7079 = vst [vmem:[#allocation37_spill] sm:$0xff] %v5950_v62  ;;  %v1085_v62 = vmul.f32 %v5782_v32, %v1066_v0  ;;  %v1117_v32 = vsel %vm1113_vm7, %v5718_v46, %v5757_v24  ;;  %v1140_v24 = vmul.f32 %v5810_v21, %v1116_v47  ;;  %v1491_v46 = vadd.f32 %v1483_v63, %v1143_v11  ;;  %v7082_v47 = vld [vmem:[#allocation20_spill] sm:$0xff] }
 0x4a1   :  { %v5971_v54 = vpop.permute.xlu0 %1880  ;;  %v1492_v0 = vadd.f32 %v1484_v52, %v1144_v3  ;;  %v1142_v50 = vmul.f32 %v5810_v21, %v1117_v32  ;;  %v1545_v21 = vsel %vm1544_vm8, %v5704_v56, %v5712_v12  ;;  %v1546_v63 = vsel %vm1544_vm8, %v5706_v58, %v5714_v18 }
 0x4a2   :  { %v1093_v29 = vadd.f32 %v1085_v62, %v1031_v48  ;;  %v1493_v48 = vadd.f32 %v5893_v44, %v1145_v9  ;;  %v1465_v62 = vsel %vm1461_vm5, %v5657_v10, %v5675_v37  ;;  %v1549_v44 = vsel %vm1544_vm8, %v5712_v12, %v5704_v56 }
 0x4a3   :  { %v5979_v13 = vpop.permute.xlu1 %1882  ;;  %v1550_v10 = vsel %vm1544_vm8, %v5714_v18, %v5706_v58  ;;  %v1148_v52 = vadd.f32 %v1140_v24, %v1094_v25  ;;  %v1520_v51 = vadd.f32 %v5760_v19, %v1491_v46  ;;  %v1521_v27 = vadd.f32 %v5763_v20, %v1492_v0  ;;  %v7084_v0 = vld [vmem:[#allocation26_spill] sm:$0xff] }
 0x4a4   :  { %v1147_v37 = vadd.f32 %v1139_v41, %v1093_v29  ;;  %v1149_v56 = vadd.f32 %v1141_v28, %v1095_v8  ;;  %v1150_v12 = vadd.f32 %v1142_v50, %v1096_v57  ;;  %v1490_v49 = vmul.f32 %v5769_v17, %v1465_v62  ;;  %v7083_v29 = vld [vmem:[#allocation23_spill] sm:$0xff] }
 0x4a5   :  { %v5993_v60 = vpop.permute.xlu0 %1888  ;;  %v1522_v59 = vadd.f32 %v7080_v2, %v1493_v48  ;;  %v1523_v55 = vadd.f32 %v7081_v7, %v1494_v22  ;;  %v1566_v16 = vmul.f32 %v5813_v38, %v1545_v21  ;;  %v1567_v58 = vmul.f32 %v5821_v43, %v1549_v44  ;;  %v7087_v22 = vld [vmem:[#allocation27_spill] sm:$0xff] }
 0x4a6   :  { %v1568_v18 = vmul.f32 %v5813_v38, %v1546_v63  ;;  %v1569_v19 = vmul.f32 %v5821_v43, %v1550_v10  ;;  %v1495_v11 = vadd.f32 %v1487_v4, %v1147_v37  ;;  %v1496_v3 = vadd.f32 %v1488_v33, %v1148_v52  ;;  %v7086_v4 = vld [vmem:[#allocation36_spill] sm:$0xff]  ;;  %v7090_v10 = vld [vmem:[#allocation30_spill] sm:$0xff] }
 0x4a7   :  { %v6011_v42 = vpop.permute.xlu1 %1890  ;;  %v1547_v17 = vsel %vm1544_vm8, %v7082_v47, %v5815_v31  ;;  %v1551_v45 = vsel %vm1544_vm8, %v5815_v31, %v7082_v47  ;;  %v1574_v53 = vadd.f32 %v1566_v16, %v1520_v51  ;;  %v1575_v9 = vadd.f32 %v1567_v58, %v1521_v27  ;;  %v7085_v50 = vld [vmem:[#allocation37_spill] sm:$0xff] }
 0x4a8   :  { %v1497_v23 = vadd.f32 %v1489_v5, %v1149_v56  ;;  %v1498_v32 = vadd.f32 %v1490_v49, %v1150_v12  ;;  %v1576_v14 = vadd.f32 %v1568_v18, %v1522_v59  ;;  %v1577_v30 = vadd.f32 %v1569_v19, %v1523_v55  ;;  %v7091_v59 = vld [vmem:[#allocation31_spill] sm:$0xff]  ;;  %v7092_v55 = vld [vmem:[#allocation32_spill] sm:$0xff] }
 0x4a9   :  { %v1931_v6 = vpop.permute.xlu0 %1930  ;;  %v1548_v25 = vsel %vm1544_vm8, %v7083_v29, %v5840_v26  ;;  %v1552_v8 = vsel %vm1544_vm8, %v5840_v26, %v7083_v29  ;;  %v1570_v57 = vmul.f32 %v5813_v38, %v1547_v17  ;;  %v1571_v31 = vmul.f32 %v5821_v43, %v1551_v45 }
 0x4aa   :  { %v1893_v41 = vsel %vm1892_vm9, %v5880_v40, %v5922_v61  ;;  %v1897_v24 = vsel %vm1892_vm9, %v5922_v61, %v5880_v40  ;;  %v1524_v28 = vadd.f32 %v7084_v0, %v1495_v11  ;;  %v1525_v26 = vadd.f32 %v5797_v36, %v1496_v3  ;;  %v7088_v40 = vld [vmem:[#allocation28_spill] sm:$0xff]  ;;  %v7089_v36 = vld [vmem:[#allocation29_spill] sm:$0xff] }
 0x4ab   :  { %v1933_v39 = vpop.permute.xlu1 %1932  ;;  %v1894_v33 = vsel %vm1892_vm9, %v7086_v4, %v7085_v50  ;;  %v1898_v48 = vsel %vm1892_vm9, %v7085_v50, %v7086_v4  ;;  %v1526_v62 = vadd.f32 %v7087_v22, %v1497_v23  ;;  %v1527_v61 = vadd.f32 %v7088_v40, %v1498_v32 }
 0x4ac   :  { %v1572_v15 = vmul.f32 %v5813_v38, %v1548_v25  ;;  %v1573_v21 = vmul.f32 %v5821_v43, %v1552_v8  ;;  %v1914_v63 = vmul.f32 %v7089_v36, %v1893_v41  ;;  %v1915_v37 = vmul.f32 %v7090_v10, %v1897_v24  ;;  %v7093_v24 = vld [vmem:[#allocation34_spill] sm:$0xff] }
 0x4ad   :  { %v1939_v1 = vpop.permute.xlu0 %1938  ;;  %v1916_v27 = vmul.f32 %v7089_v36, %v1894_v33  ;;  %v1917_v56 = vmul.f32 %v7090_v10, %v1898_v48  ;;  %v1578_v5 = vadd.f32 %v1570_v57, %v1524_v28  ;;  %v1579_v49 = vadd.f32 %v1571_v31, %v1525_v26  ;;  %v7094_v28 = vld [vmem:[#allocation35_spill] sm:$0xff] }
 0x4ae   :  { %v1947_v52 = vsel %vm1946_vm10, %v1931_v6, %v1939_v1  ;;  %v1951_v51 = vsel %vm1946_vm10, %v1939_v1, %v1931_v6  ;;  %v1895_v2 = vsel %vm1892_vm9, %v5971_v54, %v5993_v60  ;;  %v1899_v6 = vsel %vm1892_vm9, %v5993_v60, %v5971_v54 }
 0x4af   :  { %v1941_v20 = vpop.permute.xlu1 %1940  ;;  %v1896_v1 = vsel %vm1892_vm9, %v5979_v13, %v6011_v42  ;;  %v1968_v7 = vmul.f32 %v7091_v59, %v1947_v52  ;;  %v1969_v16 = vmul.f32 %v7092_v55, %v1951_v51  ;;  %v1580_v18 = vadd.f32 %v1572_v15, %v1526_v62 }
 0x4b0   :  { %v1948_v38 = vsel %vm1946_vm10, %v1933_v39, %v1941_v20  ;;  %v1952_v43 = vsel %vm1946_vm10, %v1941_v20, %v1933_v39  ;;  %v1900_v39 = vsel %vm1892_vm9, %v6011_v42, %v5979_v13  ;;  %v1581_v19 = vadd.f32 %v1573_v21, %v1527_v61 }
 0x4b1   :  { %v1935_v34 = vpop.permute.xlu0 %1934  ;;  %v1970_v20 = vmul.f32 %v7091_v59, %v1948_v38  ;;  %v1971_v54 = vmul.f32 %v7092_v55, %v1952_v43  ;;  %v1922_v60 = vadd.f32 %v1914_v63, %v1574_v53  ;;  %v1923_v11 = vadd.f32 %v1915_v37, %v1575_v9  ;;  %v7095_v63 = vld [vmem:[#allocation6_spill] sm:$0xff] }
 0x4b2   :  { %v1924_v3 = vadd.f32 %v1916_v27, %v1576_v14  ;;  %v1925_v47 = vadd.f32 %v1917_v56, %v1577_v30  ;;  %v1918_v45 = vmul.f32 %v7089_v36, %v1895_v2  ;;  %v1919_v13 = vmul.f32 %v7090_v10, %v1899_v6  ;;  %v7096_v2 = vld [vmem:[#allocation11_spill] sm:$0xff] }
 0x4b3   :  { %v1937_v46 = vpop.permute.xlu1 %1936  ;;  %v1920_v42 = vmul.f32 %v7089_v36, %v1896_v1  ;;  %v1921_v23 = vmul.f32 %v7090_v10, %v1900_v39  ;;  %v1976_v32 = vadd.f32 %v1968_v7, %v1922_v60  ;;  %v1977_v29 = vadd.f32 %v1969_v16, %v1923_v11 }
 0x4b4   :  { %v1978_v14 = vadd.f32 %v1970_v20, %v1924_v3  ;;  %v1979_v30 = vadd.f32 %v1971_v54, %v1925_v47  ;;  %v1926_v15 = vadd.f32 %v1918_v45, %v1578_v5  ;;  %v1927_v21 = vadd.f32 %v1919_v13, %v1579_v49  ;;  %v7097_v49 = vld [vmem:[#allocation7_spill] sm:$0xff]  ;;  %v7098_v20 = vld [vmem:[#allocation10_spill] sm:$0xff] }
 0x4b5   :  { %v1943_v44 = vpop.permute.xlu0 %1942  ;;  %v1928_v56 = vadd.f32 %v1920_v42, %v1580_v18  ;;  %v1929_v38 = vadd.f32 %v1921_v23, %v1581_v19 }
 0x4b6   :  { %v1949_v25 = vsel %vm1946_vm10, %v1935_v34, %v1943_v44  ;;  %v1953_v53 = vsel %vm1946_vm10, %v1943_v44, %v1935_v34 }
 0x4b7   :  { %v1945_v12 = vpop.permute.xlu1 %1944  ;;  %v1972_v50 = vmul.f32 %v7091_v59, %v1949_v25  ;;  %v1973_v4 = vmul.f32 %v7092_v55, %v1953_v53 }
 0x4b8   :  { %v1950_v31 = vsel %vm1946_vm10, %v1937_v46, %v1945_v12  ;;  %v1954_v41 = vsel %vm1946_vm10, %v1945_v12, %v1937_v46 }
 0x4b9   :  { %v1985_v58 = vpop.permute.xlu0 %1984  ;;  %v1974_v44 = vmul.f32 %v7091_v59, %v1950_v31  ;;  %v1975_v36 = vmul.f32 %v7092_v55, %v1954_v41  ;;  %v1980_v43 = vadd.f32 %v1972_v50, %v1926_v15  ;;  %v1981_v12 = vadd.f32 %v1973_v4, %v1927_v21  ;;  %v2477_v15 = vld [vmem:[%s7005_s3 + $0x18] sm:$0xff] }
 0x4bb   :  { %v1987_v17 = vpop.permute.xlu1 %1986  ;;  %v1982_v7 = vadd.f32 %v1974_v44, %v1928_v56  ;;  %v1983_v55 = vadd.f32 %v1975_v36, %v1929_v38  ;;  %v2506_v36 = vld [vmem:[%s7006_s4] sm:$0xff]  ;;  %v2507_v38 = vld [vmem:[%s7006_s4 + $0x8] sm:$0xff] }
 0x4bd   :  { %v1993_v9 = vpop.permute.xlu0 %1992 }
 0x4be   :  { %v2001_v8 = vsel %vm2000_vm11, %v1985_v58, %v1993_v9  ;;  %v2005_v57 = vsel %vm2000_vm11, %v1993_v9, %v1985_v58 }
 0x4bf   :  { %v2022_v0 = vmul.f32 %v7093_v24, %v2001_v8  ;;  %v2023_v26 = vmul.f32 %v7094_v28, %v2005_v57  ;;  %v1995_v34 = vpop.permute.xlu1 %1994  ;;  %v7100_v57 = vld [vmem:[#allocation8_spill] sm:$0xff] }
 0x4c0   :  { %v2002_v33 = vsel %vm2000_vm11, %v1987_v17, %v1995_v34  ;;  %v2006_v48 = vsel %vm2000_vm11, %v1995_v34, %v1987_v17  ;;  %v7102_v34 = vld [vmem:[#allocation12_spill] sm:$0xff] }
 0x4c1   :  { %v2030_v22 = vadd.f32 %v2022_v0, %v1976_v32  ;;  %v2031_v62 = vadd.f32 %v2023_v26, %v1977_v29  ;;  %v2024_v40 = vmul.f32 %v7093_v24, %v2002_v33  ;;  %v2025_v46 = vmul.f32 %v7094_v28, %v2006_v48  ;;  %v1989_v61 = vpop.permute.xlu0 %1988  ;;  %v7101_v0 = vld [vmem:[#allocation13_spill] sm:$0xff] }
 0x4c3   :  { %v2062_v10 = vmul.f32 %v7095_v63, %v2030_v22  ;;  %v2063_v37 = vmul.f32 %v7095_v63, %v2031_v62  ;;  %v2032_v52 = vadd.f32 %v2024_v40, %v1978_v14  ;;  %v2033_v51 = vadd.f32 %v2025_v46, %v1979_v30  ;;  %v1991_v27 = vpop.permute.xlu1 %1990  ;;  %v7099_v14 = vld [vmem:[#allocation9_spill] sm:$0xff]  ;;  %v2476_v62 = vld [vmem:[%s7005_s3 + $0x10] sm:$0xff]  ;;  %v2475_v63 = vld [vmem:[%s7005_s3 + $0x8] sm:$0xff] }
 0x4c4   :  { %v2474_v40 = vld [vmem:[%s7005_s3] sm:$0xff] }
 0x4c5   :  { %v2094_v6 = vadd.f32 %v7096_v2, %v2062_v10  ;;  %v2095_v5 = vadd.f32 %v7096_v2, %v2063_v37  ;;  %v2064_v1 = vmul.f32 %v7097_v49, %v2032_v52  ;;  %v2065_v39 = vmul.f32 %v7097_v49, %v2033_v51  ;;  %v1997_v59 = vpop.permute.xlu0 %1996  ;;  %v2509_v52 = vld [vmem:[%s7006_s4 + $0x18] sm:$0xff] }
 0x4c6   :  { %v2003_v16 = vsel %vm2000_vm11, %v1989_v61, %v1997_v59  ;;  %v2007_v58 = vsel %vm2000_vm11, %v1997_v59, %v1989_v61  ;;  %v2508_v61 = vld [vmem:[%s7006_s4 + $0x10] sm:$0xff] }
 0x4c7   :  { %v2102_v18 = vmax.f32 %v2094_v6, 0.0  ;;  %v2103_v19 = vmax.f32 %v2095_v5, 0.0  ;;  %v2096_v54 = vadd.f32 %v7098_v20, %v2064_v1  ;;  %v2097_v60 = vadd.f32 %v7098_v20, %v2065_v39  ;;  %v1999_v11 = vpop.permute.xlu1 %1998  ;;  %v2480_v5 = vld [vmem:[%s7005_s3 + $0x30] sm:$0xff]  ;;  %v2478_v39 = vld [vmem:[%s7005_s3 + $0x20] sm:$0xff] }
 0x4c8   :  { %v2026_v3 = vmul.f32 %v7093_v24, %v2003_v16  ;;  %v2027_v47 = vmul.f32 %v7094_v28, %v2007_v58  ;;  %v2004_v17 = vsel %vm2000_vm11, %v1991_v27, %v1999_v11  ;;  %v2008_v45 = vsel %vm2000_vm11, %v1999_v11, %v1991_v27  ;;  %v2512_v16 = vld [vmem:[%s7006_s4 + $0x30] sm:$0xff]  ;;  %v2481_v58 = vld [vmem:[%s7005_s3 + $0x38] sm:$0xff] }
 0x4c9   :  { %2110 = vst [vmem:[#allocation2] sm:$0xff] %v2102_v18  ;;  %2111 = vst [vmem:[#allocation2 + $0x8] sm:$0xff] %v2103_v19  ;;  %v2104_v13 = vmax.f32 %v2096_v54, 0.0  ;;  %v2105_v42 = vmax.f32 %v2097_v60, 0.0  ;;  %v2028_v23 = vmul.f32 %v7093_v24, %v2004_v17  ;;  %v2029_v32 = vmul.f32 %v7094_v28, %v2008_v45  ;;  %v2510_v54 = vld [vmem:[%s7006_s4 + $0x20] sm:$0xff]  ;;  %v2479_v60 = vld [vmem:[%s7005_s3 + $0x28] sm:$0xff] }
 0x4ca   :  { %v2034_v29 = vadd.f32 %v2026_v3, %v1980_v43  ;;  %v2035_v25 = vadd.f32 %v2027_v47, %v1981_v12  ;;  %v2513_v17 = vld [vmem:[%s7006_s4 + $0x38] sm:$0xff] }
 0x4cb   :  { %2112 = vst [vmem:[#allocation2 + $0x10] sm:$0xff] %v2104_v13  ;;  %2113 = vst [vmem:[#allocation2 + $0x18] sm:$0xff] %v2105_v42  ;;  %v2036_v53 = vadd.f32 %v2028_v23, %v1982_v7  ;;  %v2037_v9 = vadd.f32 %v2029_v32, %v1983_v55  ;;  %v2511_v23 = vld [vmem:[%s7006_s4 + $0x28] sm:$0xff] }
 0x4cc   :  { %v2066_v30 = vmul.f32 %v7099_v14, %v2034_v29  ;;  %v2067_v8 = vmul.f32 %v7099_v14, %v2035_v25  ;;  %v7104_v14 = vld [vmem:[#allocation33_spill] sm:$0xff] }
 0x4cd   :  { %v2068_v31 = vmul.f32 %v7100_v57, %v2036_v53  ;;  %v2069_v41 = vmul.f32 %v7100_v57, %v2037_v9  ;;  %v7103_v9 = vmov 0   ;;  %v2484_v57 = vld [vmem:[%s7005_s3 + $0x50] sm:$0xff] }
 0x4ce   :  { %v2098_v26 = vadd.f32 %v7101_v0, %v2066_v30  ;;  %v2099_v24 = vadd.f32 %v7101_v0, %v2067_v8 }
 0x4cf   :  { %v2100_v28 = vadd.f32 %v7102_v34, %v2068_v31  ;;  %v2101_v50 = vadd.f32 %v7102_v34, %v2069_v41  ;;  %v2482_v41 = vld [vmem:[%s7005_s3 + $0x40] sm:$0xff]  ;;  %v2485_v34 = vld [vmem:[%s7005_s3 + $0x58] sm:$0xff] }
 0x4d0   :  { %v2106_v4 = vmax.f32 %v2098_v26, 0.0  ;;  %v2107_v33 = vmax.f32 %v2099_v24, 0.0  ;;  %v2516_v24 = vld [vmem:[%s7006_s4 + $0x50] sm:$0xff] }
 0x4d1   :  { %v2108_v48 = vmax.f32 %v2100_v28, 0.0  ;;  %v2109_v22 = vmax.f32 %v2101_v50, 0.0 }
 0x4d2   :  { %2114 = vst [vmem:[#allocation2 + $0x20] sm:$0xff] %v2106_v4  ;;  %2115 = vst [vmem:[#allocation2 + $0x28] sm:$0xff] %v2107_v33  ;;  %v2514_v33 = vld [vmem:[%s7006_s4 + $0x40] sm:$0xff] }
 0x4d3   :  { %2116 = vst [vmem:[#allocation2 + $0x30] sm:$0xff] %v2108_v48  ;;  %2117 = vst [vmem:[#allocation2 + $0x38] sm:$0xff] %v2109_v22  ;;  %v4505_v46 = vpop.f32.mrb[68].mxu1  ;;  %v2483_v48 = vld [vmem:[%s7005_s3 + $0x48] sm:$0xff] }
 0x4d4   :  { %v2492_v21 = vmul.f32 %v4505_v46, %v2476_v62  ;;  %v2411_v44 = vpop.f32.mrb[69].mxu1  ;;  %v2517_v46 = vld [vmem:[%s7006_s4 + $0x58] sm:$0xff] }
 0x4d5   :  { %v2490_v10 = vmul.f32 %v2474_v40, %v2411_v44  ;;  %v4506_v37 = vpop.f32.mrb[70].mxu1  ;;  %v2515_v44 = vld [vmem:[%s7006_s4 + $0x48] sm:$0xff] }
 0x4d6   :  { %v2524_v51 = vadd.f32 %v2508_v61, %v2492_v21  ;;  %v2493_v27 = vmul.f32 %v4506_v37, %v2477_v15  ;;  %v2414_v56 = vpop.f32.mrb[71].mxu1 }
 0x4d7   :  { %v2522_v43 = vadd.f32 %v2506_v36, %v2490_v10  ;;  %v2491_v12 = vmul.f32 %v2475_v63, %v2414_v56 }
 0x4d8   :  { %v2525_v2 = vadd.f32 %v2509_v52, %v2493_v27  ;;  %v2540_v49 = vmax.f32 %v2524_v51, 0.0  ;;  %v2488_v27 = vld [vmem:[%s7005_s3 + $0x70] sm:$0xff] }
 0x4d9   :  { %v2523_v6 = vadd.f32 %v2507_v38, %v2491_v12  ;;  %v2538_v59 = vmax.f32 %v2522_v43, 0.0  ;;  %v2486_v38 = vld [vmem:[%s7005_s3 + $0x60] sm:$0xff] }
 0x4da   :  { %v2541_v1 = vmax.f32 %v2525_v2, 0.0  ;;  %v2520_v2 = vld [vmem:[%s7006_s4 + $0x70] sm:$0xff] }
 0x4db   :  { %v2539_v7 = vmax.f32 %v2523_v6, 0.0  ;;  %v4509_v55 = vpop.f32.mrb[72].mxu1  ;;  %v2489_v6 = vld [vmem:[%s7005_s3 + $0x78] sm:$0xff] }
 0x4dc   :  { %v2555_v18 = vpack.c.bf16 %v2541_v1, %v2540_v49  ;;  %v2496_v19 = vmul.f32 %v4509_v55, %v2480_v5  ;;  %v2427_v20 = vpop.f32.mrb[73].mxu1 }
 0x4dd   :  { %v2554_v11 = vpack.c.bf16 %v2539_v7, %v2538_v59  ;;  %v2494_v3 = vmul.f32 %v2478_v39, %v2427_v20  ;;  %v4510_v47 = vpop.f32.mrb[74].mxu1  ;;  %v2518_v39 = vld [vmem:[%s7006_s4 + $0x60] sm:$0xff]  ;;  %v2487_v59 = vld [vmem:[%s7005_s3 + $0x68] sm:$0xff] }
 0x4de   :  { %v2528_v45 = vadd.f32 %v2512_v16, %v2496_v19  ;;  %v2497_v13 = vmul.f32 %v4510_v47, %v2481_v58  ;;  %v2430_v42 = vpop.f32.mrb[75].mxu1  ;;  %v2521_v58 = vld [vmem:[%s7006_s4 + $0x78] sm:$0xff] }
 0x4df   :  { %4348 = vmatmul.mubr.msk.bf16.vlgmr.msra.gmra.mrb[60].mxu0 %vm527_vm3, %v2554_v11  ;;  %v2526_v32 = vadd.f32 %v2510_v54, %v2494_v3  ;;  %v2495_v29 = vmul.f32 %v2479_v60, %v2430_v42  ;;  %v2519_v54 = vld [vmem:[%s7006_s4 + $0x68] sm:$0xff] }
 0x4e0   :  { %v2544_v25 = vmax.f32 %v2528_v45, 0.0  ;;  %v2529_v53 = vadd.f32 %v2513_v17, %v2497_v13  ;;  %2676 = vmatprep.mubr.bf16.mxu0 %v7103_v9  ;;  %3292 = vmatpush1.bf16.msra.mxu0 %v7104_v14 }
 0x4e1   :  { %v2542_v30 = vmax.f32 %v2526_v32, 0.0  ;;  %v2527_v8 = vadd.f32 %v2511_v23, %v2495_v29  ;;  %v4789_v29 = vld [vmem:[%s7009_s7] sm:$0xff]  }
 0x4e2   :  { %v2545_v31 = vmax.f32 %v2529_v53, 0.0  ;;  %4363 = vmatmul.mubr.msk.bf16.vlgmr.msra.gmra.mrb[84].mxu1 %vm271_vm0, %v4789_v29  ;;  %v4791_v53 = vld [vmem:[%s7009_s7 + $0x8] sm:$0xff]   ;;  %v4802_v29 = vld [vmem:[%s7008_s6 + $0x30] sm:$0xff]  }
 0x4e3   :  { %v2543_v0 = vmax.f32 %v2527_v8, 0.0  ;;  %v4513_v26 = vpop.f32.mrb[76].mxu1  ;;  %2883 = vmatprep.mubr.bf16.mxu1 %v7103_v9  ;;  %v4793_v8 = vld [vmem:[%s7009_s7 + $0x10] sm:$0xff]  }
 0x4e4   :  { %v2557_v28 = vpack.c.bf16 %v2545_v31, %v2544_v25  ;;  %v2500_v50 = vmul.f32 %v4513_v26, %v2484_v57  ;;  %v2443_v4 = vpop.f32.mrb[77].mxu1  ;;  %v4790_v25 = vld [vmem:[%s7009_s7 + $0x30] sm:$0xff]   ;;  %v4794_v57 = vld [vmem:[%s7009_s7 + $0x40] sm:$0xff]   ;;  %v4795_v31 = vld [vmem:[%s7009_s7 + $0x18] sm:$0xff]  }
 0x4e5   :  { %v2556_v22 = vpack.c.bf16 %v2543_v0, %v2542_v30  ;;  %v2498_v62 = vmul.f32 %v2482_v41, %v2443_v4  ;;  %v4514_v40 = vpop.f32.mrb[78].mxu1  ;;  %v4792_v30 = vld [vmem:[%s7009_s7 + $0x38] sm:$0xff]   ;;  %v4796_v41 = vld [vmem:[%s7009_s7 + $0x48] sm:$0xff]   ;;  %v4797_v0 = vld [vmem:[%s7009_s7 + $0x20] sm:$0xff]  }
 0x4e6   :  { %v2532_v61 = vadd.f32 %v2516_v24, %v2500_v50  ;;  %v2501_v15 = vmul.f32 %v4514_v40, %v2485_v34  ;;  %v2446_v21 = vpop.f32.mrb[79].mxu1  ;;  %v4798_v26 = vld [vmem:[%s7009_s7 + $0x50] sm:$0xff]   ;;  %v4799_v24 = vld [vmem:[%s7009_s7 + $0x28] sm:$0xff]   ;;  %v4800_v34 = vld [vmem:[%s7009_s7 + $0x58] sm:$0xff]  }
 0x4e7   :  { %4349 = vmatmul.mubr.msk.bf16.gmra.mrb[64].mxu0 %vm527_vm3, %v2555_v18  ;;  %v2530_v36 = vadd.f32 %v2514_v33, %v2498_v62  ;;  %v2499_v63 = vmul.f32 %v2483_v48, %v2446_v21 }
 0x4e8   :  { %2686 = vmatprep.mubr.bf16.mxu0 %v7103_v9  ;;  %v2548_v10 = vmax.f32 %v2532_v61, 0.0  ;;  %v2533_v37 = vadd.f32 %v2517_v46, %v2501_v15 }
 0x4e9   :  { %v2546_v52 = vmax.f32 %v2530_v36, 0.0  ;;  %v2531_v51 = vadd.f32 %v2515_v44, %v2499_v63 }
 0x4ea   :  { %v2549_v56 = vmax.f32 %v2533_v37, 0.0  ;;  %4364 = vmatmul.mubr.msk.bf16.gmra.mrb[88].mxu1 %vm271_vm0, %v4791_v53  ;;  %v4803_v53 = vld [vmem:[%s7008_s6 + $0x8] sm:$0xff]  }
 0x4eb   :  { %v2547_v43 = vmax.f32 %v2531_v51, 0.0  ;;  %v4517_v12 = vpop.f32.mrb[80].mxu1  ;;  %2893 = vmatprep.mubr.bf16.mxu1 %v7103_v9 }
 0x4ec   :  { %v2559_v5 = vpack.c.bf16 %v2549_v56, %v2548_v10  ;;  %v2504_v49 = vmul.f32 %v4517_v12, %v2488_v27  ;;  %v2459_v1 = vpop.f32.mrb[81].mxu1 }
 0x4ed   :  { %v2558_v7 = vpack.c.bf16 %v2547_v43, %v2546_v52  ;;  %v2502_v55 = vmul.f32 %v2486_v38, %v2459_v1  ;;  %v4518_v16 = vpop.f32.mrb[82].mxu1 }
 0x4ee   :  { %v2536_v18 = vadd.f32 %v2520_v2, %v2504_v49  ;;  %v2505_v19 = vmul.f32 %v4518_v16, %v2489_v6  ;;  %v2462_v20 = vpop.f32.mrb[83].mxu1 }
 0x4ef   :  { %4350 = vmatmul.mubr.msk.bf16.gmra.mrb[68].mxu0 %vm527_vm3, %v2556_v22  ;;  %v2534_v60 = vadd.f32 %v2518_v39, %v2502_v55  ;;  %v2503_v11 = vmul.f32 %v2487_v59, %v2462_v20 }
 0x4f0   :  { %2696 = vmatprep.mubr.bf16.mxu0 %v7103_v9  ;;  %v2552_v3 = vmax.f32 %v2536_v18, 0.0  ;;  %v2537_v47 = vadd.f32 %v2521_v58, %v2505_v19 }
 0x4f1   :  { %v2550_v17 = vmax.f32 %v2534_v60, 0.0  ;;  %v2535_v45 = vadd.f32 %v2519_v54, %v2503_v11 }
 0x4f2   :  { %v2553_v13 = vmax.f32 %v2537_v47, 0.0  ;;  %4365 = vmatmul.mubr.msk.bf16.gmra.mrb[92].mxu1 %vm271_vm0, %v4793_v8  ;;  %v4806_v8 = vld [vmem:[%s7008_s6 + $0x40] sm:$0xff]  }
 0x4f3   :  { %v2551_v42 = vmax.f32 %v2535_v45, 0.0  ;;  %2903 = vmatprep.mubr.bf16.mxu1 %v7103_v9 }
 0x4f4   :  { %v2561_v23 = vpack.c.bf16 %v2553_v13, %v2552_v3 }
 0x4f5   :  { %v2560_v32 = vpack.c.bf16 %v2551_v42, %v2550_v17 }
 0x4f7   :  { %4351 = vmatmul.mubr.msk.bf16.gmra.mrb[72].mxu0 %vm527_vm3, %v2557_v28 }
 0x4f8   :  { %2706 = vmatprep.mubr.bf16.mxu0 %v7103_v9 }
 0x4fa   :  { %4366 = vmatmul.mubr.msk.bf16.gmra.mrb[96].mxu1 %vm271_vm0, %v4795_v31  ;;  %v4808_v31 = vld [vmem:[%s7008_s6 + $0x48] sm:$0xff]  }
 0x4fb   :  { %2913 = vmatprep.mubr.bf16.mxu1 %v7103_v9 }
 0x4ff   :  { %4352 = vmatmul.mubr.msk.bf16.gmra.mrb[76].mxu0 %vm527_vm3, %v2558_v7 }
 0x500   :  { %2716 = vmatprep.mubr.bf16.mxu0 %v7103_v9 }
 0x502   :  { %4367 = vmatmul.mubr.msk.bf16.gmra.mrb[100].mxu1 %vm271_vm0, %v4797_v0  ;;  %v4810_v0 = vld [vmem:[%s7008_s6 + $0x50] sm:$0xff]  }
 0x503   :  { %2923 = vmatprep.mubr.bf16.mxu1 %v7103_v9 }
 0x507   :  { %4353 = vmatmul.mubr.msk.bf16.gmra.mrb[80].mxu0 %vm527_vm3, %v2559_v5 }
 0x508   :  { %2726 = vmatprep.mubr.bf16.mxu0 %v7103_v9 }
 0x50a   :  { %4368 = vmatmul.mubr.msk.bf16.gmra.mrb[104].mxu1 %vm271_vm0, %v4799_v24  ;;  %v4812_v24 = vld [vmem:[%s7008_s6 + $0x58] sm:$0xff]  }
 0x50b   :  { %3002 = vmatprep.mubr.bf16.mxu1 %v7103_v9 }
 0x50f   :  { %4354 = vmatmul.mubr.msk.bf16.gmra.mrb[84].mxu0 %vm527_vm3, %v2560_v32  ;;  %v4801_v32 = vld [vmem:[%s7008_s6] sm:$0xff]  }
 0x510   :  { %2736 = vmatprep.mubr.bf16.mxu0 %v7103_v9 }
 0x517   :  { %4355 = vmatmul.mubr.msk.bf16.gmra.mrb[88].mxu0 %vm527_vm3, %v2561_v23 }
 0x518   :  { %3323 = vmatprep.mubr.bf16.mxu0 %v7103_v9 }
 0x51f   :  { %4384 = vmatmul.mubr.msk.bf16.vlgmr.msra.gmra.mrb[92].mxu0 %vm271_vm0, %v4790_v25  ;;  %v7105_v25 = vld [vmem:[#allocation5_spill] sm:$0xff] }
 0x520   :  { %3333 = vmatprep.mubr.bf16.mxu0 %v7103_v9 }
 0x527   :  { %4385 = vmatmul.mubr.msk.bf16.gmra.mrb[96].mxu0 %vm271_vm0, %v4792_v30  ;;  %v4804_v30 = vld [vmem:[%s7008_s6 + $0x38] sm:$0xff]  }
 0x528   :  { %3343 = vmatprep.mubr.bf16.mxu0 %v7103_v9 }
 0x52f   :  { %4386 = vmatmul.mubr.msk.bf16.gmra.mrb[100].mxu0 %vm271_vm0, %v4794_v57  ;;  %v4807_v57 = vld [vmem:[%s7008_s6 + $0x18] sm:$0xff]  }
 0x530   :  { %3353 = vmatprep.mubr.bf16.mxu0 %v7103_v9 }
 0x537   :  { %4387 = vmatmul.mubr.msk.bf16.gmra.mrb[104].mxu0 %vm271_vm0, %v4796_v41  ;;  %v4809_v41 = vld [vmem:[%s7008_s6 + $0x20] sm:$0xff]  }
 0x538   :  { %3363 = vmatprep.mubr.bf16.mxu0 %v7103_v9 }
 0x53f   :  { %4388 = vmatmul.mubr.msk.bf16.gmra.mrb[108].mxu0 %vm271_vm0, %v4798_v26  ;;  %v4811_v26 = vld [vmem:[%s7008_s6 + $0x28] sm:$0xff]  }
 0x540   :  { %3373 = vmatprep.mubr.bf16.mxu0 %v7103_v9 }
 0x547   :  { %4389 = vmatmul.mubr.msk.bf16.gmra.mrb[112].mxu0 %vm271_vm0, %v4800_v34  ;;  %v4813_v34 = vld [vmem:[%s7009_s7 + $0x60] sm:$0xff]  }
 0x548   :  { %3452 = vmatprep.mubr.bf16.mxu0 %v7103_v9 }
 0x5b2   :  { %v2668_v28 = vpop.f32.mrb[60].mxu0 }
 0x5b3   :  { %v2670_v50 = vpop.f32.mrb[61].mxu0 }
 0x5b4   :  { %v2672_v4 = vpop.f32.mrb[62].mxu0 }
 0x5b5   :  { %v6359_v33 = vpack.c.bf16 %v2672_v4, %v2668_v28  ;;  %v2674_v48 = vpop.f32.mrb[63].mxu0  ;;  %v4814_v28 = vld [vmem:[%s7009_s7 + $0x68] sm:$0xff]   ;;  %v4816_v4 = vld [vmem:[%s7009_s7 + $0x78] sm:$0xff]  }
 0x5b6   :  { %v6361_v22 = vpack.c.bf16 %v2674_v48, %v2670_v50  ;;  %v4815_v50 = vld [vmem:[%s7009_s7 + $0x70] sm:$0xff]   ;;  %v4818_v48 = vld [vmem:[%s7009_s7 + $0x88] sm:$0xff]  }
 0x5b8   :  { %2970 = vmatprep.subr.bf16.mxu1 %v6361_v22  ;;  %3420 = vmatprep.subr.bf16.mxu0 %v6361_v22 }
 0x5b9   :  { %2971 = vmatpush1.bf16.msra.mxu1 %v6359_v33  ;;  %3421 = vmatpush1.bf16.msra.mxu0 %v6359_v33 }
 0x5ba   :  { %v2678_v62 = vpop.f32.mrb[64].mxu0 }
 0x5bb   :  { %v2680_v40 = vpop.f32.mrb[65].mxu0 }
 0x5bc   :  { %v2682_v46 = vpop.f32.mrb[66].mxu0 }
 0x5bd   :  { %v6367_v61 = vpack.c.bf16 %v2682_v46, %v2678_v62  ;;  %v2684_v15 = vpop.f32.mrb[67].mxu0  ;;  %v4820_v62 = vld [vmem:[%s7008_s6 + $0x68] sm:$0xff]   ;;  %v4822_v46 = vld [vmem:[%s7008_s6 + $0x78] sm:$0xff]  }
 0x5be   :  { %v6369_v21 = vpack.c.bf16 %v2684_v15, %v2680_v40  ;;  %v4821_v40 = vld [vmem:[%s7008_s6 + $0x70] sm:$0xff]   ;;  %v4824_v15 = vld [vmem:[%s7008_s6 + $0x88] sm:$0xff]  }
 0x5c0   :  { %2972 = vmatprep.subr.bf16.mxu1 %v6369_v21  ;;  %3422 = vmatprep.subr.bf16.mxu0 %v6369_v21 }
 0x5c1   :  { %2973 = vmatpush1.bf16.msra.mxu1 %v6367_v61  ;;  %3423 = vmatpush1.bf16.msra.mxu0 %v6367_v61 }
 0x5c2   :  { %v2688_v44 = vpop.f32.mrb[68].mxu0 }
 0x5c3   :  { %v2690_v36 = vpop.f32.mrb[69].mxu0 }
 0x5c4   :  { %v2692_v63 = vpop.f32.mrb[70].mxu0 }
 0x5c5   :  { %v6375_v10 = vpack.c.bf16 %v2692_v63, %v2688_v44  ;;  %v2694_v37 = vpop.f32.mrb[71].mxu0 }
 0x5c6   :  { %v6377_v52 = vpack.c.bf16 %v2694_v37, %v2690_v36 }
 0x5c8   :  { %2974 = vmatprep.subr.bf16.mxu1 %v6377_v52  ;;  %3424 = vmatprep.subr.bf16.mxu0 %v6377_v52 }
 0x5c9   :  { %2975 = vmatpush1.bf16.msra.mxu1 %v6375_v10  ;;  %3425 = vmatpush1.bf16.msra.mxu0 %v6375_v10 }
 0x5ca   :  { %v2698_v51 = vpop.f32.mrb[72].mxu0 }
 0x5cb   :  { %v2700_v27 = vpop.f32.mrb[73].mxu0 }
 0x5cc   :  { %v2702_v56 = vpop.f32.mrb[74].mxu0 }
 0x5cd   :  { %v6383_v38 = vpack.c.bf16 %v2702_v56, %v2698_v51  ;;  %v2704_v43 = vpop.f32.mrb[75].mxu0 }
 0x5ce   :  { %v6385_v12 = vpack.c.bf16 %v2704_v43, %v2700_v27 }
 0x5d0   :  { %2976 = vmatprep.subr.bf16.mxu1 %v6385_v12  ;;  %3426 = vmatprep.subr.bf16.mxu0 %v6385_v12 }
 0x5d1   :  { %2977 = vmatpush1.bf16.msra.mxu1 %v6383_v38  ;;  %3427 = vmatpush1.bf16.msra.mxu0 %v6383_v38 }
 0x5d2   :  { %v2708_v2 = vpop.f32.mrb[76].mxu0 }
 0x5d3   :  { %v2710_v6 = vpop.f32.mrb[77].mxu0 }
 0x5d4   :  { %v2712_v5 = vpop.f32.mrb[78].mxu0 }
 0x5d5   :  { %v6391_v49 = vpack.c.bf16 %v2712_v5, %v2708_v2  ;;  %v2714_v1 = vpop.f32.mrb[79].mxu0 }
 0x5d6   :  { %v6393_v39 = vpack.c.bf16 %v2714_v1, %v2710_v6 }
 0x5d8   :  { %2978 = vmatprep.subr.bf16.mxu1 %v6393_v39  ;;  %3428 = vmatprep.subr.bf16.mxu0 %v6393_v39 }
 0x5d9   :  { %2979 = vmatpush1.bf16.msra.mxu1 %v6391_v49  ;;  %3429 = vmatpush1.bf16.msra.mxu0 %v6391_v49 }
 0x5da   :  { %v2718_v59 = vpop.f32.mrb[80].mxu0 }
 0x5db   :  { %v2720_v7 = vpop.f32.mrb[81].mxu0 }
 0x5dc   :  { %v2722_v55 = vpop.f32.mrb[82].mxu0 }
 0x5dd   :  { %v6399_v16 = vpack.c.bf16 %v2722_v55, %v2718_v59  ;;  %v2724_v58 = vpop.f32.mrb[83].mxu0 }
 0x5de   :  { %v6401_v18 = vpack.c.bf16 %v2724_v58, %v2720_v7 }
 0x5e0   :  { %2980 = vmatprep.subr.bf16.mxu1 %v6401_v18  ;;  %3430 = vmatprep.subr.bf16.mxu0 %v6401_v18 }
 0x5e1   :  { %2981 = vmatpush1.bf16.msra.mxu1 %v6399_v16  ;;  %3431 = vmatpush1.bf16.msra.mxu0 %v6399_v16 }
 0x5e2   :  { %v2728_v19 = vpop.f32.mrb[84].mxu0 }
 0x5e3   :  { %v2730_v20 = vpop.f32.mrb[85].mxu0 }
 0x5e4   :  { %v2732_v54 = vpop.f32.mrb[86].mxu0 }
 0x5e5   :  { %v6407_v60 = vpack.c.bf16 %v2732_v54, %v2728_v19  ;;  %v2734_v11 = vpop.f32.mrb[87].mxu0 }
 0x5e6   :  { %v6409_v3 = vpack.c.bf16 %v2734_v11, %v2730_v20 }
 0x5e8   :  { %2982 = vmatprep.subr.bf16.mxu1 %v6409_v3  ;;  %3432 = vmatprep.subr.bf16.mxu0 %v6409_v3 }
 0x5e9   :  { %2983 = vmatpush1.bf16.msra.mxu1 %v6407_v60  ;;  %3433 = vmatpush1.bf16.msra.mxu0 %v6407_v60 }
 0x5ea   :  { %v2738_v47 = vpop.f32.mrb[88].mxu0 }
 0x5eb   :  { %v2740_v17 = vpop.f32.mrb[89].mxu0 }
 0x5ec   :  { %v2742_v45 = vpop.f32.mrb[90].mxu0 }
 0x5ed   :  { %v6415_v13 = vpack.c.bf16 %v2742_v45, %v2738_v47  ;;  %v2744_v42 = vpop.f32.mrb[91].mxu0 }
 0x5ee   :  { %v6417_v23 = vpack.c.bf16 %v2744_v42, %v2740_v17 }
 0x5f0   :  { %2984 = vmatprep.subr.bf16.mxu1 %v6417_v23  ;;  %3434 = vmatprep.subr.bf16.mxu0 %v6417_v23 }
 0x5f1   :  { %2985 = vmatpush1.bf16.msra.mxu1 %v6415_v13  ;;  %3435 = vmatpush1.bf16.msra.mxu0 %v6415_v13 }
 0x5f2   :  { %4405 = vmatprep.subr.msk.bf16.mxu1 %vm296_vm1, %v7105_v25 }
 0x5f4   :  { %3003 = vmatmul.mubr.bf16.vlgmr.msra.gmra.mrb[84].mxu1 %v4801_v32  ;;  %3453 = vmatmul.mubr.bf16.vlgmr.msra.gmra.mrb[92].mxu0 %v4802_v29 }
 0x5f5   :  { %3718 = vmatpush1.bf16.msra.mxu1 %v7104_v14  ;;  %3012 = vmatprep.mubr.bf16.mxu1 %v7103_v9  ;;  %v4805_v14 = vld [vmem:[%s7008_s6 + $0x10] sm:$0xff]  }
 0x5f6   :  { %3846 = vmatprep.subr.bf16.mxu1 %v6361_v22  ;;  %3462 = vmatprep.mubr.bf16.mxu0 %v7103_v9  ;;  %v4819_v22 = vld [vmem:[%s7008_s6 + $0x60] sm:$0xff]  }
 0x5fc   :  { %3013 = vmatmul.mubr.bf16.gmra.mrb[88].mxu1 %v4803_v53  ;;  %3463 = vmatmul.mubr.bf16.gmra.mrb[96].mxu0 %v4804_v30 }
 0x5fd   :  { %3022 = vmatprep.mubr.bf16.mxu1 %v7103_v9  ;;  %3472 = vmatprep.mubr.bf16.mxu0 %v7103_v9 }
 0x604   :  { %3023 = vmatmul.mubr.bf16.gmra.mrb[92].mxu1 %v4805_v14  ;;  %3473 = vmatmul.mubr.bf16.gmra.mrb[100].mxu0 %v4806_v8 }
 0x605   :  { %3032 = vmatprep.mubr.bf16.mxu1 %v7103_v9  ;;  %3482 = vmatprep.mubr.bf16.mxu0 %v7103_v9 }
 0x60c   :  { %3033 = vmatmul.mubr.bf16.gmra.mrb[96].mxu1 %v4807_v57  ;;  %3483 = vmatmul.mubr.bf16.gmra.mrb[104].mxu0 %v4808_v31 }
 0x60d   :  { %3042 = vmatprep.mubr.bf16.mxu1 %v7103_v9  ;;  %3492 = vmatprep.mubr.bf16.mxu0 %v7103_v9 }
 0x614   :  { %3043 = vmatmul.mubr.bf16.gmra.mrb[100].mxu1 %v4809_v41  ;;  %3493 = vmatmul.mubr.bf16.gmra.mrb[108].mxu0 %v4810_v0 }
 0x615   :  { %3052 = vmatprep.mubr.bf16.mxu1 %v7103_v9  ;;  %3502 = vmatprep.mubr.bf16.mxu0 %v7103_v9 }
 0x61c   :  { %3053 = vmatmul.mubr.bf16.gmra.mrb[104].mxu1 %v4811_v26  ;;  %3503 = vmatmul.mubr.bf16.gmra.mrb[112].mxu0 %v4812_v24 }
 0x61d   :  { %3749 = vmatprep.mubr.bf16.mxu1 %v7103_v9 }
 0x624   :  { %4406 = vmatmul.mubr.msk.bf16.vlgmr.msra.gmra.mrb[108].mxu1 %vm271_vm0, %v4813_v34 }
 0x625   :  { %3847 = vmatpush1.bf16.msra.mxu1 %v6359_v33  ;;  %3759 = vmatprep.mubr.bf16.mxu1 %v7103_v9  ;;  %v4817_v33 = vld [vmem:[%s7009_s7 + $0x80] sm:$0xff]  }
 0x626   :  { %3848 = vmatprep.subr.bf16.mxu1 %v6369_v21 }
 0x629   :  { %3849 = vmatpush1.bf16.msra.mxu1 %v6367_v61  ;;  %v4823_v61 = vld [vmem:[%s7008_s6 + $0x80] sm:$0xff]  }
 0x62a   :  { %3850 = vmatprep.subr.bf16.mxu1 %v6377_v52 }
 0x62c   :  { %4407 = vmatmul.mubr.msk.bf16.gmra.mrb[112].mxu1 %vm271_vm0, %v4814_v28 }
 0x62d   :  { %3851 = vmatpush1.bf16.msra.mxu1 %v6375_v10  ;;  %3769 = vmatprep.mubr.bf16.mxu1 %v7103_v9 }
 0x62e   :  { %3852 = vmatprep.subr.bf16.mxu1 %v6385_v12 }
 0x631   :  { %3853 = vmatpush1.bf16.msra.mxu1 %v6383_v38 }
 0x632   :  { %3854 = vmatprep.subr.bf16.mxu1 %v6393_v39 }
 0x634   :  { %4408 = vmatmul.mubr.msk.bf16.gmra.mrb[116].mxu1 %vm271_vm0, %v4815_v50 }
 0x635   :  { %3855 = vmatpush1.bf16.msra.mxu1 %v6391_v49  ;;  %3779 = vmatprep.mubr.bf16.mxu1 %v7103_v9 }
 0x636   :  { %3856 = vmatprep.subr.bf16.mxu1 %v6401_v18 }
 0x639   :  { %3857 = vmatpush1.bf16.msra.mxu1 %v6399_v16 }
 0x63a   :  { %3858 = vmatprep.subr.bf16.mxu1 %v6409_v3 }
 0x63c   :  { %4409 = vmatmul.mubr.msk.bf16.gmra.mrb[120].mxu1 %vm271_vm0, %v4816_v4 }
 0x63d   :  { %3859 = vmatpush1.bf16.msra.mxu1 %v6407_v60  ;;  %3789 = vmatprep.mubr.bf16.mxu1 %v7103_v9 }
 0x63e   :  { %3860 = vmatprep.subr.bf16.mxu1 %v6417_v23 }
 0x641   :  { %3861 = vmatpush1.bf16.msra.mxu1 %v6415_v13 }
 0x644   :  { %4410 = vmatmul.mubr.msk.bf16.gmra.mrb[124].mxu1 %vm271_vm0, %v4817_v33 }
 0x645   :  { %3799 = vmatprep.mubr.bf16.mxu1 %v7103_v9 }
 0x64c   :  { %4411 = vmatmul.mubr.msk.bf16.gmra.mrb[128].mxu1 %vm271_vm0, %v4818_v48 }
 0x64d   :  { %3878 = vmatprep.mubr.bf16.mxu1 %v7103_v9 }
 0x654   :  { %3879 = vmatmul.mubr.bf16.vlgmr.msra.gmra.mrb[108].mxu1 %v4819_v22 }
 0x655   :  { %3888 = vmatprep.mubr.bf16.mxu1 %v7103_v9 }
 0x65c   :  { %3889 = vmatmul.mubr.bf16.gmra.mrb[112].mxu1 %v4820_v62 }
 0x65d   :  { %3898 = vmatprep.mubr.bf16.mxu1 %v7103_v9 }
 0x664   :  { %3899 = vmatmul.mubr.bf16.gmra.mrb[116].mxu1 %v4821_v40 }
 0x665   :  { %3908 = vmatprep.mubr.bf16.mxu1 %v7103_v9 }
 0x66c   :  { %3909 = vmatmul.mubr.bf16.gmra.mrb[120].mxu1 %v4822_v46 }
 0x66d   :  { %3918 = vmatprep.mubr.bf16.mxu1 %v7103_v9 }
 0x674   :  { %3919 = vmatmul.mubr.bf16.gmra.mrb[124].mxu1 %v4823_v61 }
 0x675   :  { %3928 = vmatprep.mubr.bf16.mxu1 %v7103_v9 }
 0x67c   :  { %3929 = vmatmul.mubr.bf16.gmra.mrb[128].mxu1 %v4824_v15 }
 0x6c7   :  { %v3004_v21 = vpop.f32.mrb[84].mxu1  ;;  %v3454_v44 = vpop.f32.mrb[92].mxu0 }
 0x6c8   :  { %v3456_v36 = vpop.f32.mrb[93].mxu0  ;;  %3063 = vrot.lane.b32.xlu1 %v3004_v21, %s4850_s15  ;;  %v3006_v63 = vpop.f32.mrb[85].mxu1 }
 0x6c9   :  { %v3008_v10 = vpop.f32.mrb[86].mxu1  ;;  %v3458_v37 = vpop.f32.mrb[94].mxu0 }
 0x6ca   :  { %v3460_v52 = vpop.f32.mrb[95].mxu0  ;;  %3065 = vrot.lane.b32.xlu0 %v3008_v10, %s4850_s15  ;;  %v3010_v51 = vpop.f32.mrb[87].mxu1 }
 0x6cc   :  { %3513 = vrot.lane.b32.xlu1 %v3454_v44, %s4851_s16 }
 0x6ce   :  { %3515 = vrot.lane.b32.xlu0 %v3458_v37, %s4851_s16 }
 0x6cf   :  { %v3014_v9 = vpop.f32.mrb[88].mxu1  ;;  %v3464_v27 = vpop.f32.mrb[96].mxu0 }
 0x6d0   :  { %v3466_v56 = vpop.f32.mrb[97].mxu0  ;;  %3071 = vrot.lane.b32.xlu1 %v3006_v63, %s4850_s15  ;;  %v3016_v38 = vpop.f32.mrb[89].mxu1 }
 0x6d1   :  { %v3018_v43 = vpop.f32.mrb[90].mxu1  ;;  %v3468_v12 = vpop.f32.mrb[98].mxu0 }
 0x6d2   :  { %v3470_v2 = vpop.f32.mrb[99].mxu0  ;;  %3073 = vrot.lane.b32.xlu0 %v3010_v51, %s4850_s15  ;;  %v3020_v6 = vpop.f32.mrb[91].mxu1 }
 0x6d4   :  { %3521 = vrot.lane.b32.xlu1 %v3456_v36, %s4851_s16 }
 0x6d6   :  { %3523 = vrot.lane.b32.xlu0 %v3460_v52, %s4851_s16 }
 0x6d7   :  { %v3024_v5 = vpop.f32.mrb[92].mxu1  ;;  %v6550_v49 = vpop.f32.mrb[100].mxu0 }
 0x6d8   :  { %v6552_v1 = vpop.f32.mrb[101].mxu0  ;;  %3067 = vrot.lane.b32.xlu1 %v3014_v9, %s4850_s15  ;;  %v3026_v39 = vpop.f32.mrb[93].mxu1 }
 0x6d9   :  { %v3028_v59 = vpop.f32.mrb[94].mxu1  ;;  %v6555_v7 = vpop.f32.mrb[102].mxu0 }
 0x6da   :  { %v6557_v55 = vpop.f32.mrb[103].mxu0  ;;  %3069 = vrot.lane.b32.xlu0 %v3018_v43, %s4850_s15  ;;  %v3030_v16 = vpop.f32.mrb[95].mxu1 }
 0x6dc   :  { %3517 = vrot.lane.b32.xlu1 %v3464_v27, %s4851_s16 }
 0x6de   :  { %3519 = vrot.lane.b32.xlu0 %v3468_v12, %s4851_s16 }
 0x6df   :  { %v3034_v58 = vpop.f32.mrb[96].mxu1  ;;  %v6562_v18 = vpop.f32.mrb[104].mxu0 }
 0x6e0   :  { %v6564_v19 = vpop.f32.mrb[105].mxu0  ;;  %3075 = vrot.lane.b32.xlu1 %v3016_v38, %s4850_s15  ;;  %v3036_v20 = vpop.f32.mrb[97].mxu1 }
 0x6e1   :  { %v3038_v54 = vpop.f32.mrb[98].mxu1  ;;  %v6567_v60 = vpop.f32.mrb[106].mxu0 }
 0x6e2   :  { %v6569_v11 = vpop.f32.mrb[107].mxu0  ;;  %3077 = vrot.lane.b32.xlu0 %v3020_v6, %s4850_s15  ;;  %v3040_v3 = vpop.f32.mrb[99].mxu1 }
 0x6e4   :  { %3525 = vrot.lane.b32.xlu1 %v3466_v56, %s4851_s16 }
 0x6e6   :  { %3527 = vrot.lane.b32.xlu0 %v3470_v2, %s4851_s16 }
 0x6e7   :  { %v3044_v47 = vpop.f32.mrb[100].mxu1  ;;  %v3494_v17 = vpop.f32.mrb[108].mxu0 }
 0x6e8   :  { %v3496_v45 = vpop.f32.mrb[109].mxu0  ;;  %3115 = vrot.lane.b32.xlu1 %v3024_v5, %s4852_s17  ;;  %v3046_v13 = vpop.f32.mrb[101].mxu1 }
 0x6e9   :  { %v3048_v42 = vpop.f32.mrb[102].mxu1  ;;  %v3498_v23 = vpop.f32.mrb[110].mxu0 }
 0x6ea   :  { %v3500_v32 = vpop.f32.mrb[111].mxu0  ;;  %3117 = vrot.lane.b32.xlu0 %v3028_v59, %s4852_s17  ;;  %v3050_v29 = vpop.f32.mrb[103].mxu1 }
 0x6ec   :  { %3123 = vrot.lane.b32.xlu1 %v3026_v39, %s4852_s17 }
 0x6ee   :  { %3125 = vrot.lane.b32.xlu0 %v3030_v16, %s4852_s17 }
 0x6ef   :  { %v3054_v25 = vpop.f32.mrb[104].mxu1  ;;  %v3504_v53 = vpop.f32.mrb[112].mxu0 }
 0x6f0   :  { %v3506_v30 = vpop.f32.mrb[113].mxu0  ;;  %3119 = vrot.lane.b32.xlu1 %v3034_v58, %s4852_s17  ;;  %v3056_v14 = vpop.f32.mrb[105].mxu1 }
 0x6f1   :  { %v3058_v8 = vpop.f32.mrb[106].mxu1  ;;  %v3508_v57 = vpop.f32.mrb[114].mxu0 }
 0x6f2   :  { %v3510_v31 = vpop.f32.mrb[115].mxu0  ;;  %3121 = vrot.lane.b32.xlu0 %v3038_v54, %s4852_s17  ;;  %v3060_v41 = vpop.f32.mrb[107].mxu1 }
 0x6f4   :  { %3127 = vrot.lane.b32.xlu1 %v3036_v20, %s4852_s17 }
 0x6f6   :  { %3129 = vrot.lane.b32.xlu0 %v3040_v3, %s4852_s17 }
 0x6f8   :  { %3167 = vrot.lane.b32.xlu1 %v3044_v47, %s4853_s18 }
 0x6fa   :  { %3169 = vrot.lane.b32.xlu0 %v3048_v42, %s4853_s18 }
 0x6fc   :  { %3593 = vrot.lane.b32.xlu1 %v3494_v17, %s4854_s19 }
 0x6fe   :  { %3595 = vrot.lane.b32.xlu0 %v3498_v23, %s4854_s19 }
 0x700   :  { %3175 = vrot.lane.b32.xlu1 %v3046_v13, %s4853_s18 }
 0x702   :  { %3177 = vrot.lane.b32.xlu0 %v3050_v29, %s4853_s18 }
 0x704   :  { %3601 = vrot.lane.b32.xlu1 %v3496_v45, %s4854_s19 }
 0x706   :  { %3603 = vrot.lane.b32.xlu0 %v3500_v32, %s4854_s19 }
 0x708   :  { %3171 = vrot.lane.b32.xlu1 %v3054_v25, %s4853_s18 }
 0x70a   :  { %3173 = vrot.lane.b32.xlu0 %v3058_v8, %s4853_s18 }
 0x70c   :  { %3597 = vrot.lane.b32.xlu1 %v3504_v53, %s4854_s19 }
 0x70e   :  { %3599 = vrot.lane.b32.xlu0 %v3508_v57, %s4854_s19 }
 0x710   :  { %3179 = vrot.lane.b32.xlu1 %v3056_v14, %s4853_s18  ;;  %v4129_v14 = vld [vmem:[%s7012_s10 + $0x10] sm:$0xff] }
 0x712   :  { %3181 = vrot.lane.b32.xlu0 %v3060_v41, %s4853_s18  ;;  %v4130_v41 = vld [vmem:[%s7012_s10 + $0x18] sm:$0xff] }
 0x714   :  { %3605 = vrot.lane.b32.xlu1 %v3506_v30, %s4854_s19 }
 0x716   :  { %3607 = vrot.lane.b32.xlu0 %v3510_v31, %s4854_s19 }
 0x727   :  { %v3880_v0 = vpop.f32.mrb[108].mxu1 }
 0x728   :  { %3939 = vrot.lane.b32.xlu1 %v3880_v0, %s4855_s2  ;;  %v3882_v26 = vpop.f32.mrb[109].mxu1 }
 0x729   :  { %v3884_v24 = vpop.f32.mrb[110].mxu1 }
 0x72a   :  { %3941 = vrot.lane.b32.xlu0 %v3884_v24, %s4855_s2  ;;  %v3886_v34 = vpop.f32.mrb[111].mxu1 }
 0x72c   :  { %3947 = vrot.lane.b32.xlu1 %v3882_v26, %s4855_s2  ;;  %v3087_v26 = vld [vmem:[%s7010_s8] sm:$0x3] }
 0x72e   :  { %3949 = vrot.lane.b32.xlu0 %v3886_v34, %s4855_s2 }
 0x72f   :  { %v3890_v28 = vpop.f32.mrb[112].mxu1 }
 0x730   :  { %3943 = vrot.lane.b32.xlu1 %v3890_v28, %s4855_s2  ;;  %v3892_v50 = vpop.f32.mrb[113].mxu1  ;;  %v4375_v28 = vld [vmem:[%s7010_s8 + $0x2] sm:$0x3] }
 0x731   :  { %v3894_v4 = vpop.f32.mrb[114].mxu1 }
 0x732   :  { %3945 = vrot.lane.b32.xlu0 %v3894_v4, %s4855_s2  ;;  %v3896_v33 = vpop.f32.mrb[115].mxu1  ;;  %v7106_v4 = vld [vmem:[#allocation21_spill] sm:$0xff] }
 0x734   :  { %3951 = vrot.lane.b32.xlu1 %v3892_v50, %s4855_s2 }
 0x736   :  { %3953 = vrot.lane.b32.xlu0 %v3896_v33, %s4855_s2  ;;  %v3092_v33 = vrot.slane %v3087_v26, %v7106_v4 }
 0x737   :  { %v3900_v48 = vpop.f32.mrb[116].mxu1 }
 0x738   :  { %3991 = vrot.lane.b32.xlu1 %v3900_v48, %s4856_s21  ;;  %v3902_v22 = vpop.f32.mrb[117].mxu1  ;;  %v7107_v48 = vld [vmem:[#allocation22_spill] sm:$0xff] }
 0x739   :  { %v3904_v62 = vpop.f32.mrb[118].mxu1 }
 0x73a   :  { %v3064_v40 = vpop.permute.xlu1 %3063  ;;  %3993 = vrot.lane.b32.xlu0 %v3904_v62, %s4856_s21  ;;  %v3906_v46 = vpop.f32.mrb[119].mxu1 }
 0x73c   :  { %v3066_v61 = vpop.permute.xlu0 %3065  ;;  %3999 = vrot.lane.b32.xlu1 %v3902_v22, %s4856_s21  ;;  %v3096_v22 = vrot.slane %v3087_v26, %v7107_v48 }
 0x73e   :  { %v3514_v15 = vpop.permute.xlu1 %3513  ;;  %4001 = vrot.lane.b32.xlu0 %v3906_v46, %s4856_s21  ;;  %v3148_v46 = vrot.slane %v4375_v28, %v7107_v48 }
 0x73f   :  { %v3910_v21 = vpop.f32.mrb[120].mxu1 }
 0x740   :  { %v3516_v44 = vpop.permute.xlu0 %3515  ;;  %3995 = vrot.lane.b32.xlu1 %v3910_v21, %s4856_s21  ;;  %v3912_v36 = vpop.f32.mrb[121].mxu1 }
 0x741   :  { %v3914_v63 = vpop.f32.mrb[122].mxu1 }
 0x742   :  { %v3072_v10 = vpop.permute.xlu1 %3071  ;;  %3997 = vrot.lane.b32.xlu0 %v3914_v63, %s4856_s21  ;;  %v3916_v37 = vpop.f32.mrb[123].mxu1 }
 0x743   :  { %v3079_v52 = vsel %vm1006_vm4, %v3064_v40, %v3072_v10  ;;  %v3083_v51 = vsel %vm1006_vm4, %v3072_v10, %v3064_v40  ;;  %v3144_v40 = vrot.slane %v4375_v28, %v7106_v4 }
 0x744   :  { %v3074_v9 = vpop.permute.xlu0 %3073  ;;  %4003 = vrot.lane.b32.xlu1 %v3912_v36, %s4856_s21  ;;  %v3100_v36 = vmul.f32 %v3096_v22, %v3079_v52 }
 0x745   :  { %v3080_v27 = vsel %vm1006_vm4, %v3066_v61, %v3074_v9  ;;  %v3084_v56 = vsel %vm1006_vm4, %v3074_v9, %v3066_v61 }
 0x746   :  { %v3522_v38 = vpop.permute.xlu1 %3521  ;;  %4005 = vrot.lane.b32.xlu0 %v3916_v37, %s4856_s21  ;;  %v3101_v9 = vmul.f32 %v3092_v33, %v3084_v56 }
 0x747   :  { %v6624_v43 = vsel %vm1461_vm5, %v3514_v15, %v3522_v38  ;;  %v6628_v12 = vsel %vm1461_vm5, %v3522_v38, %v3514_v15  ;;  %v3920_v2 = vpop.f32.mrb[124].mxu1  ;;  %v3102_v38 = vmul.f32 %v3096_v22, %v3080_v27 }
 0x748   :  { %v3524_v6 = vpop.permute.xlu0 %3523  ;;  %4043 = vrot.lane.b32.xlu1 %v3920_v2, %s4857_s22  ;;  %v3922_v5 = vpop.f32.mrb[125].mxu1 }
 0x749   :  { %v6633_v39 = vsel %vm1461_vm5, %v3516_v44, %v3524_v6  ;;  %v6637_v59 = vsel %vm1461_vm5, %v3524_v6, %v3516_v44  ;;  %v3924_v16 = vpop.f32.mrb[126].mxu1  ;;  %v3099_v44 = vmul.f32 %v3092_v33, %v3083_v51 }
 0x74a   :  { %v3068_v58 = vpop.permute.xlu1 %3067  ;;  %4045 = vrot.lane.b32.xlu0 %v3924_v16, %s4857_s22  ;;  %v3926_v20 = vpop.f32.mrb[127].mxu1 }
 0x74c   :  { %v3070_v54 = vpop.permute.xlu0 %3069  ;;  %4051 = vrot.lane.b32.xlu1 %v3922_v5, %s4857_s22 }
 0x74e   :  { %v3518_v3 = vpop.permute.xlu1 %3517  ;;  %4053 = vrot.lane.b32.xlu0 %v3926_v20, %s4857_s22 }
 0x74f   :  { %v3930_v47 = vpop.f32.mrb[128].mxu1 }
 0x750   :  { %v3520_v17 = vpop.permute.xlu0 %3519  ;;  %4047 = vrot.lane.b32.xlu1 %v3930_v47, %s4857_s22  ;;  %v3932_v45 = vpop.f32.mrb[129].mxu1 }
 0x751   :  { %v3934_v13 = vpop.f32.mrb[130].mxu1 }
 0x752   :  { %v3076_v42 = vpop.permute.xlu1 %3075  ;;  %4049 = vrot.lane.b32.xlu0 %v3934_v13, %s4857_s22  ;;  %v3936_v23 = vpop.f32.mrb[131].mxu1 }
 0x753   :  { %v3081_v32 = vsel %vm1006_vm4, %v3068_v58, %v3076_v42  ;;  %v3085_v29 = vsel %vm1006_vm4, %v3076_v42, %v3068_v58 }
 0x754   :  { %v3078_v25 = vpop.permute.xlu0 %3077  ;;  %4055 = vrot.lane.b32.xlu1 %v3932_v45, %s4857_s22  ;;  %v3103_v56 = vmul.f32 %v3092_v33, %v3085_v29  ;;  %v3104_v45 = vmul.f32 %v3096_v22, %v3081_v32 }
 0x755   :  { %v3082_v53 = vsel %vm1006_vm4, %v3070_v54, %v3078_v25  ;;  %v3086_v30 = vsel %vm1006_vm4, %v3078_v25, %v3070_v54 }
 0x756   :  { %v3526_v8 = vpop.permute.xlu1 %3525  ;;  %4057 = vrot.lane.b32.xlu0 %v3936_v23, %s4857_s22  ;;  %v3105_v25 = vmul.f32 %v3092_v33, %v3086_v30  ;;  %v4396_v30 = vld [vmem:[%s7010_s8 + $0x6] sm:$0x3] }
 0x757   :  { %v6659_v57 = vsel %vm1461_vm5, %v3518_v3, %v3526_v8  ;;  %v6663_v31 = vsel %vm1461_vm5, %v3526_v8, %v3518_v3 }
 0x758   :  { %v3528_v0 = vpop.permute.xlu0 %3527  ;;  %4143 = vperm.xlu1 %4680, %v4129_v14   ;;  %v3106_v14 = vmul.f32 %v3096_v22, %v3082_v53  ;;  %v4376_v53 = vld [vmem:[%s7010_s8 + $0x4] sm:$0x3]  ;;  %v4397_v22 = vld [vmem:[%s7010_s8 + $0x8] sm:$0x3] }
 0x759   :  { %v6673_v24 = vsel %vm1461_vm5, %v3520_v17, %v3528_v0  ;;  %v6677_v34 = vsel %vm1461_vm5, %v3528_v0, %v3520_v17 }
 0x75a   :  { %v3116_v50 = vpop.permute.xlu1 %3115  ;;  %4148 = vperm.xlu0 %4679, %v4130_v41  }
 0x75c   :  { %v3118_v62 = vpop.permute.xlu0 %3117 }
 0x75e   :  { %v3124_v61 = vpop.permute.xlu1 %3123 }
 0x75f   :  { %v3131_v15 = vsel %vm1059_vm6, %v3116_v50, %v3124_v61  ;;  %v3135_v21 = vsel %vm1059_vm6, %v3124_v61, %v3116_v50 }
 0x760   :  { %v3151_v63 = vmul.f32 %v3144_v40, %v3135_v21  ;;  %v3152_v10 = vmul.f32 %v3148_v46, %v3131_v15  ;;  %v3126_v37 = vpop.permute.xlu0 %3125  ;;  %v3200_v15 = vrot.slane %v4376_v53, %v7107_v48  ;;  %v3542_v21 = vrot.slane %v4396_v30, %v7106_v4 }
 0x761   :  { %v3132_v2 = vsel %vm1059_vm6, %v3118_v62, %v3126_v37  ;;  %v3136_v6 = vsel %vm1059_vm6, %v3126_v37, %v3118_v62 }
 0x762   :  { %v3159_v5 = vadd.f32 %v3151_v63, %v3099_v44  ;;  %v3160_v16 = vadd.f32 %v3152_v10, %v3100_v36  ;;  %v3153_v58 = vmul.f32 %v3144_v40, %v3136_v6  ;;  %v3154_v20 = vmul.f32 %v3148_v46, %v3132_v2  ;;  %v3120_v54 = vpop.permute.xlu1 %3119 }
 0x763   :  { %v3546_v44 = vrot.slane %v4396_v30, %v7107_v48  ;;  %v3570_v63 = vrot.slane %v4397_v22, %v7106_v4  ;;  %v3574_v10 = vrot.slane %v4397_v22, %v7107_v48 }
 0x764   :  { %v3161_v3 = vadd.f32 %v3153_v58, %v3101_v9  ;;  %v3162_v47 = vadd.f32 %v3154_v20, %v3102_v38  ;;  %v3122_v51 = vpop.permute.xlu0 %3121  ;;  %v3549_v58 = vmul.f32 %v3542_v21, %v6628_v12  ;;  %v3551_v12 = vmul.f32 %v3542_v21, %v6637_v59 }
 0x765   :  { %v3550_v20 = vmul.f32 %v3546_v44, %v6624_v43  ;;  %v3552_v43 = vmul.f32 %v3546_v44, %v6633_v39 }
 0x766   :  { %v3128_v52 = vpop.permute.xlu1 %3127 }
 0x767   :  { %v3133_v17 = vsel %vm1059_vm6, %v3120_v54, %v3128_v52  ;;  %v3137_v27 = vsel %vm1059_vm6, %v3128_v52, %v3120_v54 }
 0x768   :  { %v3155_v13 = vmul.f32 %v3144_v40, %v3137_v27  ;;  %v3156_v42 = vmul.f32 %v3148_v46, %v3133_v17  ;;  %v3130_v23 = vpop.permute.xlu0 %3129 }
 0x769   :  { %v3134_v8 = vsel %vm1059_vm6, %v3122_v51, %v3130_v23  ;;  %v3138_v41 = vsel %vm1059_vm6, %v3130_v23, %v3122_v51 }
 0x76a   :  { %v6702_v0 = vadd.f32 %v3155_v13, %v3103_v56  ;;  %v6704_v26 = vadd.f32 %v3156_v42, %v3104_v45  ;;  %v3157_v28 = vmul.f32 %v3144_v40, %v3138_v41  ;;  %v3158_v50 = vmul.f32 %v3148_v46, %v3134_v8  ;;  %v3168_v62 = vpop.permute.xlu1 %3167 }
 0x76b   :  { %v3196_v46 = vrot.slane %v4376_v53, %v7106_v4  ;;  %v3577_v13 = vmul.f32 %v3570_v63, %v6550_v49  ;;  %v3578_v42 = vmul.f32 %v3574_v10, %v6552_v1 }
 0x76c   :  { %v6706_v29 = vadd.f32 %v3157_v28, %v3105_v25  ;;  %v6708_v32 = vadd.f32 %v3158_v50, %v3106_v14  ;;  %v3170_v61 = vpop.permute.xlu0 %3169 }
 0x76e   :  { %v6716_v33 = vpop.permute.xlu1 %3593 }
 0x770   :  { %v6721_v40 = vpop.permute.xlu0 %3595 }
 0x772   :  { %v3176_v36 = vpop.permute.xlu1 %3175 }
 0x773   :  { %v3183_v37 = vsel %vm1113_vm7, %v3168_v62, %v3176_v36  ;;  %v3187_v9 = vsel %vm1113_vm7, %v3176_v36, %v3168_v62 }
 0x774   :  { %v3203_v38 = vmul.f32 %v3196_v46, %v3187_v9  ;;  %v3204_v2 = vmul.f32 %v3200_v15, %v3183_v37  ;;  %v3178_v6 = vpop.permute.xlu0 %3177  ;;  %v3553_v37 = vmul.f32 %v3542_v21, %v6663_v31  ;;  %v3554_v9 = vmul.f32 %v3546_v44, %v6659_v57 }
 0x775   :  { %v3184_v54 = vsel %vm1113_vm7, %v3170_v61, %v3178_v6  ;;  %v3188_v51 = vsel %vm1113_vm7, %v3178_v6, %v3170_v61  ;;  %v3555_v31 = vmul.f32 %v3542_v21, %v6677_v34  ;;  %v3556_v57 = vmul.f32 %v3546_v44, %v6673_v24 }
 0x776   :  { %v3211_v52 = vadd.f32 %v3203_v38, %v3159_v5  ;;  %v3212_v17 = vadd.f32 %v3204_v2, %v3160_v16  ;;  %v3205_v27 = vmul.f32 %v3196_v46, %v3188_v51  ;;  %v3206_v56 = vmul.f32 %v3200_v15, %v3184_v54  ;;  %v6739_v45 = vpop.permute.xlu1 %3601 }
 0x777   :  { %v3579_v5 = vmul.f32 %v3570_v63, %v6555_v7  ;;  %v3580_v16 = vmul.f32 %v3574_v10, %v6557_v55  ;;  %v3581_v51 = vmul.f32 %v3570_v63, %v6562_v18 }
 0x778   :  { %v3557_v23 = vadd.f32 %v3549_v58, %v3211_v52  ;;  %v3558_v25 = vadd.f32 %v3550_v20, %v3212_v17  ;;  %v3213_v14 = vadd.f32 %v3205_v27, %v3161_v3  ;;  %v3214_v8 = vadd.f32 %v3206_v56, %v3162_v47  ;;  %v6745_v41 = vpop.permute.xlu0 %3603 }
 0x779   :  { %v3582_v52 = vmul.f32 %v3574_v10, %v6564_v19 }
 0x77a   :  { %v3559_v28 = vadd.f32 %v3551_v12, %v3213_v14  ;;  %v3560_v50 = vadd.f32 %v3552_v43, %v3214_v8  ;;  %v6749_v62 = vadd.f32 %v3577_v13, %v3557_v23  ;;  %v6751_v49 = vadd.f32 %v3578_v42, %v3558_v25  ;;  %v3172_v1 = vpop.permute.xlu1 %3171  ;;  %v4398_v8 = vld [vmem:[%s7010_s8 + $0xa] sm:$0x3] }
 0x77c   :  { %v6753_v59 = vadd.f32 %v3579_v5, %v3559_v28  ;;  %v6755_v39 = vadd.f32 %v3580_v16, %v3560_v50  ;;  %v3174_v61 = vpop.permute.xlu0 %3173  ;;  %v4418_v5 = vld [vmem:[%s7010_s8 + $0xc] sm:$0x3]  ;;  %v4419_v28 = vld [vmem:[%s7010_s8 + $0xe] sm:$0x3]  ;;  %v6811_v50 = vrot.slane %v4398_v8, %v7106_v4 }
 0x77e   :  { %v6757_v3 = vpop.permute.xlu1 %3597 }
 0x780   :  { %v6759_v47 = vpop.permute.xlu0 %3599 }
 0x782   :  { %v3180_v53 = vpop.permute.xlu1 %3179 }
 0x783   :  { %v3185_v7 = vsel %vm1113_vm7, %v3172_v1, %v3180_v53  ;;  %v3189_v55 = vsel %vm1113_vm7, %v3180_v53, %v3172_v1  ;;  %v6814_v1 = vrot.slane %v4398_v8, %v7107_v48  ;;  %v4420_v53 = vld [vmem:[%s7010_s8 + $0x10] sm:$0x3]  ;;  %s4858_s8 = smov [#allocation2]  }
 0x784   :  { %v3207_v30 = vmul.f32 %v3196_v46, %v3189_v55  ;;  %v3208_v22 = vmul.f32 %v3200_v15, %v3185_v7  ;;  %v3182_v36 = vpop.permute.xlu0 %3181  ;;  %v3609_v7 = vsel %vm1544_vm8, %v6716_v33, %v6739_v45  ;;  %v3613_v55 = vsel %vm1544_vm8, %v6739_v45, %v6716_v33  ;;  %s4181_s27 = sshll.u32 %s4858_s8, 4  ;;  %s4182_s27 = int_to_ptr.vmem [resolvable:$true] %s4181_s27 }
 0x785   :  { %v3186_v38 = vsel %vm1113_vm7, %v3174_v61, %v3182_v36  ;;  %v3190_v2 = vsel %vm1113_vm7, %v3182_v36, %v3174_v61  ;;  %v3610_v36 = vsel %vm1544_vm8, %v6721_v40, %v6745_v41  ;;  %v6847_v33 = vrot.slane %v4419_v28, %v7107_v48  ;;  %s4825_s1 = scalar_lea.vmem %s4182_s27, 2048  ;;  %p4830_p1 = scmp.lt.s32.totalorder %s4182_s27, %s4182_s27 }
 0x786   :  { %v3215_v6 = vadd.f32 %v3207_v30, %v6702_v0  ;;  %v3216_v58 = vadd.f32 %v3208_v22, %v6704_v26  ;;  %v3209_v20 = vmul.f32 %v3196_v46, %v3190_v2  ;;  %v3210_v54 = vmul.f32 %v3200_v15, %v3186_v38  ;;  %v3606_v24 = vpop.permute.xlu1 %3605  ;;  %p4826_p0 = scmp.ne.s32.totalorder %s4182_s27, %s4825_s1  ;;  %p4831_p2 = scmp.lt.s32.totalorder %s4825_s1, %s4825_s1 }
 0x787   :  { %v3583_v0 = vmul.f32 %v3570_v63, %v6567_v60  ;;  %v3584_v26 = vmul.f32 %v3574_v10, %v6569_v11  ;;  %v6830_v30 = vrot.slane %v4418_v5, %v7106_v4  ;;  %v6833_v22 = vrot.slane %v4418_v5, %v7107_v48 }
 0x788   :  { %v3561_v17 = vadd.f32 %v3553_v37, %v3215_v6  ;;  %v3562_v27 = vadd.f32 %v3554_v9, %v3216_v58  ;;  %v3217_v56 = vadd.f32 %v3209_v20, %v6706_v29  ;;  %v3218_v13 = vadd.f32 %v3210_v54, %v6708_v32  ;;  %v6789_v21 = vpop.permute.xlu0 %3607  ;;  %p4832_p3 = por %p4831_p2, %p4830_p1 }
 0x789   :  { %v3614_v37 = vsel %vm1544_vm8, %v6745_v41, %v6721_v40  ;;  %v6844_v9 = vrot.slane %v4419_v28, %v7106_v4  ;;  %v6856_v6 = vrot.slane %v4420_v53, %v7106_v4  ;;  %v6859_v58 = vrot.slane %v4420_v53, %v7107_v48 }
 0x78a   :  { %v3563_v46 = vadd.f32 %v3555_v31, %v3217_v56  ;;  %v3564_v15 = vadd.f32 %v3556_v57, %v3218_v13  ;;  %v6781_v42 = vadd.f32 %v3581_v51, %v3561_v17  ;;  %v6783_v18 = vadd.f32 %v3582_v52, %v3562_v27  ;;  %p4833_p4 = pnand %p4832_p3, %p4826_p0 }
 0x78b   :  { %v3629_v40 = vmul.f32 %v6811_v50, %v3609_v7  ;;  %v3630_v41 = vmul.f32 %v6814_v1, %v3613_v55  ;;  %v3631_v52 = vmul.f32 %v6811_v50, %v3610_v36  ;;  %v3632_v4 = vmul.f32 %v6814_v1, %v3614_v37 }
 0x78c   :  { %v6785_v19 = vadd.f32 %v3583_v0, %v3563_v46  ;;  %v6787_v34 = vadd.f32 %v3584_v26, %v3564_v15 }
 0x78d   :  { %v3637_v0 = vadd.f32 %v3629_v40, %v6749_v62  ;;  %v3638_v26 = vadd.f32 %v3630_v41, %v6751_v49  ;;  %v3615_v62 = vsel %vm1544_vm8, %v3606_v24, %v6757_v3 }
 0x79a   :  { %v3940_v29 = vpop.permute.xlu1 %3939 }
 0x79c   :  { %v3942_v44 = vpop.permute.xlu0 %3941 }
 0x79e   :  { %v3948_v32 = vpop.permute.xlu1 %3947 }
 0x79f   :  { %v3955_v38 = vsel %vm1892_vm9, %v3940_v29, %v3948_v32  ;;  %v3959_v2 = vsel %vm1892_vm9, %v3948_v32, %v3940_v29  ;;  %v3639_v29 = vadd.f32 %v3631_v52, %v6753_v59  ;;  %v3612_v59 = vsel %vm1544_vm8, %v6759_v47, %v6789_v21 }
 0x7a0   :  { %v3950_v12 = vpop.permute.xlu0 %3949  ;;  %v3975_v57 = vmul.f32 %v6830_v30, %v3955_v38  ;;  %v3976_v17 = vmul.f32 %v6833_v22, %v3959_v2 }
 0x7a1   :  { %v3956_v20 = vsel %vm1892_vm9, %v3942_v44, %v3950_v12  ;;  %v3960_v54 = vsel %vm1892_vm9, %v3950_v12, %v3942_v44  ;;  %v3640_v44 = vadd.f32 %v3632_v4, %v6755_v39  ;;  %v3616_v39 = vsel %vm1544_vm8, %v6789_v21, %v6759_v47 }
 0x7a2   :  { %v6791_v60 = vpop.permute.xlu1 %3943  ;;  %v3977_v46 = vmul.f32 %v6830_v30, %v3956_v20  ;;  %v3978_v15 = vmul.f32 %v6833_v22, %v3960_v54  ;;  %v3984_v8 = vadd.f32 %v3976_v17, %v3638_v26  ;;  %v3635_v26 = vmul.f32 %v6811_v50, %v3612_v59  ;;  %v7111_v59 = vld [vmem:[#allocation18_spill] sm:$0xff] }
 0x7a4   :  { %v6793_v11 = vpop.permute.xlu0 %3945  ;;  %v3985_v28 = vadd.f32 %v3977_v46, %v3639_v29  ;;  %v3986_v53 = vadd.f32 %v3978_v15, %v3640_v44  ;;  %v3636_v46 = vmul.f32 %v6814_v1, %v3616_v39  ;;  %v7109_v44 = vld [vmem:[#allocation19_spill] sm:$0xff] }
 0x7a6   :  { %v6795_v63 = vpop.permute.xlu1 %3951 }
 0x7a7   :  { %v3957_v15 = vsel %vm1892_vm9, %v6791_v60, %v6795_v63  ;;  %v3961_v29 = vsel %vm1892_vm9, %v6795_v63, %v6791_v60 }
 0x7a8   :  { %v6797_v10 = vpop.permute.xlu0 %3953 }
 0x7a9   :  { %v3962_v60 = vsel %vm1892_vm9, %v6797_v10, %v6793_v11 }
 0x7aa   :  { %v3992_v43 = vpop.permute.xlu1 %3991 }
 0x7ac   :  { %v3994_v23 = vpop.permute.xlu0 %3993 }
 0x7ae   :  { %v4000_v25 = vpop.permute.xlu1 %3999 }
 0x7af   :  { %v4007_v48 = vsel %vm1946_vm10, %v3992_v43, %v4000_v25  ;;  %v4011_v31 = vsel %vm1946_vm10, %v4000_v25, %v3992_v43 }
 0x7b0   :  { %v4002_v14 = vpop.permute.xlu0 %4001  ;;  %v4027_v32 = vmul.f32 %v6844_v9, %v4007_v48  ;;  %v4028_v12 = vmul.f32 %v6847_v33, %v4011_v31  ;;  %v3634_v31 = vmul.f32 %v6814_v1, %v3615_v62 }
 0x7b1   :  { %v4008_v27 = vsel %vm1946_vm10, %v3994_v23, %v4002_v14  ;;  %v4012_v56 = vsel %vm1946_vm10, %v4002_v14, %v3994_v23  ;;  %v3611_v23 = vsel %vm1544_vm8, %v6757_v3, %v3606_v24  ;;  %v3983_v14 = vadd.f32 %v3975_v57, %v3637_v0  ;;  %v7108_v57 = vld [vmem:[#allocation15_spill] sm:$0xff] }
 0x7b2   :  { %v6805_v16 = vpop.permute.xlu1 %3995  ;;  %v4029_v49 = vmul.f32 %v6844_v9, %v4008_v27  ;;  %v4030_v25 = vmul.f32 %v6847_v33, %v4012_v56  ;;  %v4036_v55 = vadd.f32 %v4028_v12, %v3984_v8  ;;  %v3633_v48 = vmul.f32 %v6811_v50, %v3611_v23 }
 0x7b3   :  { %v4035_v7 = vadd.f32 %v4027_v32, %v3983_v14  ;;  %v3642_v62 = vadd.f32 %v3634_v31, %v6783_v18  ;;  %v3980_v18 = vmul.f32 %v6833_v22, %v3961_v29 }
 0x7b4   :  { %v6816_v61 = vpop.permute.xlu0 %3997  ;;  %v4037_v2 = vadd.f32 %v4029_v49, %v3985_v28  ;;  %v4038_v47 = vadd.f32 %v4030_v25, %v3986_v53  ;;  %v3641_v1 = vadd.f32 %v3633_v48, %v6781_v42  ;;  %v3958_v49 = vsel %vm1892_vm9, %v6793_v11, %v6797_v10 }
 0x7b5   :  { %v3979_v42 = vmul.f32 %v6830_v30, %v3957_v15  ;;  %v3981_v10 = vmul.f32 %v6830_v30, %v3958_v49  ;;  %v3982_v28 = vmul.f32 %v6833_v22, %v3962_v60  ;;  %v3643_v22 = vadd.f32 %v3635_v26, %v6785_v19 }
 0x7b6   :  { %v6849_v45 = vpop.permute.xlu1 %4003 }
 0x7b7   :  { %v4013_v11 = vsel %vm1946_vm10, %v6849_v45, %v6805_v16 }
 0x7b8   :  { %v6867_v51 = vpop.permute.xlu0 %4005 }
 0x7ba   :  { %v4044_v13 = vpop.permute.xlu1 %4043 }
 0x7bc   :  { %v4046_v43 = vpop.permute.xlu0 %4045 }
 0x7be   :  { %v4052_v5 = vpop.permute.xlu1 %4051 }
 0x7bf   :  { %v4059_v3 = vsel %vm2000_vm11, %v4044_v13, %v4052_v5  ;;  %v4063_v24 = vsel %vm2000_vm11, %v4052_v5, %v4044_v13  ;;  %v4009_v5 = vsel %vm1946_vm10, %v6805_v16, %v6849_v45  ;;  %v3644_v45 = vadd.f32 %v3636_v46, %v6787_v34  ;;  %v7113_v46 = vld [vmem:[#allocation16_spill] sm:$0xff] }
 0x7c0   :  { %v4079_v36 = vmul.f32 %v6856_v6, %v4059_v3  ;;  %v4080_v37 = vmul.f32 %v6859_v58, %v4063_v24  ;;  %v4054_v38 = vpop.permute.xlu0 %4053 }
 0x7c1   :  { %v4060_v21 = vsel %vm2000_vm11, %v4046_v43, %v4054_v38  ;;  %v4064_v40 = vsel %vm2000_vm11, %v4054_v38, %v4046_v43  ;;  %v7110_v43 = vld [vmem:[#allocation14_spill] sm:$0xff]  ;;  %v3987_v38 = vadd.f32 %v3979_v42, %v3641_v1 }
 0x7c2   :  { %v4087_v41 = vadd.f32 %v4079_v36, %v4035_v7  ;;  %v4088_v20 = vadd.f32 %v4080_v37, %v4036_v55  ;;  %v4081_v54 = vmul.f32 %v6856_v6, %v4060_v21  ;;  %v4082_v52 = vmul.f32 %v6859_v58, %v4064_v40  ;;  %v4048_v4 = vpop.permute.xlu1 %4047 }
 0x7c3   :  { %v4010_v7 = vsel %vm1946_vm10, %v6816_v61, %v6867_v51  ;;  %v4014_v55 = vsel %vm1946_vm10, %v6867_v51, %v6816_v61  ;;  %v4031_v36 = vmul.f32 %v6844_v9, %v4009_v5  ;;  %v4032_v37 = vmul.f32 %v6847_v33, %v4013_v11 }
 0x7c4   :  { %v4119_v17 = vmul.f32 %v7108_v57, %v4087_v41  ;;  %v4120_v27 = vmul.f32 %v7108_v57, %v4088_v20  ;;  %v4089_v56 = vadd.f32 %v4081_v54, %v4037_v2  ;;  %v4090_v13 = vadd.f32 %v4082_v52, %v4038_v47  ;;  %v4050_v0 = vpop.permute.xlu0 %4049 }
 0x7c5   :  { %v3988_v2 = vadd.f32 %v3980_v18, %v3642_v62  ;;  %v4033_v47 = vmul.f32 %v6844_v9, %v4010_v7  ;;  %v4034_v19 = vmul.f32 %v6847_v33, %v4014_v55  ;;  %v3989_v40 = vadd.f32 %v3981_v10, %v3643_v22 }
 0x7c6   :  { %v4151_v32 = vadd.f32 %v7109_v44, %v4119_v17  ;;  %v4152_v12 = vadd.f32 %v7109_v44, %v4120_v27  ;;  %v4121_v23 = vmul.f32 %v7110_v43, %v4089_v56  ;;  %v4122_v50 = vmul.f32 %v7110_v43, %v4090_v13  ;;  %v4056_v8 = vpop.permute.xlu1 %4055  ;;  %v7112_v27 = vld [vmem:[#allocation17_spill] sm:$0xff] }
 0x7c7   :  { %v4061_v16 = vsel %vm2000_vm11, %v4048_v4, %v4056_v8  ;;  %v4065_v30 = vsel %vm2000_vm11, %v4056_v8, %v4048_v4  ;;  %v3990_v41 = vadd.f32 %v3982_v28, %v3644_v45  ;;  %v4039_v20 = vadd.f32 %v4031_v36, %v3987_v38 }
 0x7c8   :  { %v4159_v63 = vmax.f32 %v4151_v32, 0.0  ;;  %v4160_v25 = vmax.f32 %v4152_v12, 0.0  ;;  %v4153_v39 = vadd.f32 %v7111_v59, %v4121_v23  ;;  %v4154_v14 = vadd.f32 %v7111_v59, %v4122_v50  ;;  %v4058_v24 = vpop.permute.xlu0 %4057 }
 0x7c9   :  { %v4062_v61 = vsel %vm2000_vm11, %v4050_v0, %v4058_v24  ;;  %v4066_v51 = vsel %vm2000_vm11, %v4058_v24, %v4050_v0  ;;  %v4083_v34 = vmul.f32 %v6856_v6, %v4061_v16  ;;  %v4084_v21 = vmul.f32 %v6859_v58, %v4065_v30 }
 0x7ca   :  { %4168 = vst [vmem:[#allocation2 + $0x40] sm:$0xff] %v4159_v63  ;;  %4169 = vst [vmem:[#allocation2 + $0x48] sm:$0xff] %v4160_v25  ;;  %v4161_v53 = vmax.f32 %v4153_v39, 0.0  ;;  %v4162_v3 = vmax.f32 %v4154_v14, 0.0  ;;  %v4040_v54 = vadd.f32 %v4032_v37, %v3988_v2  ;;  %v4085_v52 = vmul.f32 %v6856_v6, %v4062_v61 }
 0x7cb   :  { %v4086_v4 = vmul.f32 %v6859_v58, %v4066_v51  ;;  %v4041_v48 = vadd.f32 %v4033_v47, %v3989_v40  ;;  %v4042_v31 = vadd.f32 %v4034_v19, %v3990_v41  ;;  %v4091_v35 = vadd.f32 %v4083_v34, %v4039_v20 }
 0x7cc   :  { %4170 = vst [vmem:[#allocation2 + $0x50] sm:$0xff] %v4161_v53  ;;  %4171 = vst [vmem:[#allocation2 + $0x58] sm:$0xff] %v4162_v3  ;;  %v4092_v57 = vadd.f32 %v4084_v21, %v4040_v54 }
 0x7cd   :  { %v4093_v17 = vadd.f32 %v4085_v52, %v4041_v48  ;;  %v4094_v9 = vadd.f32 %v4086_v4, %v4042_v31  ;;  %v4123_v33 = vmul.f32 %v7112_v27, %v4091_v35 }
 0x7ce   :  { %v4124_v56 = vmul.f32 %v7112_v27, %v4092_v57 }
 0x7cf   :  { %v4125_v15 = vmul.f32 %v7113_v46, %v4093_v17  ;;  %v4126_v29 = vmul.f32 %v7113_v46, %v4094_v9 }
 0x7d7   :  { %v4144_v13 = vpop.permute.xlu1 %4143 }
 0x7d8   :  { %v4155_v0 = vadd.f32 %v4144_v13, %v4123_v33  ;;  %v4156_v26 = vadd.f32 %v4144_v13, %v4124_v56 }
 0x7d9   :  { %v4149_v6 = vpop.permute.xlu0 %4148 }
 0x7da   :  { %v4163_v58 = vmax.f32 %v4155_v0, 0.0  ;;  %v4164_v44 = vmax.f32 %v4156_v26, 0.0  ;;  %v4157_v32 = vadd.f32 %v4149_v6, %v4125_v15  ;;  %v4158_v12 = vadd.f32 %v4149_v6, %v4126_v29 }
 0x7dc   :  { %4172 = vst [vmem:[#allocation2 + $0x60] sm:$0xff] %v4163_v58  ;;  %4173 = vst [vmem:[#allocation2 + $0x68] sm:$0xff] %v4164_v44  ;;  %v4165_v43 = vmax.f32 %v4157_v32, 0.0  ;;  %v4166_v23 = vmax.f32 %v4158_v12, 0.0 }
 0x7de   :  { %4174 = vst [vmem:[#allocation2 + $0x70] sm:$0xff] %v4165_v43  ;;  %4175 = vst [vmem:[#allocation2 + $0x78] sm:$0xff] %v4166_v23 }
 0x7df   :  { %4836 = shalt.err (!%p4833_p4)
}
 0x7e0   :  { %s4837_s30 = scalar_lea.hbm %s7013_s11, 2048 }
 0x7e1   :  { %p4838_p5 = scmp.ne.s32.totalorder %s7013_s11, %s4837_s30  ;;  %p4841_p6 = scmp.lt.u32.totalorder %s4837_s30, %s7013_s11 }
 0x7e3   :  { %p4843_p7 = pnand %p4841_p6, %p4838_p5 }
 0x7e5   :  { %4846 = shalt.err (!%p4843_p7)
}
 0x7e6   :  { %s4859_s18 = smov 256  }
 0x7e7   :  { %4187 = dma.vmem_to_hbm [thread:$0]  %s4182_s27, 2048, %s7013_s11, [#allocation3], %s4859_s18, %s4859_s18, %s4852_s17  }
 0x7e8   :  { %4847 = dma.done.wait [#allocation3], 2048  }
 0x7e9   :  { %4848 = vsyncadd [#allocation3], 4294965248 }
 0x7ea   :  { %4191 = vsyncpa [#allocation3], 1 }

</bundles_post_ra>
